<compile_context>
chip_gen: v7x
topology: tpu7x:2x2x1
jax: 0.10.0
libtpu: 0.0.40
codegen_flags: <defaults>
</compile_context>

<pallas_src>
import functools
import math

import jax
import jax.numpy as jnp
from jax.experimental import pallas as pl
from jax.experimental.pallas import tpu as pltpu


def _conv_block_kernel(x_ref, w1_ref, b1_ref, adw_ref, bdw_ref, o_ref, xp_ref, *,
                       tile_h, sub, img_h):
    """One (batch, row-strip) grid step.

    x_ref:   (1, H, W*Cin)        whole image of this batch element (resident per n)
    w1_ref:  (W*Cin, W*Cout)      block-diagonal 1x1 conv weights (BN folded in)
    b1_ref:  (1, W*Cout)          folded 1x1 bias, tiled along W
    adw_ref: (3, W*Cout, W*Cout)  depthwise band matrices, one per vertical tap dy
    bdw_ref: (1, W*Cout)          depthwise bias, tiled along W
    o_ref:   (1, tile_h, W*Cout)  lane-dense output strip
    xp_ref:  (H + 8, W*Cin) f32   VMEM scratch: zero-padded copy of the image
                                  (scratch row r+1 == image row r); replaces the
                                  host-side jnp.pad (a full extra HBM pass).
    """
    h = pl.program_id(1)
    r0 = pl.multiple_of(h * tile_h, sub)            # strip start (image rows)

    # Build the zero-padded VMEM copy once per batch element (h == 0).  Requires
    # the strip axis to be sequential ("arbitrary") so later strips of the same n
    # see the filled scratch.
    @pl.when(h == 0)
    def _():
        xp_ref[...] = jnp.zeros_like(xp_ref)
        xp_ref[pl.ds(1, img_h), :] = x_ref[0].astype(jnp.float32)

    load = sub + 8                                  # sub+2 halo rows, 8-aligned
    w1 = w1_ref[...]
    b1 = b1_ref[...]
    bdw = bdw_ref[...]
    nblk = tile_h // sub

    def sub_block(j, carry):
        # Window of `load` rows starting at image row (base - 1); 8-aligned start.
        base = pl.multiple_of(r0 + j * sub, sub)
        x_win = xp_ref[pl.ds(base, load), :]

        # 1x1 conv (+ folded BatchNorm + bias + ReLU): one lane-dense MXU pass,
        # full-f32 passes (MXU is otherwise idle, so HIGHEST precision is free).
        y = jnp.dot(x_win, w1, preferred_element_type=jnp.float32,
                    precision=jax.lax.Precision.HIGHEST)
        y = jnp.maximum(y + b1, 0.0)

        # Zero the halo rows outside the image: the padded x rows are zero, but the
        # folded bias makes them nonzero after the ReLU.
        row = jax.lax.broadcasted_iota(jnp.int32, (load, 1), 0) + (base - 1)
        y = jnp.where(jnp.logical_and(row >= 0, row < img_h), y, 0.0)

        # Depthwise 3x3 'same': one banded matmul per vertical tap dy (horizontal
        # taps and the W-direction zero padding are encoded inside adw_ref[dy]).
        # TODO(synk): on v6e/v7x the three dots could be fused into one
        # (tile, 3*W*Cout) x (3*W*Cout, W*Cout) dot; skipped for v5e portability.
        acc = jnp.dot(y[0:sub, :], adw_ref[0], preferred_element_type=jnp.float32,
                      precision=jax.lax.Precision.HIGHEST)
        for dy in (1, 2):
            acc = acc + jnp.dot(y[dy:dy + sub, :], adw_ref[dy],
                                preferred_element_type=jnp.float32,
                                precision=jax.lax.Precision.HIGHEST)
        out = jnp.maximum(acc + bdw, 0.0)

        off = pl.multiple_of(j * sub, sub)
        o_ref[0, pl.ds(off, sub), :] = out.astype(o_ref.dtype)
        return carry

    # Sub-blocking keeps live values bounded (no vreg spills) while the strip
    # amortizes per-grid-step overhead; unroll gives the scheduler visibility.
    unroll = True if nblk <= 8 else math.gcd(nblk, 8)
    jax.lax.fori_loop(0, nblk, sub_block, 0, unroll=unroll)


def conv_block_pallas(x_flat, w_big, b1_tiled, a_bands, bdw_tiled, *,
                      img_h, tile_h, sub, out_dtype):
    N, H, WCin = x_flat.shape
    assert H == img_h
    WCout = w_big.shape[1]
    n_strips = img_h // tile_h
    hp = img_h + 8          # 1 zero row on top, 7 below -> 8-aligned halo windows

    kernel = functools.partial(_conv_block_kernel, tile_h=tile_h, sub=sub,
                               img_h=img_h)
    return pl.pallas_call(
        kernel,
        out_shape=jax.ShapeDtypeStruct((N, img_h, WCout), out_dtype),
        grid_spec=pltpu.PrefetchScalarGridSpec(
            num_scalar_prefetch=0,
            # n outer / strips inner: x's constant-per-n index map means the image
            # is DMA'd into VMEM once per batch element, not once per strip.
            grid=(N, n_strips),
            in_specs=[
                pl.BlockSpec((1, img_h, WCin), lambda n, h: (n, 0, 0)),
                # Weight operands have constant index maps (no re-DMA across steps).
                # TODO(synk): single-buffer them (pipeline_mode=pl.Buffered(1)) to
                # reclaim ~0.4 MB VMEM if tile_h is pushed toward the v7x budget.
                pl.BlockSpec((WCin, WCout), lambda n, h: (0, 0)),
                pl.BlockSpec((1, WCout), lambda n, h: (0, 0)),
                pl.BlockSpec((3, WCout, WCout), lambda n, h: (0, 0, 0)),
                pl.BlockSpec((1, WCout), lambda n, h: (0, 0)),
            ],
            out_specs=pl.BlockSpec((1, tile_h, WCout), lambda n, h: (n, h, 0)),
            scratch_shapes=[pltpu.VMEM((hp, WCin), jnp.float32)],
        ),
        compiler_params=pltpu.CompilerParams(
            # n is megacore-parallel (keep N >= 2, ideally even, on v7x; for N == 1
            # inference make the strip axis lead instead).  The strip axis must be
            # sequential because the padded-x scratch is filled at h == 0.
            dimension_semantics=("parallel", "arbitrary"),
            # v7x-safe cap (64 MiB physical VMEM, leave Mosaic scratch headroom);
            # can be raised on v5e/v6e (128 MiB) for very large strips.
            vmem_limit_bytes=32 * 1024 * 1024,
        ),
    )(x_flat, w_big, b1_tiled, a_bands, bdw_tiled)


def prepare_conv_block_operands(params, H, W, eps=1e-5):
    """Fold BN into the 1x1 conv and build lane-dense matmul operands (host, f32)."""
    w1, b1 = params["w1"], params["b1"]                 # (Cout, Cin), (Cout,)
    k_dw, b_dw = params["w_dw"], params["b_dw"]         # (Cout, 3, 3), (Cout,)
    gamma, beta = params["bn_gamma"], params["bn_beta"]
    mean, var = params["bn_mean"], params["bn_var"]
    Cout, Cin = w1.shape

    s = gamma / jnp.sqrt(var + eps)
    w1_fold = w1.T * s[None, :]                          # (Cin, Cout)
    b1_fold = b1 * s + (beta - mean * s)                 # (Cout,)

    # 1x1 conv as a block-diagonal (W*Cin, W*Cout) matrix -> lane-dense activation.
    w_big = jnp.kron(jnp.eye(W, dtype=jnp.float32), w1_fold)
    b1_tiled = jnp.tile(b1_fold, W)[None, :]             # (1, W*Cout)

    # Depthwise 3x3 'same' as three banded (W*Cout, W*Cout) matrices (one per dy);
    # band[(w+dx-1)*Cout + c, w*Cout + c] = k[c, dy, dx], zero outside [0, W).
    bands = []
    for dy in range(3):
        a = jnp.zeros((W * Cout, W * Cout), jnp.float32)
        for dx in range(3):
            shift = jnp.eye(W, k=1 - dx, dtype=jnp.float32)
            a = a + jnp.kron(shift, jnp.diag(k_dw[:, dy, dx]))
        bands.append(a)
    a_bands = jnp.stack(bands)                           # (3, W*Cout, W*Cout)
    bdw_tiled = jnp.tile(b_dw, W)[None, :]               # (1, W*Cout)
    return w_big, b1_tiled, a_bands, bdw_tiled


def _choose_tiling(H, activation_dtype, max_tile_h=256):
    """Pick (tile_h, sub): HBM row-strip per grid step and in-kernel sub-block."""
    sub = 16 if (activation_dtype == jnp.bfloat16 and H % 16 == 0) else 8
    assert H % sub == 0, f"H={H} must be a multiple of 8"  # TODO(synk): ragged H
    tile_h = sub
    for t in range(sub, min(H, max_tile_h) + 1, sub):
        if H % t == 0:
            tile_h = t
    return tile_h, sub


def conv_block(x_nchw, params, *, eps=1e-5, tile_h=None,
               activation_dtype=jnp.float32):
    """Full ConvBlock forward.  Input/output are NCHW like the PyTorch module.

    activation_dtype: dtype of activations in HBM (kernel input/output).
      float32  -> exact parity with the PyTorch module (default).
      bfloat16 -> halves HBM traffic on the memory-bound path (v6e/v7x; on v5e
                  only storage narrows).  Compute / accumulation stay f32.
    """
    N, Cin, H, W = x_nchw.shape
    Cout = params["w1"].shape[0]

    auto_tile, sub = _choose_tiling(H, activation_dtype)
    if tile_h is None:
        tile_h = auto_tile
    assert H % tile_h == 0 and tile_h % sub == 0, (H, tile_h, sub)

    w_big, b1_t, a_bands, bdw_t = prepare_conv_block_operands(params, H, W, eps)

    # NCHW -> NHWC -> fold (W, Cin) onto the lane axis.  No host-side H padding:
    # the 1-row vertical halo lives in a VMEM scratch built inside the kernel.
    # TODO(synk): in an NHWC end-to-end model these wrapper transposes disappear.
    x = jnp.transpose(x_nchw, (0, 2, 3, 1)).reshape(N, H, W * Cin)
    x = x.astype(activation_dtype)

    out_flat = conv_block_pallas(x, w_big, b1_t, a_bands, bdw_t,
                                 img_h=H, tile_h=tile_h, sub=sub,
                                 out_dtype=activation_dtype)   # (N, H, W*Cout)
    out = out_flat.reshape(N, H, W, Cout)
    return jnp.transpose(out, (0, 3, 1, 2))


def reference_forward(x, params, eps=1e-5):
    """Pure-JAX NCHW reference mirroring the PyTorch module (unfused)."""
    w1, b1 = params["w1"], params["b1"]
    k_dw, b_dw = params["w_dw"], params["b_dw"]
    gamma, beta = params["bn_gamma"], params["bn_beta"]
    mean, var = params["bn_mean"], params["bn_var"]
    N, Cin, H, W = x.shape
    Cout = w1.shape[0]

    y = jnp.einsum("nihw,oi->nohw", x, w1) + b1[None, :, None, None]
    y = (y - mean[None, :, None, None]) / jnp.sqrt(var + eps)[None, :, None, None]
    y = y * gamma[None, :, None, None] + beta[None, :, None, None]
    y = jnp.maximum(y, 0.0)

    yp = jnp.pad(y, ((0, 0), (0, 0), (1, 1), (1, 1)))
    out = jnp.zeros((N, Cout, H, W), jnp.float32)
    for dy in range(3):
        for dx in range(3):
            out = out + yp[:, :, dy:dy + H, dx:dx + W] * \
                k_dw[:, dy, dx][None, :, None, None]
    return jnp.maximum(out + b_dw[None, :, None, None], 0.0)


def make_params(key, in_channels, out_channels):
    ks = jax.random.split(key, 8)
    return {
        "w1": 0.1 * jax.random.normal(ks[0], (out_channels, in_channels), jnp.float32),
        "b1": 0.1 * jax.random.normal(ks[1], (out_channels,), jnp.float32),
        "bn_gamma": 1.0 + 0.1 * jax.random.normal(ks[2], (out_channels,), jnp.float32),
        "bn_beta": 0.1 * jax.random.normal(ks[3], (out_channels,), jnp.float32),
        "bn_mean": 0.1 * jax.random.normal(ks[4], (out_channels,), jnp.float32),
        "bn_var": jnp.abs(1.0 + 0.1 * jax.random.normal(ks[5], (out_channels,), jnp.float32)),
        "w_dw": 0.1 * jax.random.normal(ks[6], (out_channels, 3, 3), jnp.float32),
        "b_dw": 0.1 * jax.random.normal(ks[7], (out_channels,), jnp.float32),
    }


if __name__ == "__main__":
    key = jax.random.PRNGKey(0)
    k_x, k_p = jax.random.split(key)

    N, Cin, Cout, H, W = 2, 4, 8, 16, 16
    x = jax.random.normal(k_x, (N, Cin, H, W), jnp.float32)
    params = make_params(k_p, Cin, Cout)

    ref = jax.block_until_ready(reference_forward(x, params))

    # f32 activations in HBM + precision=HIGHEST MXU passes -> tight parity with
    # the unfused reference (tolerance 10x tighter than the previous version).
    out = jax.block_until_ready(conv_block(x, params))
    assert out.shape == (N, Cout, H, W), out.shape
    max_err = float(jnp.max(jnp.abs(out - ref)))
    assert jnp.allclose(out, ref, atol=1e-3, rtol=1e-3), max_err

    # bf16 activations in HBM (the memory-bound configuration recommended for
    # v6e/v7x): compute stays f32, so the only error is bf16 storage quantization.
    # Loose threshold: structural bugs would exceed this by >10x.
    out_bf = jax.block_until_ready(
        conv_block(x, params, activation_dtype=jnp.bfloat16))
    max_err_bf = float(jnp.max(jnp.abs(out_bf.astype(jnp.float32) - ref)))
    assert max_err_bf < 5e-2, max_err_bf

    print("KERNEL_OK")
</pallas_src>

<mosaic_0001>
module attributes {stable_mosaic.version = 11 : i64} {
  func.func @_conv_block_kernel(%arg0: i32, %arg1: i32, %arg2: memref<1x16x64xf32, #tpu.memory_space<vmem>>, %arg3: memref<64x128xf32, #tpu.memory_space<vmem>>, %arg4: memref<1x128xf32, #tpu.memory_space<vmem>>, %arg5: memref<3x128x128xf32, #tpu.memory_space<vmem>>, %arg6: memref<1x128xf32, #tpu.memory_space<vmem>>, %arg7: memref<1x16x128xf32, #tpu.memory_space<vmem>>, %arg8: memref<24x64xf32, #tpu.memory_space<vmem>>) attributes {dimension_semantics = [#tpu.dimension_semantics<parallel>, #tpu.dimension_semantics<arbitrary>], iteration_bounds = array<i64: 2, 1>, scalar_prefetch = 0 : i64, scratch_operands = 1 : i64, tpu.core_type = #tpu.core_type<tc>, window_params = [{transform_indices = @transform_0, window_bounds = array<i64: 1, 16, 64>}, {pipeline_mode = #tpu.pipeline_mode<synchronous>, transform_indices = @transform_1, window_bounds = array<i64: 64, 128>}, {pipeline_mode = #tpu.pipeline_mode<synchronous>, transform_indices = @transform_2, window_bounds = array<i64: 1, 128>}, {pipeline_mode = #tpu.pipeline_mode<synchronous>, transform_indices = @transform_3, window_bounds = array<i64: 3, 128, 128>}, {pipeline_mode = #tpu.pipeline_mode<synchronous>, transform_indices = @transform_4, window_bounds = array<i64: 1, 128>}, {transform_indices = @transform_5, window_bounds = array<i64: 1, 16, 128>}]} {
    %c16_i32 = arith.constant 16 : i32
    %0 = arith.muli %arg1, %c16_i32 : i32
    %1 = tpu.assume_multiple %0, 8 : i32
    %c0_i32 = arith.constant 0 : i32
    %2 = arith.cmpi eq, %arg1, %c0_i32 : i32
    %3 = arith.extui %2 : i1 to i32
    %c0_i32_0 = arith.constant 0 : i32
    %4 = arith.cmpi ne, %3, %c0_i32_0 : i32
    scf.if %4 {
      %cst_51 = arith.constant 0.000000e+00 : f32
      %102 = vector.broadcast %cst_51 : f32 to vector<24x64xf32>
      %c0_52 = arith.constant 0 : index
      %c0_53 = arith.constant 0 : index
      %103 = vector.load %arg8[%c0_52, %c0_53] : memref<24x64xf32, #tpu.memory_space<vmem>>, vector<24x64xf32>
      tpu.vector_store %arg8[%c0_52, %c0_53], %102 {strides = array<i32>} : memref<24x64xf32, #tpu.memory_space<vmem>>, vector<24x64xf32>,
      %c0_54 = arith.constant 0 : index
      %c0_55 = arith.constant 0 : index
      %c0_56 = arith.constant 0 : index
      %104 = vector.load %arg2[%c0_54, %c0_55, %c0_56] : memref<1x16x64xf32, #tpu.memory_space<vmem>>, vector<1x16x64xf32>
      %105 = vector.shape_cast %104 : vector<1x16x64xf32> to vector<16x64xf32>
      %c1_57 = arith.constant 1 : index
      %c0_58 = arith.constant 0 : index
      %106 = vector.load %arg8[%c1_57, %c0_58] : memref<24x64xf32, #tpu.memory_space<vmem>>, vector<16x64xf32>
      tpu.vector_store %arg8[%c1_57, %c0_58], %105 {strides = array<i32>} : memref<24x64xf32, #tpu.memory_space<vmem>>, vector<16x64xf32>,
    } else {
    }
    %c0 = arith.constant 0 : index
    %c0_1 = arith.constant 0 : index
    %5 = vector.load %arg3[%c0, %c0_1] : memref<64x128xf32, #tpu.memory_space<vmem>>, vector<64x128xf32>
    %c0_2 = arith.constant 0 : index
    %c0_3 = arith.constant 0 : index
    %6 = vector.load %arg4[%c0_2, %c0_3] : memref<1x128xf32, #tpu.memory_space<vmem>>, vector<1x128xf32>
    %c0_4 = arith.constant 0 : index
    %c0_5 = arith.constant 0 : index
    %7 = vector.load %arg6[%c0_4, %c0_5] : memref<1x128xf32, #tpu.memory_space<vmem>>, vector<1x128xf32>
    %c0_i32_6 = arith.constant 0 : i32
    %c8_i32 = arith.constant 8 : i32
    %8 = arith.muli %c0_i32_6, %c8_i32 : i32
    %9 = arith.addi %1, %8 : i32
    %10 = tpu.assume_multiple %9, 8 : i32
    %11 = arith.index_cast %10 : i32 to index
    %c0_7 = arith.constant 0 : index
    %12 = vector.load %arg8[%11, %c0_7] : memref<24x64xf32, #tpu.memory_space<vmem>>, vector<16x64xf32>
    %cst = arith.constant dense<0.000000e+00> : vector<16x128xf32>
    %13 = tpu.matmul %12, %5, %cst {dimension_numbers = #tpu.dot_dimension_numbers<[1], [0], [0], [1], [0, 0, 1, 1], [], []>, precision = #tpu.contract_precision<fp32>} : vector<16x64xf32>, vector<64x128xf32>, vector<16x128xf32> -> vector<16x128xf32>
    %14 = vector.broadcast %6 : vector<1x128xf32> to vector<16x128xf32>
    %15 = arith.addf %13, %14 : vector<16x128xf32>
    %cst_8 = arith.constant 0.000000e+00 : f32
    %16 = vector.broadcast %cst_8 : f32 to vector<16x128xf32>
    %17 = arith.maximumf %15, %16 : vector<16x128xf32>
    %18 = tpu.iota {dimensions = array<i32: 0>} : vector<16x1xi32>
    %c1_i32 = arith.constant 1 : i32
    %19 = arith.subi %10, %c1_i32 : i32
    %20 = vector.broadcast %19 : i32 to vector<16x1xi32>
    %21 = arith.addi %18, %20 : vector<16x1xi32>
    %c0_i32_9 = arith.constant 0 : i32
    %22 = vector.broadcast %c0_i32_9 : i32 to vector<16x1xi32>
    %23 = arith.cmpi sge, %21, %22 : vector<16x1xi32>
    %c16_i32_10 = arith.constant 16 : i32
    %24 = vector.broadcast %c16_i32_10 : i32 to vector<16x1xi32>
    %25 = arith.cmpi slt, %21, %24 : vector<16x1xi32>
    %26 = arith.andi %23, %25 : vector<16x1xi1>
    %cst_11 = arith.constant 0.000000e+00 : f32
    %27 = vector.shape_cast %26 : vector<16x1xi1> to vector<16x1xi1>
    %28 = vector.broadcast %27 : vector<16x1xi1> to vector<16x128xi1>
    %29 = vector.broadcast %cst_11 : f32 to vector<16x128xf32>
    %30 = arith.select %28, %17, %29 : vector<16x128xi1>, vector<16x128xf32>
    %31 = vector.extract_strided_slice %30 {offsets = [0, 0], sizes = [8, 128], strides = [1, 1]} : vector<16x128xf32> to vector<8x128xf32>
    %c0_12 = arith.constant 0 : index
    %c0_13 = arith.constant 0 : index
    %c0_14 = arith.constant 0 : index
    %32 = vector.load %arg5[%c0_12, %c0_13, %c0_14] : memref<3x128x128xf32, #tpu.memory_space<vmem>>, vector<1x128x128xf32>
    %33 = vector.shape_cast %32 : vector<1x128x128xf32> to vector<128x128xf32>
    %cst_15 = arith.constant dense<0.000000e+00> : vector<8x128xf32>
    %34 = tpu.matmul %31, %33, %cst_15 {dimension_numbers = #tpu.dot_dimension_numbers<[1], [0], [0], [1], [0, 0, 1, 1], [], []>, precision = #tpu.contract_precision<fp32>} : vector<8x128xf32>, vector<128x128xf32>, vector<8x128xf32> -> vector<8x128xf32>
    %35 = vector.extract_strided_slice %30 {offsets = [1, 0], sizes = [8, 128], strides = [1, 1]} : vector<16x128xf32> to vector<8x128xf32>
    %c1 = arith.constant 1 : index
    %c0_16 = arith.constant 0 : index
    %c0_17 = arith.constant 0 : index
    %36 = vector.load %arg5[%c1, %c0_16, %c0_17] : memref<3x128x128xf32, #tpu.memory_space<vmem>>, vector<1x128x128xf32>
    %37 = vector.shape_cast %36 : vector<1x128x128xf32> to vector<128x128xf32>
    %cst_18 = arith.constant dense<0.000000e+00> : vector<8x128xf32>
    %38 = tpu.matmul %35, %37, %cst_18 {dimension_numbers = #tpu.dot_dimension_numbers<[1], [0], [0], [1], [0, 0, 1, 1], [], []>, precision = #tpu.contract_precision<fp32>} : vector<8x128xf32>, vector<128x128xf32>, vector<8x128xf32> -> vector<8x128xf32>
    %39 = arith.addf %34, %38 : vector<8x128xf32>
    %40 = vector.extract_strided_slice %30 {offsets = [2, 0], sizes = [8, 128], strides = [1, 1]} : vector<16x128xf32> to vector<8x128xf32>
    %c2 = arith.constant 2 : index
    %c0_19 = arith.constant 0 : index
    %c0_20 = arith.constant 0 : index
    %41 = vector.load %arg5[%c2, %c0_19, %c0_20] : memref<3x128x128xf32, #tpu.memory_space<vmem>>, vector<1x128x128xf32>
    %42 = vector.shape_cast %41 : vector<1x128x128xf32> to vector<128x128xf32>
    %cst_21 = arith.constant dense<0.000000e+00> : vector<8x128xf32>
    %43 = tpu.matmul %40, %42, %cst_21 {dimension_numbers = #tpu.dot_dimension_numbers<[1], [0], [0], [1], [0, 0, 1, 1], [], []>, precision = #tpu.contract_precision<fp32>} : vector<8x128xf32>, vector<128x128xf32>, vector<8x128xf32> -> vector<8x128xf32>
    %44 = arith.addf %39, %43 : vector<8x128xf32>
    %45 = vector.broadcast %7 : vector<1x128xf32> to vector<8x128xf32>
    %46 = arith.addf %44, %45 : vector<8x128xf32>
    %cst_22 = arith.constant 0.000000e+00 : f32
    %47 = vector.broadcast %cst_22 : f32 to vector<8x128xf32>
    %48 = arith.maximumf %46, %47 : vector<8x128xf32>
    %c8_i32_23 = arith.constant 8 : i32
    %49 = arith.muli %c0_i32_6, %c8_i32_23 : i32
    %50 = tpu.assume_multiple %49, 8 : i32
    %c0_24 = arith.constant 0 : index
    %51 = arith.index_cast %50 : i32 to index
    %c0_25 = arith.constant 0 : index
    %52 = vector.load %arg7[%c0_24, %51, %c0_25] : memref<1x16x128xf32, #tpu.memory_space<vmem>>, vector<1x8x128xf32>
    %53 = vector.shape_cast %52 : vector<1x8x128xf32> to vector<8x128xf32>
    %54 = vector.shape_cast %48 : vector<8x128xf32> to vector<1x8x128xf32>
    tpu.vector_store %arg7[%c0_24, %51, %c0_25], %54 {strides = array<i32>} : memref<1x16x128xf32, #tpu.memory_space<vmem>>, vector<1x8x128xf32>,
    %c1_i32_26 = arith.constant 1 : i32
    %c8_i32_27 = arith.constant 8 : i32
    %55 = arith.muli %c1_i32_26, %c8_i32_27 : i32
    %56 = arith.addi %1, %55 : i32
    %57 = tpu.assume_multiple %56, 8 : i32
    %58 = arith.index_cast %57 : i32 to index
    %c0_28 = arith.constant 0 : index
    %59 = vector.load %arg8[%58, %c0_28] : memref<24x64xf32, #tpu.memory_space<vmem>>, vector<16x64xf32>
    %cst_29 = arith.constant dense<0.000000e+00> : vector<16x128xf32>
    %60 = tpu.matmul %59, %5, %cst_29 {dimension_numbers = #tpu.dot_dimension_numbers<[1], [0], [0], [1], [0, 0, 1, 1], [], []>, precision = #tpu.contract_precision<fp32>} : vector<16x64xf32>, vector<64x128xf32>, vector<16x128xf32> -> vector<16x128xf32>
    %61 = vector.broadcast %6 : vector<1x128xf32> to vector<16x128xf32>
    %62 = arith.addf %60, %61 : vector<16x128xf32>
    %cst_30 = arith.constant 0.000000e+00 : f32
    %63 = vector.broadcast %cst_30 : f32 to vector<16x128xf32>
    %64 = arith.maximumf %62, %63 : vector<16x128xf32>
    %65 = tpu.iota {dimensions = array<i32: 0>} : vector<16x1xi32>
    %c1_i32_31 = arith.constant 1 : i32
    %66 = arith.subi %57, %c1_i32_31 : i32
    %67 = vector.broadcast %66 : i32 to vector<16x1xi32>
    %68 = arith.addi %65, %67 : vector<16x1xi32>
    %c0_i32_32 = arith.constant 0 : i32
    %69 = vector.broadcast %c0_i32_32 : i32 to vector<16x1xi32>
    %70 = arith.cmpi sge, %68, %69 : vector<16x1xi32>
    %c16_i32_33 = arith.constant 16 : i32
    %71 = vector.broadcast %c16_i32_33 : i32 to vector<16x1xi32>
    %72 = arith.cmpi slt, %68, %71 : vector<16x1xi32>
    %73 = arith.andi %70, %72 : vector<16x1xi1>
    %cst_34 = arith.constant 0.000000e+00 : f32
    %74 = vector.shape_cast %73 : vector<16x1xi1> to vector<16x1xi1>
    %75 = vector.broadcast %74 : vector<16x1xi1> to vector<16x128xi1>
    %76 = vector.broadcast %cst_34 : f32 to vector<16x128xf32>
    %77 = arith.select %75, %64, %76 : vector<16x128xi1>, vector<16x128xf32>
    %78 = vector.extract_strided_slice %77 {offsets = [0, 0], sizes = [8, 128], strides = [1, 1]} : vector<16x128xf32> to vector<8x128xf32>
    %c0_35 = arith.constant 0 : index
    %c0_36 = arith.constant 0 : index
    %c0_37 = arith.constant 0 : index
    %79 = vector.load %arg5[%c0_35, %c0_36, %c0_37] : memref<3x128x128xf32, #tpu.memory_space<vmem>>, vector<1x128x128xf32>
    %80 = vector.shape_cast %79 : vector<1x128x128xf32> to vector<128x128xf32>
    %cst_38 = arith.constant dense<0.000000e+00> : vector<8x128xf32>
    %81 = tpu.matmul %78, %80, %cst_38 {dimension_numbers = #tpu.dot_dimension_numbers<[1], [0], [0], [1], [0, 0, 1, 1], [], []>, precision = #tpu.contract_precision<fp32>} : vector<8x128xf32>, vector<128x128xf32>, vector<8x128xf32> -> vector<8x128xf32>
    %82 = vector.extract_strided_slice %77 {offsets = [1, 0], sizes = [8, 128], strides = [1, 1]} : vector<16x128xf32> to vector<8x128xf32>
    %c1_39 = arith.constant 1 : index
    %c0_40 = arith.constant 0 : index
    %c0_41 = arith.constant 0 : index
    %83 = vector.load %arg5[%c1_39, %c0_40, %c0_41] : memref<3x128x128xf32, #tpu.memory_space<vmem>>, vector<1x128x128xf32>
    %84 = vector.shape_cast %83 : vector<1x128x128xf32> to vector<128x128xf32>
    %cst_42 = arith.constant dense<0.000000e+00> : vector<8x128xf32>
    %85 = tpu.matmul %82, %84, %cst_42 {dimension_numbers = #tpu.dot_dimension_numbers<[1], [0], [0], [1], [0, 0, 1, 1], [], []>, precision = #tpu.contract_precision<fp32>} : vector<8x128xf32>, vector<128x128xf32>, vector<8x128xf32> -> vector<8x128xf32>
    %86 = arith.addf %81, %85 : vector<8x128xf32>
    %87 = vector.extract_strided_slice %77 {offsets = [2, 0], sizes = [8, 128], strides = [1, 1]} : vector<16x128xf32> to vector<8x128xf32>
    %c2_43 = arith.constant 2 : index
    %c0_44 = arith.constant 0 : index
    %c0_45 = arith.constant 0 : index
    %88 = vector.load %arg5[%c2_43, %c0_44, %c0_45] : memref<3x128x128xf32, #tpu.memory_space<vmem>>, vector<1x128x128xf32>
    %89 = vector.shape_cast %88 : vector<1x128x128xf32> to vector<128x128xf32>
    %cst_46 = arith.constant dense<0.000000e+00> : vector<8x128xf32>
    %90 = tpu.matmul %87, %89, %cst_46 {dimension_numbers = #tpu.dot_dimension_numbers<[1], [0], [0], [1], [0, 0, 1, 1], [], []>, precision = #tpu.contract_precision<fp32>} : vector<8x128xf32>, vector<128x128xf32>, vector<8x128xf32> -> vector<8x128xf32>
    %91 = arith.addf %86, %90 : vector<8x128xf32>
    %92 = vector.broadcast %7 : vector<1x128xf32> to vector<8x128xf32>
    %93 = arith.addf %91, %92 : vector<8x128xf32>
    %cst_47 = arith.constant 0.000000e+00 : f32
    %94 = vector.broadcast %cst_47 : f32 to vector<8x128xf32>
    %95 = arith.maximumf %93, %94 : vector<8x128xf32>
    %c8_i32_48 = arith.constant 8 : i32
    %96 = arith.muli %c1_i32_26, %c8_i32_48 : i32
    %97 = tpu.assume_multiple %96, 8 : i32
    %c0_49 = arith.constant 0 : index
    %98 = arith.index_cast %97 : i32 to index
    %c0_50 = arith.constant 0 : index
    %99 = vector.load %arg7[%c0_49, %98, %c0_50] : memref<1x16x128xf32, #tpu.memory_space<vmem>>, vector<1x8x128xf32>
    %100 = vector.shape_cast %99 : vector<1x8x128xf32> to vector<8x128xf32>
    %101 = vector.shape_cast %95 : vector<8x128xf32> to vector<1x8x128xf32>
    tpu.vector_store %arg7[%c0_49, %98, %c0_50], %101 {strides = array<i32>} : memref<1x16x128xf32, #tpu.memory_space<vmem>>, vector<1x8x128xf32>,
    %c2_i32 = arith.constant 2 : i32
    return
  }
  func.func @transform_0(%arg0: i32, %arg1: i32) -> (i32, i32, i32) {
    %c0_i32 = arith.constant 0 : i32
    %c0_i32_0 = arith.constant 0 : i32
    %c0_i32_1 = arith.constant 0 : i32
    return %arg0, %c0_i32, %c0_i32_0 : i32, i32, i32
  }
  func.func @transform_1(%arg0: i32, %arg1: i32) -> (i32, i32) {
    %c0_i32 = arith.constant 0 : i32
    %c0_i32_0 = arith.constant 0 : i32
    %c0_i32_1 = arith.constant 0 : i32
    return %c0_i32, %c0_i32_0 : i32, i32
  }
  func.func @transform_2(%arg0: i32, %arg1: i32) -> (i32, i32) {
    %c0_i32 = arith.constant 0 : i32
    %c0_i32_0 = arith.constant 0 : i32
    %c0_i32_1 = arith.constant 0 : i32
    return %c0_i32, %c0_i32_0 : i32, i32
  }
  func.func @transform_3(%arg0: i32, %arg1: i32) -> (i32, i32, i32) {
    %c0_i32 = arith.constant 0 : i32
    %c0_i32_0 = arith.constant 0 : i32
    %c0_i32_1 = arith.constant 0 : i32
    %c0_i32_2 = arith.constant 0 : i32
    return %c0_i32, %c0_i32_0, %c0_i32_1 : i32, i32, i32
  }
  func.func @transform_4(%arg0: i32, %arg1: i32) -> (i32, i32) {
    %c0_i32 = arith.constant 0 : i32
    %c0_i32_0 = arith.constant 0 : i32
    %c0_i32_1 = arith.constant 0 : i32
    return %c0_i32, %c0_i32_0 : i32, i32
  }
  func.func @transform_5(%arg0: i32, %arg1: i32) -> (i32, i32, i32) {
    %c0_i32 = arith.constant 0 : i32
    %c0_i32_0 = arith.constant 0 : i32
    return %arg0, %arg1, %c0_i32 : i32, i32, i32
  }
}

</mosaic_0001>

<bundles_post_ra>
// kernel: tpu_custom_call.1
= control target key start
LH: loop header
LB: loop body
LE: loop exit
PB: predicated region body
PF: predicated region fallthrough
CT: control target
= control target key end

     0   :  { %10 = vsyncpa [#allocation4], 0  ;;  %s11954_s0 = inlined_call_operand.hbm [shape: f32[2,16,64], index: 0, kind: input, shape index: {}]   ;;  %s11955_s1 = inlined_call_operand.hbm [shape: f32[64,128], index: 1, kind: input, shape index: {}]   ;;  %s11956_s2 = inlined_call_operand.vmem [shape: f32[1,128], index: 2, kind: input, shape index: {}]   ;;  %s11957_s3 = inlined_call_operand.hbm [shape: f32[3,128,128], index: 3, kind: input, shape index: {}]   ;;  %s11958_s4 = inlined_call_operand.vmem [shape: f32[1,128], index: 4, kind: input, shape index: {}]   ;;  %s11959_s5 = inlined_call_operand.hbm [shape: f32[2,16,128], index: 5, kind: output, shape index: {}]  }
   0x1   :  { %12 = vsyncpa [#allocation4 + $0x1], 0 }
   0x2   :  { %13 = vsyncpa [#allocation7], 0 }
   0x3   :  { %14 = vsyncpa [#allocation5], 0 }
   0x4   :  { %16 = vsyncpa [#allocation5 + $0x1], 0  ;;  %s9273_s18 = smov 0   ;;  %s9275_s19 = smov 0  }
   0x5   :  { %s9277_s20 = smov 0   ;;  %s9279_s21 = smov 0  }
   0x6   :  { %s9281_s22 = smov 0   ;;  %s9283_s23 = smov 0  }
   0x7 LB: > { %s5640_s24 = sadd.s32 4294967295, %s9230_s23   ;;  %s5641_s25 = sadd.s32 4294967294, %s9230_s23   ;;  %s9230_s23 = sphi %s9283_s23, %s22_s23   ;;  %s9226_s22 = sphi %s9281_s22, %s12434_s22   ;;  %s9222_s21 = sphi %s9279_s21, %s12433_s21   ;;  %s9218_s20 = sphi %s9277_s20, %s12432_s20   ;;  %s9214_s19 = sphi %s9275_s19, %s12431_s19   ;;  %s9210_s18 = sphi %s9273_s18, %s12430_s18  }
   0x8   : > { %p54_p0 = scmp.ne.s32.totalorder %s9214_s19, %s9210_s18  ;;  %p9307_p1 = scmp.eq.s32.totalorder %s5640_s24, 0 }
   0x9   : > { %p9311_p2 = scmp.eq.s32.totalorder %s5640_s24, 1  ;;  %p170_p3 = scmp.eq.s32.totalorder %s5641_s25, 1 }
   0xa   : > { %s12148_s26 = scalar_select %p9307_p1, 1, 0 }
   0xb   : > { %p9317_p4 = por %p9307_p1, %p54_p0  ;;  %p5642_p5 = scmp.ge.s32.totalorder %s9230_s23, 1 }
   0xc   : > { %p9322_p6 = por %p170_p3, %p54_p0  ;;  %p177_p7 = scmp.lt.s32.totalorder %s9230_s23, 3 }
   0xd   : > { %s12150_s28 = scalar_select %p9317_p4, 1, 0 }
   0xe   : > { %s12151_s29 = scalar_select %p9322_p6, 1, 0 }
   0xf   : > { %p9327_p8 = pnand %p5642_p5, %p177_p7  ;;  %s9232_s6 = smov [#allocation6]  }
  0x10   : > { %s189_s7 = sshll.u32 %s9232_s6, 4  ;;  %s9233_s9 = smov [#allocation8]   ;;  %s9331_s7 = int_to_ptr.vmem [resolvable:$true] %s189_s7 }
  0x11   : > { %p8978_p9 = pneg %p9327_p8  ;;  %s205_s10 = sshll.u32 %s9233_s9, 4  ;;  %s9342_s10 = int_to_ptr.vmem [resolvable:$true] %s205_s10 }
  0x12   : > { %s9058_s13 = scalar_lea.hbm %s11955_s1, 1024 }
  0x13   : > { %p9338_p11 = pnand %p8978_p9, %p9307_p1  ;;  %p9059_p12 = scmp.ne.s32.totalorder %s11955_s1, %s9058_s13 }
  0x14   : > { %p9065_p5 = scmp.lt.u32.totalorder %s9058_s13, %s11955_s1 }
  0x15   : > { %p9060_p13 = pneg %p9338_p11 }
  0x17   : > { %p9061_p0 = pnand %p9060_p13, %p9059_p12 }
  0x19   : > { %p9062_p3 = pneg %p9061_p0 }
  0x1b   : > { %p9067_p7 = pnand %p9065_p5, %p9062_p3 }
  0x1d   : > { %9070 = shalt.err (!%p9067_p7)
}
  0x1e   : > { %s9071_s24 = scalar_lea.vmem %s9331_s7, 1024  ;;  %p9079_p1 = scmp.lt.s32.totalorder %s9331_s7, %s9331_s7 }
  0x1f   : > { %p9072_p9 = scmp.ne.s32.totalorder %s9331_s7, %s9071_s24  ;;  %p9080_p12 = scmp.lt.s32.totalorder %s9071_s24, %s9071_s24 }
  0x21   : > { %p9074_p10 = pnand %p9072_p9, %p9060_p13  ;;  %p9081_p0 = por %p9080_p12, %p9079_p1 }
  0x23   : > { %p9075_p6 = pneg %p9074_p10 }
  0x25   : > { %p9082_p4 = pnand %p9081_p0, %p9075_p6 }
  0x27   : > { %9085 = shalt.err (!%p9082_p4)
}
  0x28   : > { %s11963_s25 = smov 128   ;;  %s9235_s6 = smov 8  }
  0x29   : > { %8981 = dma.hbm_to_vmem [thread:$0]  (!%p9338_p11), %s11955_s1, 1024, %s9331_s7, [#allocation7], %s11963_s25, %s11963_s25, %s9235_s6  }
  0x2a   : > { %s9086_s14 = scalar_lea.hbm %s11957_s3, 6144 }
  0x2b   : > { %p9087_p1 = scmp.ne.s32.totalorder %s11957_s3, %s9086_s14  ;;  %p9093_p10 = scmp.lt.u32.totalorder %s9086_s14, %s11957_s3 }
  0x2d   : > { %p9089_p4 = pnand %p9087_p1, %p9060_p13 }
  0x2f   : > { %p9090_p6 = pneg %p9089_p4 }
  0x31   : > { %p9095_p3 = pnand %p9093_p10, %p9090_p6 }
  0x33   : > { %9098 = shalt.err (!%p9095_p3)
}
  0x34   : > { %s9099_s7 = scalar_lea.vmem %s9342_s10, 6144  ;;  %p9107_p12 = scmp.lt.s32.totalorder %s9342_s10, %s9342_s10 }
  0x35   : > { %p9100_p5 = scmp.ne.s32.totalorder %s9342_s10, %s9099_s7  ;;  %p9108_p0 = scmp.lt.s32.totalorder %s9099_s7, %s9099_s7 }
  0x37   : > { %p9102_p7 = pnand %p9100_p5, %p9060_p13  ;;  %p9109_p1 = por %p9108_p0, %p9107_p12 }
  0x39   : > { %p9103_p9 = pneg %p9102_p7 }
  0x3b   : > { %p9110_p4 = pnand %p9109_p1, %p9103_p9 }
  0x3d   : > { %9113 = shalt.err (!%p9110_p4)
}
  0x3e   : > { %8984 = dma.hbm_to_vmem [thread:$0]  (!%p9338_p11), %s11957_s3, 6144, %s9342_s10, [#allocation7], %s11963_s25, %s11963_s25, %s9235_s6  }
  0x3f   : > { %s34_s8 = sadd.s32 1, %s9226_s22  ;;  %s41_s12 = sadd.s32 1, %s9218_s20 }
  0x40   : > { %p36_p13 = scmp.ge.s32.totalorder %s34_s8, 2  ;;  %p48_p6 = scmp.ne.s32.totalorder %s9218_s20, %s9214_s19 }
  0x41   : > { %p49_p10 = scmp.eq.s32.totalorder %s9230_s23, 0  ;;  %p8995_p3 = scmp.lt.s32.totalorder %s9230_s23, 2 }
  0x42   : > { %s12436_s8 = smov (%p36_p13, %s34_s8), 0  ;;  %p9412_p7 = por %p9311_p2, %p48_p6 }
  0x43   : > { %p50_p5 = por %p49_p10, %p48_p6  ;;  %s38_s14 = ssub.s32 %s9226_s22, %s12436_s8 }
  0x44   : > { %s12154_s13 = scalar_select %p9412_p7, 1, 0 }
  0x45   : > { %s222_s15 = sand.u32 1, %s9218_s20   ;;  %p39_p9 = scmp.eq.s32.totalorder %s38_s14, 0 }
  0x46   : > { %s5646_s10 = sshll.u32 %s222_s15, 4  ;;  %s5664_s16 = sshll.u32 %s9226_s22, 8 }
  0x47   : > { %s9421_s17 = scalar_select %p39_p9, %s9218_s20, %s41_s12  }
  0x48   : > { %s9426_s9 = scalar_lea.hbm %s11954_s0, %s5664_s16  ;;  %s226_s27 = scalar_lea.vmem [#allocation3], %s5646_s10 }
  0x49   : > { %s233_s11 = sshll.u32 %s226_s27, 4  ;;  %p9430_p2 = pnand %p8995_p3, %p50_p5  ;;  %s9434_s11 = int_to_ptr.vmem [resolvable:$true] %s233_s11 }
  0x4a   : > { %s9436_s12 = scalar_lea.sflag [#allocation4], %s222_s15  ;;  %s9114_s14 = scalar_lea.hbm %s9426_s9, 256 }
  0x4b   : > { %p9115_p11 = scmp.ne.s32.totalorder %s9426_s9, %s9114_s14  ;;  %p9116_p12 = pneg %p9430_p2 }
  0x4c   : > { %s9119_s24 = scalar_lea.hbm %s11954_s0, 512  ;;  %p9120_p4 = scmp.lt.u32.totalorder %s9426_s9, %s11954_s0 }
  0x4d   : > { %p9117_p0 = pnand %p9116_p12, %p9115_p11  ;;  %p9121_p13 = scmp.lt.u32.totalorder %s9119_s24, %s9114_s14 }
  0x4e   : > { %p9123_p10 = scmp.lt.u32.totalorder %s9114_s14, %s9426_s9 }
  0x4f   : > { %p9118_p1 = pneg %p9117_p0  ;;  %p9122_p6 = por %p9121_p13, %p9120_p4 }
  0x51   : > { %p9124_p3 = por %p9123_p10, %p9122_p6 }
  0x53   : > { %p9125_p5 = pnand %p9124_p3, %p9118_p1 }
  0x55   : > { %9128 = shalt.err (!%p9125_p5)
}
  0x56   : > { %s9129_s15 = scalar_lea.vmem %s9434_s11, 256  ;;  %s9236_s10 = smov [#allocation3]  }
  0x57   : > { %p9130_p9 = scmp.ne.s32.totalorder %s9434_s11, %s9129_s15  ;;  %s9134_s16 = sshll.u32 %s9236_s10, 4  ;;  %s9135_s16 = int_to_ptr.vmem [resolvable:$false] %s9134_s16 }
  0x58   : > { %s9136_s7 = scalar_lea.vmem %s9135_s16, 512  ;;  %p9137_p7 = scmp.lt.s32.totalorder %s9434_s11, %s9135_s16 }
  0x59   : > { %p9132_p11 = pnand %p9130_p9, %p9116_p12  ;;  %p9138_p4 = scmp.lt.s32.totalorder %s9136_s7, %s9129_s15 }
  0x5b   : > { %p9133_p0 = pneg %p9132_p11  ;;  %p9139_p13 = por %p9138_p4, %p9137_p7 }
  0x5d   : > { %p9140_p6 = pnand %p9139_p13, %p9133_p0 }
  0x5f   : > { %9143 = shalt.err (!%p9140_p6)
}
  0x60   : > { %s12156_s14 = smov 128   ;;  %245 = sbr.rel (%p9327_p8) target bundleno = 1585 (0x631), region = 40 }
  0x61   : > { %8988 = dma.hbm_to_vmem [thread:$0]  (!%p9430_p2), %s9426_s9, 256, %s9434_s11, %s9436_s12, %s12156_s14, %s12156_s14, %s9235_s6  }
  0x67   : > { %s9470_s24 = sand.u32 1, %s9214_s19   ;;  %p12157_p7 = scmp.ne.s32.totalorder %s12150_s28, 0 }
  0x68   : > { %s5650_s27 = sshll.u32 %s9470_s24, 4  ;;  %s248_s15 = scalar_lea.sflag [#allocation4], %s9470_s24 }
  0x69   : > { %s251_s25 = scalar_lea.vmem [#allocation3], %s5650_s27 }
  0x6a   : > { %9197 = dma.done.wait (%p12157_p7), %s248_s15, 256  }
  0x6b   : > { %9199 = vsyncadd (%p12157_p7), %s248_s15, 4294967040  ;;  %p12158_p2 = scmp.ne.s32.totalorder %s12148_s26, 0 }
  0x6d   : > { %9201 = dma.done.wait (%p12158_p2), [#allocation7], 7168  }
  0x6e   : > { %9203 = vsyncadd (%p12158_p2), [#allocation7], 4294960128  ;;  %vm292_vm0 = vcmask 523264   ;;  %v11983_v0 = vmov 0.0   ;;  %v11981_v1 = vmov 0.0|0.0   ;;  %v300_v2 = vld [vmem:[#allocation6] sm:$0xff] }
  0x6f   : > { %293 = vst.msk [vmem:[#allocation2] sm:$0xff] %vm292_vm0, %v11983_v0  ;;  %294 = vst.msk [vmem:[#allocation2 + $0x8] sm:$0xff] %vm292_vm0, %v11983_v0  ;;  %7982 = vmatprep.subr.bf16.mxu1 %v11981_v1  ;;  %v301_v3 = vld [vmem:[#allocation6 + $0x8] sm:$0xff]  ;;  %v302_v4 = vld [vmem:[#allocation6 + $0x10] sm:$0xff]  ;;  %v327_v5 = vand.u32 4294901760, %v300_v2  ;;  %vm9239_vm1 = vmmov 0  }
  0x70   : > { %295 = vst.msk [vmem:[#allocation2 + $0x10] sm:$0xff] %vm292_vm0, %v11983_v0  ;;  %v330_v6 = vand.u32 4294901760, %v301_v3  ;;  %v303_v7 = vld [vmem:[#allocation6 + $0x18] sm:$0xff]  ;;  %v333_v8 = vand.u32 4294901760, %v302_v4  ;;  %v304_v9 = vld [vmem:[#allocation6 + $0x20] sm:$0xff]  ;;  %v305_v10 = vld [vmem:[#allocation6 + $0x28] sm:$0xff]  ;;  %6544 = vmatprep.mubr.msk.f32.mxu1 %vm9239_vm1, %v11983_v0 }
  0x71   : > { %v336_v11 = vand.u32 4294901760, %v303_v7  ;;  %v306_v12 = vld [vmem:[#allocation6 + $0x30] sm:$0xff]  ;;  %v307_v13 = vld [vmem:[#allocation6 + $0x38] sm:$0xff]  ;;  %v339_v16 = vand.u32 4294901760, %v304_v9  ;;  %v342_v17 = vand.u32 4294901760, %v305_v10  ;;  %v9494_v18 = vsub.f32 %v300_v2, %v327_v5  ;;  %v944_v55 = vld [vmem:[#allocation8 + $0x80] sm:$0xff] }
  0x72   : > { %v296_v14 = vld [vmem:[%s251_s25] sm:$0xff]  ;;  %v9491_v15 = vpack.c.bf16 %v330_v6, %v327_v5  ;;  %v297_v19 = vld [vmem:[%s251_s25 + $0x8] sm:$0xff]  ;;  %v345_v21 = vand.u32 4294901760, %v306_v12  ;;  %v9498_v22 = vsub.f32 %v301_v3, %v330_v6  ;;  %v9501_v23 = vsub.f32 %v302_v4, %v333_v8  ;;  %s10990_s9 = scalar_lea.vmem [#allocation9], %s5650_s27  ;;  %s5665_s10 = sshll.u32 %s9222_s21, 8 }
  0x73   : > { %298 = vst.msk [vmem:[#allocation2 + $0x1] sm:$0xff] %vm292_vm0, %v296_v14  ;;  %v9496_v20 = vpack.c.bf16 %v336_v11, %v333_v8  ;;  %299 = vst.msk [vmem:[#allocation2 + $0x9] sm:$0xff] %vm292_vm0, %v297_v19  ;;  %v348_v24 = vand.u32 4294901760, %v307_v13  ;;  %v422_v25 = vand.u32 4294901760, %v9494_v18  ;;  %v9505_v26 = vsub.f32 %v303_v7, %v336_v11  ;;  %v945_v56 = vld [vmem:[#allocation8 + $0x88] sm:$0xff]  ;;  %v946_v61 = vld [vmem:[#allocation8 + $0x90] sm:$0xff]  ;;  %s11902_s25 = scalar_lea.hbm %s11959_s5, %s5665_s10 }
  0x74   : > { %12159 = vst [vmem:[#allocation13_spill] sm:$0xff] %v9491_v15  ;;  %7887 = vmatprep.subr.bf16.mxu0 %v9491_v15  ;;  %v9507_v27 = vsub.f32 %v304_v9, %v339_v16  ;;  %v429_v28 = vand.u32 4294901760, %v9498_v22  ;;  %v436_v29 = vand.u32 4294901760, %v9501_v23  ;;  %v9512_v30 = vsub.f32 %v305_v10, %v342_v17  ;;  %v947_v62 = vld [vmem:[#allocation8 + $0x98] sm:$0xff]  ;;  %v948_v63 = vld [vmem:[#allocation8 + $0xa0] sm:$0xff]  ;;  %s5532_s16 = sshll.u32 %s10990_s9, 4  ;;  %s11904_s16 = int_to_ptr.vmem [resolvable:$true] %s5532_s16 }
  0x75   : > { %12160 = vst [vmem:[#allocation14_spill] sm:$0xff] %v9496_v20  ;;  %7889 = vmatpush3.bf16.msra.mxu0 %v9491_v15  ;;  %v9514_v31 = vsub.f32 %v306_v12, %v345_v21  ;;  %v9517_v32 = vpack.c.bf16 %v342_v17, %v339_v16  ;;  %v423_v33 = vsub.f32 %v9494_v18, %v422_v25  ;;  %v443_v34 = vand.u32 4294901760, %v9505_v26  ;;  %v950_v16 = vld [vmem:[#allocation8 + $0xb0] sm:$0xff]  ;;  %s5517_s26 = scalar_lea.sflag [#allocation5], %s9470_s24  ;;  %s9144_s21 = scalar_lea.vmem %s11904_s16, 256 }
  0x76   : > { %7891 = vmatprep.subr.bf16.mxu0 %v9496_v20  ;;  %v430_v35 = vsub.f32 %v9498_v22, %v429_v28  ;;  %v450_v36 = vand.u32 4294901760, %v9507_v27  ;;  %v9527_v37 = vsub.f32 %v307_v13, %v348_v24  ;;  %v457_v38 = vand.u32 4294901760, %v9512_v30  ;;  %v949_v13 = vld [vmem:[#allocation8 + $0xa8] sm:$0xff]  ;;  %p9145_p8 = scmp.ne.s32.totalorder %s11904_s16, %s9144_s21  ;;  %p12427_p12 = scmp.ne.s32.totalorder %s12154_s13, 0 }
  0x77   : > { %12161 = vst [vmem:[#allocation15_spill] sm:$0xff] %v9517_v32  ;;  %v9531_v39 = vpack.c.bf16 %v348_v24, %v345_v21  ;;  %v437_v41 = vsub.f32 %v9501_v23, %v436_v29  ;;  %v464_v42 = vand.u32 4294901760, %v9514_v31  ;;  %v424_v44 = vand.u32 4294901760, %v423_v33  ;;  %v951_v33 = vld [vmem:[#allocation8 + $0xb8] sm:$0xff]  ;;  %s9240_s28 = smov [#allocation9]  }
  0x78   : > { %v431_v45 = vand.u32 4294901760, %v430_v35  ;;  %v444_v47 = vsub.f32 %v9505_v26, %v443_v34  ;;  %v451_v50 = vsub.f32 %v9507_v27, %v450_v36  ;;  %v471_v51 = vand.u32 4294901760, %v9527_v37  ;;  %p9146_p1 = pnand %p9145_p8, %p12427_p12  ;;  %s9148_s30 = sshll.u32 %s9240_s28, 4  ;;  %s9149_s30 = int_to_ptr.vmem [resolvable:$false] %s9148_s30 }
  0x79   : > { %7893 = vmatpush3.bf16.msra.mxu0 %v9496_v20  ;;  %12162 = vst [vmem:[#allocation16_spill] sm:$0xff] %v9531_v39  ;;  %v458_v53 = vsub.f32 %v9512_v30, %v457_v38  ;;  %v438_v59 = vand.u32 4294901760, %v437_v41  ;;  %v465_v60 = vsub.f32 %v9514_v31, %v464_v42  ;;  %v968_v8 = vand.u32 4294901760, %v944_v55  ;;  %s9150_s6 = scalar_lea.vmem %s9149_s30, 512  ;;  %p9151_p3 = scmp.lt.s32.totalorder %s11904_s16, %s9149_s30 }
  0x7a   : > { %v311_v40 = vld [vmem:[#allocation2] sm:$0xff]  ;;  %7895 = vmatprep.subr.bf16.mxu0 %v9517_v32  ;;  %v312_v46 = vld [vmem:[#allocation2 + $0x8] sm:$0xff]  ;;  %v9559_v57 = vpack.c.bf16 %v431_v45, %v424_v44  ;;  %v445_v3 = vand.u32 4294901760, %v444_v47  ;;  %v452_v4 = vand.u32 4294901760, %v451_v50  ;;  %v472_v5 = vsub.f32 %v9527_v37, %v471_v51  ;;  %p9147_p10 = pneg %p9146_p1  ;;  %p9152_p5 = scmp.lt.s32.totalorder %s9150_s6, %s9144_s21 }
  0x7b   : > { %v321_v43 = vsel %vm292_vm0, %v311_v40, 0  ;;  %v324_v49 = vsel %vm292_vm0, %v312_v46, 0  ;;  %v459_v7 = vand.u32 4294901760, %v458_v53  ;;  %v971_v9 = vand.u32 4294901760, %v945_v56 }
  0x7c   : > { %v9542_v48 = vand.u32 4294901760, %v321_v43  ;;  %v9549_v52 = vand.u32 4294901760, %v324_v49  ;;  %12163 = vst [vmem:[#allocation17_spill] sm:$0xff] %v9559_v57  ;;  %v974_v11 = vand.u32 4294901760, %v946_v61  ;;  %v977_v12 = vand.u32 4294901760, %v947_v62  ;;  %p9153_p9 = por %p9152_p5, %p9151_p3 }
  0x7d   : > { %7897 = vmatpush3.bf16.msra.mxu0 %v9517_v32  ;;  %v980_v14 = vand.u32 4294901760, %v948_v63  ;;  %v9580_v19 = vpack.c.bf16 %v971_v9, %v968_v8  ;;  %v9582_v21 = vsub.f32 %v944_v55, %v968_v8  ;;  %v9584_v24 = vsub.f32 %v945_v56, %v971_v9 }
  0x7e   : > { %v9556_v54 = vsub.f32 %v321_v43, %v9542_v48  ;;  %7899 = vmatprep.subr.bf16.mxu0 %v9531_v39  ;;  %v9562_v58 = vsub.f32 %v324_v49, %v9549_v52  ;;  %v9586_v40 = vpack.c.bf16 %v445_v3, %v438_v59  ;;  %v9588_v41 = vsub.f32 %v946_v61, %v974_v11  ;;  %p9154_p11 = pnand %p9153_p9, %p9147_p10 }
  0x7f   : > { %v9590_v43 = vsub.f32 %v947_v62, %v977_v12  ;;  %7984 = vmatpush3.bf16.msra.mxu1 %v9580_v19  ;;  %v983_v45 = vand.u32 4294901760, %v949_v13  ;;  %v9593_v46 = vsub.f32 %v948_v63, %v980_v14  ;;  %v986_v47 = vand.u32 4294901760, %v950_v16 }
  0x80   : > { %v401_v2 = vand.u32 4294901760, %v9556_v54  ;;  %v411_v6 = vand.u32 4294901760, %v9562_v58  ;;  %12164 = vst [vmem:[#allocation18_spill] sm:$0xff] %v9586_v40  ;;  %7985 = vmatprep.subr.bf16.mxu1 %v11981_v1  ;;  %v989_v49 = vand.u32 4294901760, %v951_v33  ;;  %v9596_v50 = vpack.c.bf16 %v977_v12, %v974_v11 }
  0x81   : > { %7901 = vmatpush3.bf16.msra.mxu0 %v9531_v39  ;;  %v9598_v53 = vsub.f32 %v949_v13, %v983_v45  ;;  %v9600_v55 = vsub.f32 %v950_v16, %v986_v47  ;;  %v9607_v59 = vpack.c.bf16 %v459_v7, %v452_v4  ;;  %v466_v61 = vand.u32 4294901760, %v465_v60 }
  0x82   : > { %v402_v10 = vsub.f32 %v9556_v54, %v401_v2  ;;  %7903 = vmatprep.subr.bf16.mxu0 %v9559_v57  ;;  %v412_v17 = vsub.f32 %v9562_v58, %v411_v6  ;;  %v9604_v56 = vsub.f32 %v951_v33, %v989_v49  ;;  %v473_v62 = vand.u32 4294901760, %v472_v5 }
  0x83   : > { %12165 = vst [vmem:[#allocation19_spill] sm:$0xff] %v9607_v59  ;;  %7987 = vmatpush3.bf16.msra.mxu1 %v9596_v50  ;;  %v9611_v63 = vpack.c.bf16 %v983_v45, %v980_v14  ;;  %v9619_v4 = vpack.c.bf16 %v989_v49, %v986_v47  ;;  %v9625_v60 = vpack.c.bf16 %v9498_v22, %v9494_v18  ;;  %v11979_v45 = vand.u32 4294901760, %v9584_v24 }
  0x84   : > { %v403_v35 = vand.u32 4294901760, %v402_v10  ;;  %v413_v44 = vand.u32 4294901760, %v412_v17  ;;  %7988 = vmatprep.subr.bf16.mxu1 %v11981_v1  ;;  %v9615_v3 = vpack.c.bf16 %v473_v62, %v466_v61  ;;  %v9633_v5 = vpack.c.bf16 %v9505_v26, %v9501_v23  ;;  %v952_v23 = vld [vmem:[#allocation8 + $0xc0] sm:$0xff] }
  0x85   : > { %12167 = vst [vmem:[#allocation21_spill] sm:$0xff] %v9625_v60  ;;  %v9641_v7 = vpack.c.bf16 %v9512_v30, %v9507_v27  ;;  %v9647_v8 = vpack.c.bf16 %v9527_v37, %v9514_v31  ;;  %v9666_v9 = vpack.c.bf16 %v429_v28, %v422_v25  ;;  %v9685_v18 = vpack.c.bf16 %v457_v38, %v450_v36  ;;  %v953_v25 = vld [vmem:[#allocation8 + $0xc8] sm:$0xff]  ;;  %v955_v30 = vld [vmem:[#allocation8 + $0xd8] sm:$0xff]  ;;  %v956_v37 = vld [vmem:[#allocation8 + $0xe0] sm:$0xff] }
  0x86   : > { %6414 = vmatprep.mubr.f32.mxu0 %v403_v35  ;;  %12166 = vst [vmem:[#allocation20_spill] sm:$0xff] %v9615_v3  ;;  %12168 = vst [vmem:[#allocation22_spill] sm:$0xff] %v9633_v5  ;;  %v9693_v22 = vpack.c.bf16 %v471_v51, %v464_v42  ;;  %v992_v26 = vand.u32 4294901760, %v952_v23  ;;  %v995_v27 = vand.u32 4294901760, %v953_v25  ;;  %v957_v38 = vld [vmem:[#allocation8 + $0xe8] sm:$0xff]  ;;  %v1004_v42 = vand.u32 4294901760, %v956_v37 }
  0x87   : > { %6415 = vmatmul.mubr.f32.vlgmr.msra.gmra.mrb[0].mxu0 %v413_v44  ;;  %7990 = vmatpush3.bf16.msra.mxu1 %v9611_v63  ;;  %12169 = vst [vmem:[#allocation23_spill] sm:$0xff] %v9641_v7  ;;  %12170 = vst [vmem:[#allocation24_spill] sm:$0xff] %v9647_v8  ;;  %v11980_v44 = vand.u32 4294901760, %v9582_v21  ;;  %v1069_v49 = vsub.f32 %v9584_v24, %v11979_v45  ;;  %vm962_vm3 = vcmask 1046528   ;;  %vm2266_vm4 = vcmask 1045504  }
  0x88   : > { %7905 = vmatpush3.bf16.msra.mxu0 %v9559_v57  ;;  %6433 = vmatprep.mubr.f32.mxu0 %v9542_v48  ;;  %12171 = vst [vmem:[#allocation25_spill] sm:$0xff] %v9666_v9  ;;  %12173 = vst [vmem:[#allocation27_spill] sm:$0xff] %v9685_v18  ;;  %v9718_v28 = vpack.c.bf16 %v995_v27, %v992_v26  ;;  %v9728_v51 = vsub.f32 %v952_v23, %v992_v26  ;;  %v11978_v23 = vand.u32 4294901760, %v9588_v41 }
  0x89   : > { %7907 = vmatprep.subr.bf16.mxu0 %v9586_v40  ;;  %7991 = vmatprep.subr.bf16.mxu1 %v11981_v1  ;;  %12174 = vst [vmem:[#allocation28_spill] sm:$0xff] %v9693_v22  ;;  %v9744_v14 = vsub.f32 %v956_v37, %v1004_v42  ;;  %v1062_v47 = vsub.f32 %v9582_v21, %v11980_v44  ;;  %v1070_v62 = vand.u32 4294901760, %v1069_v49  ;;  %v11970_v37 = vand.u32 4294901760, %v9598_v53 }
  0x8b   : > { %7993 = vmatpush3.bf16.msra.mxu1 %v9619_v4  ;;  %v1063_v61 = vand.u32 4294901760, %v1062_v47 }
  0x8c   : > { %7909 = vmatpush3.bf16.msra.mxu0 %v9586_v40  ;;  %7994 = vmatprep.subr.bf16.mxu1 %v11981_v1 }
  0x8d   : > { %7911 = vmatprep.subr.bf16.mxu0 %v9607_v59  ;;  %v9772_v26 = vpack.c.bf16 %v1070_v62, %v1063_v61 }
  0x8f   : > { %7996 = vmatpush3.bf16.msra.mxu1 %v9718_v28 }
  0x90   : > { %7913 = vmatpush3.bf16.msra.mxu0 %v9607_v59  ;;  %7997 = vmatprep.subr.bf16.mxu1 %v11981_v1 }
  0x91   : > { %7915 = vmatprep.subr.bf16.mxu0 %v9615_v3 }
  0x94   : > { %7917 = vmatpush3.bf16.msra.mxu0 %v9615_v3  ;;  %v9997_v3 = vld [vmem:[#allocation8 + $0x58] sm:$0xff] }
  0x95   : > { %7919 = vmatprep.subr.bf16.mxu0 %v9625_v60 }
  0x97   : > { %6434 = vmatmul.mubr.f32.vlgmr.msra.gmra.mrb[0].mxu0 %v9549_v52 }
  0x98   : > { %7921 = vmatpush3.bf16.msra.mxu0 %v9625_v60  ;;  %6452 = vmatprep.mubr.f32.mxu0 %v9556_v54  ;;  %v9674_v54 = vpack.c.bf16 %v443_v34, %v436_v29  ;;  %v954_v29 = vld [vmem:[#allocation8 + $0xd0] sm:$0xff]  ;;  %v1001_v34 = vand.u32 4294901760, %v955_v30 }
  0x99   : > { %7923 = vmatprep.subr.bf16.mxu0 %v9633_v5  ;;  %v998_v31 = vand.u32 4294901760, %v954_v29 }
  0x9a   : > { %12172 = vst [vmem:[#allocation26_spill] sm:$0xff] %v9674_v54  ;;  %v9742_v13 = vsub.f32 %v955_v30, %v1001_v34 }
  0x9b   : > { %v9724_v36 = vpack.c.bf16 %v1001_v34, %v998_v31  ;;  %v9740_v12 = vsub.f32 %v954_v29, %v998_v31  ;;  %v11973_v34 = vand.u32 4294901760, %v9593_v46 }
  0x9c   : > { %7925 = vmatpush3.bf16.msra.mxu0 %v9633_v5 }
  0x9d   : > { %7927 = vmatprep.subr.bf16.mxu0 %v9641_v7  ;;  %7999 = vmatpush3.bf16.msra.mxu1 %v9724_v36 }
  0x9e   : > { %8000 = vmatprep.subr.bf16.mxu1 %v11981_v1 }
  0xa0   : > { %7929 = vmatpush3.bf16.msra.mxu0 %v9641_v7 }
  0xa1   : > { %7931 = vmatprep.subr.bf16.mxu0 %v9647_v8 }
  0xa4   : > { %7933 = vmatpush3.bf16.msra.mxu0 %v9647_v8 }
  0xa5   : > { %7935 = vmatprep.subr.bf16.mxu0 %v9491_v15 }
  0xa7   : > { %6453 = vmatmul.mubr.f32.vlgmr.msra.gmra.mrb[0].mxu0 %v9562_v58 }
  0xa8   : > { %7937 = vmatpush3.bf16.msra.mxu0 %v9491_v15  ;;  %6471 = vmatprep.mubr.f32.mxu0 %v401_v2  ;;  %v958_v2 = vld [vmem:[#allocation8 + $0xf0] sm:$0xff] }
  0xa9   : > { %7939 = vmatprep.subr.bf16.mxu0 %v9496_v20  ;;  %v1010_v10 = vand.u32 4294901760, %v958_v2 }
  0xab   : > { %v9750_v33 = vsub.f32 %v958_v2, %v1010_v10 }
  0xac   : > { %7941 = vmatpush3.bf16.msra.mxu0 %v9496_v20 }
  0xad   : > { %7943 = vmatprep.subr.bf16.mxu0 %v9517_v32 }
  0xb0   : > { %7945 = vmatpush3.bf16.msra.mxu0 %v9517_v32 }
  0xb1   : > { %7947 = vmatprep.subr.bf16.mxu0 %v9531_v39 }
  0xb4   : > { %7949 = vmatpush3.bf16.msra.mxu0 %v9531_v39 }
  0xb5   : > { %7951 = vmatprep.subr.bf16.mxu0 %v9666_v9 }
  0xb7   : > { %6472 = vmatmul.mubr.f32.vlgmr.msra.gmra.mrb[0].mxu0 %v411_v6  ;;  %v959_v6 = vld [vmem:[#allocation8 + $0xf8] sm:$0xff] }
  0xb8   : > { %7953 = vmatpush3.bf16.msra.mxu0 %v9666_v9  ;;  %6490 = vmatprep.mubr.f32.mxu0 %v9542_v48  ;;  %v1013_v11 = vand.u32 4294901760, %v959_v6  ;;  %v9967_v9 = vld [vmem:[#allocation8 + $0x40] sm:$0xff] }
  0xb9   : > { %7955 = vmatprep.subr.bf16.mxu0 %v9674_v54 }
  0xba   : > { %v9748_v17 = vpack.c.bf16 %v1013_v11, %v1010_v10  ;;  %v9752_v35 = vsub.f32 %v959_v6, %v1013_v11  ;;  %v11967_v10 = vand.u32 4294901760, %v9600_v55  ;;  %v11965_v11 = vand.u32 4294901760, %v9604_v56 }
  0xbc   : > { %7957 = vmatpush3.bf16.msra.mxu0 %v9674_v54  ;;  %v1104_v49 = vsub.f32 %v9600_v55, %v11967_v10  ;;  %v1111_v61 = vsub.f32 %v9604_v56, %v11965_v11  ;;  %v11969_v11 = vand.u32 4294901760, %v9740_v12  ;;  %v12014_v54 = vand.u32 4294901760, %v9967_v9 }
  0xbd   : > { %7959 = vmatprep.subr.bf16.mxu0 %v9685_v18 }
  0xbe   : > { %v1105_v62 = vand.u32 4294901760, %v1104_v49  ;;  %v11971_v49 = vand.u32 4294901760, %v9742_v13  ;;  %v10012_v8 = vsub.f32 %v9967_v9, %v12014_v54  ;;  %v10025_v54 = vld [vmem:[#allocation8 + $0x60] sm:$0xff] }
  0xc0   : > { %7961 = vmatpush3.bf16.msra.mxu0 %v9685_v18  ;;  %12189 = vst [vmem:[#allocation31_spill] sm:$0xff] %v10012_v8 }
  0xc1   : > { %7963 = vmatprep.subr.bf16.mxu0 %v9693_v22 }
  0xc4   : > { %7965 = vmatpush3.bf16.msra.mxu0 %v9693_v22 }
  0xc5   : > { %7967 = vmatprep.subr.bf16.mxu0 %v9491_v15 }
  0xc7   : > { %6491 = vmatmul.mubr.f32.vlgmr.msra.gmra.mrb[0].mxu0 %v9549_v52 }
  0xc8   : > { %7969 = vmatpush3.bf16.msra.mxu0 %v9491_v15  ;;  %6509 = vmatprep.mubr.f32.mxu0 %v9542_v48  ;;  %v1007_v48 = vand.u32 4294901760, %v957_v38 }
  0xc9   : > { %7971 = vmatprep.subr.bf16.mxu0 %v9496_v20 }
  0xca   : > { %v9734_v58 = vpack.c.bf16 %v1007_v48, %v1004_v42  ;;  %v9746_v16 = vsub.f32 %v957_v38, %v1007_v48  ;;  %v1090_v42 = vsub.f32 %v9593_v46, %v11973_v34  ;;  %v1097_v48 = vsub.f32 %v9598_v53, %v11970_v37 }
  0xcc   : > { %7973 = vmatpush3.bf16.msra.mxu0 %v9496_v20  ;;  %8002 = vmatpush3.bf16.msra.mxu1 %v9734_v58  ;;  %v1091_v2 = vand.u32 4294901760, %v1090_v42  ;;  %v1098_v6 = vand.u32 4294901760, %v1097_v48 }
  0xcd   : > { %7975 = vmatprep.subr.bf16.mxu0 %v9517_v32  ;;  %8003 = vmatprep.subr.bf16.mxu1 %v11981_v1 }
  0xce   : > { %v9792_v47 = vpack.c.bf16 %v1098_v6, %v1091_v2 }
  0xd0   : > { %7977 = vmatpush3.bf16.msra.mxu0 %v9517_v32  ;;  %8005 = vmatpush3.bf16.msra.mxu1 %v9748_v17 }
  0xd1   : > { %7979 = vmatprep.subr.bf16.mxu0 %v9531_v39  ;;  %8006 = vmatprep.subr.bf16.mxu1 %v11981_v1 }
  0xd4   : > { %7981 = vmatpush3.bf16.msra.mxu0 %v9531_v39  ;;  %v10027_v39 = vld [vmem:[#allocation8 + $0x68] sm:$0xff] }
  0xd5   : > { %8054 = vmatprep.subr.bf16.mxu0 %v11981_v1 }
  0xd7   : > { %6510 = vmatmul.mubr.f32.vlgmr.msra.gmra.mrb[0].mxu0 %v9549_v52  ;;  %v9730_v52 = vsub.f32 %v953_v25, %v995_v27  ;;  %v11974_v25 = vand.u32 4294901760, %v9590_v43  ;;  %v1076_v27 = vsub.f32 %v9588_v41, %v11978_v23 }
  0xd8   : > { %8056 = vmatpush3.bf16.msra.mxu0 %v9580_v19  ;;  %6649 = vmatprep.mubr.msk.f32.mxu0 %vm9239_vm1, %v11983_v0 }
  0xd9   : > { %8057 = vmatprep.subr.bf16.mxu0 %v11981_v1  ;;  %v1083_v29 = vsub.f32 %v9590_v43, %v11974_v25  ;;  %v1077_v30 = vand.u32 4294901760, %v1076_v27  ;;  %v1112_v27 = vand.u32 4294901760, %v1111_v61 }
  0xdb   : > { %v1084_v31 = vand.u32 4294901760, %v1083_v29  ;;  %v11966_v29 = vand.u32 4294901760, %v9728_v51 }
  0xdc   : > { %8059 = vmatpush3.bf16.msra.mxu0 %v9596_v50 }
  0xdd   : > { %8060 = vmatprep.subr.bf16.mxu0 %v11981_v1  ;;  %v9782_v38 = vpack.c.bf16 %v1084_v31, %v1077_v30  ;;  %v11968_v30 = vand.u32 4294901760, %v9730_v52  ;;  %v9802_v31 = vpack.c.bf16 %v1112_v27, %v1105_v62  ;;  %v1118_v42 = vsub.f32 %v9728_v51, %v11966_v29 }
  0xde   : > { %v1132_v62 = vsub.f32 %v9740_v12, %v11969_v11  ;;  %v1139_v27 = vsub.f32 %v9742_v13, %v11971_v49  ;;  %v11975_v49 = vand.u32 4294901760, %v9750_v33 }
  0xdf   : > { %v1125_v48 = vsub.f32 %v9730_v52, %v11968_v30  ;;  %v1119_v2 = vand.u32 4294901760, %v1118_v42  ;;  %v11972_v30 = vand.u32 4294901760, %v9744_v14  ;;  %v11977_v42 = vand.u32 4294901760, %v9746_v16 }
  0xe0   : > { %8062 = vmatpush3.bf16.msra.mxu0 %v9611_v63  ;;  %v1133_v29 = vand.u32 4294901760, %v1132_v62  ;;  %v1140_v10 = vand.u32 4294901760, %v1139_v27  ;;  %v11976_v62 = vand.u32 4294901760, %v9752_v35 }
  0xe1   : > { %8063 = vmatprep.subr.bf16.mxu0 %v11981_v1  ;;  %v1126_v6 = vand.u32 4294901760, %v1125_v48 }
  0xe2   : > { %v9822_v48 = vpack.c.bf16 %v1140_v10, %v1133_v29  ;;  %v1160_v10 = vsub.f32 %v9750_v33, %v11975_v49  ;;  %v1167_v29 = vsub.f32 %v9752_v35, %v11976_v62 }
  0xe3   : > { %v9812_v61 = vpack.c.bf16 %v1126_v6, %v1119_v2  ;;  %v1146_v2 = vsub.f32 %v9744_v14, %v11972_v30  ;;  %v1153_v6 = vsub.f32 %v9746_v16, %v11977_v42  ;;  %v5654_v42 = vld [vmem:[%s11956_s2] ss:$0 sm:$0xff] }
  0xe4   : > { %8065 = vmatpush3.bf16.msra.mxu0 %v9619_v4  ;;  %v1161_v30 = vand.u32 4294901760, %v1160_v10  ;;  %v1168_v34 = vand.u32 4294901760, %v1167_v29  ;;  %v908_v29 = vlaneseq }
  0xe5   : > { %8066 = vmatprep.subr.bf16.mxu0 %v11981_v1  ;;  %v1147_v11 = vand.u32 4294901760, %v1146_v2  ;;  %v1154_v37 = vand.u32 4294901760, %v1153_v6 }
  0xe6   : > { %v9840_v25 = vpack.c.bf16 %v1168_v34, %v1161_v30  ;;  %v9858_v62 = vshrl.u32 %v908_v29, 7 }
  0xe7   : > { %v9832_v27 = vpack.c.bf16 %v1154_v37, %v1147_v11 }
  0xe8   : > { %8068 = vmatpush3.bf16.msra.mxu0 %v9718_v28  ;;  %12175 = vst [vmem:[#allocation29_spill] sm:$0xff] %v9858_v62  ;;  %v913_v23 = vadd.s32 4294967295, %v9858_v62 }
  0xe9   : > { %8069 = vmatprep.subr.bf16.mxu0 %v11981_v1 }
  0xea   : > { %vm915_vm2 = vcmp.ge.s32.totalorder %v913_v23, 0 }
  0xec   : > { %8071 = vmatpush3.bf16.msra.mxu0 %v9724_v36 }
  0xed   : > { %8072 = vmatprep.subr.bf16.mxu0 %v11981_v1 }
  0xf0   : > { %8074 = vmatpush3.bf16.msra.mxu0 %v9734_v58 }
  0xf1   : > { %8075 = vmatprep.subr.bf16.mxu0 %v11981_v1 }
  0xf4   : > { %8077 = vmatpush3.bf16.msra.mxu0 %v9748_v17 }
  0xf5   : > { %8102 = vmatprep.subr.bf16.mxu0 %v11981_v1 }
 0x1aa   : > { %v6511_v45 = vpop.f32.mrb[0].mxu0 }
 0x1ab   : > { %v8942_v44 = vadd.f32 %v6511_v45, %v5654_v42  ;;  %v896_v49 = vpop.f32.mrb[1].mxu0 }
 0x1ac   : > { %v8943_v11 = vadd.f32 %v5654_v42, %v896_v49  ;;  %v12177_v42 = vmov 0.0  }
 0x1ad   : > { %v907_v10 = vmax.f32 %v8942_v44, 0.0 }
 0x1ae   : > { %v906_v37 = vmax.f32 %v8943_v11, 0.0 }
 0x1af   : > { %v964_v30 = vrot.slane %v907_v10, 1  ;;  %v2268_v2 = vrot.slane %v907_v10, 2  ;;  %v9903_v10 = vld [vmem:[#allocation8 + $0x20] sm:$0xff] }
 0x1b0   : > { %v9864_v34 = vsel %vm915_vm2, %v906_v37, 0.0  ;;  %v12178_v37 = vmov 0.0|0.0  }
 0x1b1   : > { %v963_v29 = vrot.slane %v9864_v34, 1  ;;  %v2267_v6 = vrot.slane %v9864_v34, 2 }
 0x1b3   : > { %v965_v1 = vsel %vm962_vm3, %v963_v29, %v964_v30  ;;  %v9872_v45 = vsel %vm2266_vm4, %v2267_v6, %v2268_v2  ;;  %v9889_v2 = vld [vmem:[#allocation8 + $0x8] sm:$0xff]  ;;  %v9901_v6 = vld [vmem:[#allocation8 + $0x18] sm:$0xff] }
 0x1b4   : > { %v9869_v0 = vand.u32 4294901760, %v965_v1  ;;  %12176 = vst [vmem:[#allocation30_spill] sm:$0xff] %v9872_v45  ;;  %v9905_v30 = vld [vmem:[#allocation8 + $0x28] sm:$0xff] }
 0x1b6   : > { %v9875_v44 = vsub.f32 %v965_v1, %v9869_v0  ;;  %v9887_v1 = vld [vmem:[#allocation8] sm:$0xff] }
 0x1b8   : > { %v1050_v23 = vand.u32 4294901760, %v9875_v44 }
 0x1ba   : > { %6650 = vmatmul.mubr.f32.vlgmr.msra.gmra.mrb[2].mxu0 %v1050_v23  ;;  %v1051_v49 = vsub.f32 %v9875_v44, %v1050_v23 }
 0x1bb   : > { %8104 = vmatpush3.bf16.msra.mxu0 %v9580_v19  ;;  %6719 = vmatprep.mubr.msk.f32.mxu0 %vm9239_vm1, %v12177_v42  ;;  %v11986_v19 = vand.u32 4294901760, %v9887_v1 }
 0x1bc   : > { %8105 = vmatprep.subr.bf16.mxu0 %v12178_v37  ;;  %v1052_v11 = vand.u32 4294901760, %v1051_v49  ;;  %v9925_v49 = vld [vmem:[#allocation8 + $0x30] sm:$0xff] }
 0x1be   : > { %6545 = vmatmul.mubr.f32.vlgmr.msra.gmra.mrb[0].mxu1 %v1052_v11  ;;  %v9927_v11 = vld [vmem:[#allocation8 + $0x38] sm:$0xff] }
 0x1bf   : > { %8008 = vmatpush3.bf16.msra.mxu1 %v9772_v26  ;;  %8107 = vmatpush3.bf16.msra.mxu0 %v9596_v50  ;;  %v11985_v26 = vand.u32 4294901760, %v9889_v2  ;;  %v9899_v50 = vld [vmem:[#allocation8 + $0x10] sm:$0xff]  ;;  %v12005_v62 = vand.u32 4294901760, %v9927_v11 }
 0x1c0   : > { %8009 = vmatprep.subr.bf16.mxu1 %v12178_v37  ;;  %8108 = vmatprep.subr.bf16.mxu0 %v12178_v37  ;;  %v11987_v29 = vand.u32 4294901760, %v9899_v50 }
 0x1c1   : > { %6579 = vmatprep.mubr.msk.f32.mxu1 %vm9239_vm1, %v12177_v42 }
 0x1c2   : > { %v9936_v23 = vsub.f32 %v9899_v50, %v11987_v29  ;;  %v9969_v29 = vld [vmem:[#allocation8 + $0x48] sm:$0xff] }
 0x1c3   : > { %8011 = vmatpush3.bf16.msra.mxu1 %v9782_v38  ;;  %8110 = vmatpush3.bf16.msra.mxu0 %v9611_v63  ;;  %v9912_v63 = vsub.f32 %v9887_v1, %v11986_v19  ;;  %v9917_v38 = vsub.f32 %v9889_v2, %v11985_v26  ;;  %v12181_v19 = vand.u32 4294901760, %v9905_v30  ;;  %v12190_v59 = vand.u32 4294901760, %v9969_v29 }
 0x1c4   : > { %8012 = vmatprep.subr.bf16.mxu1 %v12178_v37  ;;  %8111 = vmatprep.subr.bf16.mxu0 %v12178_v37  ;;  %v12185_v7 = vand.u32 4294901760, %v9936_v23 }
 0x1c5   : > { %v9953_v26 = vsub.f32 %v9905_v30, %v12181_v19  ;;  %v9983_v19 = vsub.f32 %v9927_v11, %v12005_v62  ;;  %v9995_v62 = vld [vmem:[#allocation8 + $0x50] sm:$0xff]  ;;  %v10017_v40 = vsub.f32 %v9969_v29, %v12190_v59 }
 0x1c7   : > { %8014 = vmatpush3.bf16.msra.mxu1 %v9792_v47  ;;  %8113 = vmatpush3.bf16.msra.mxu0 %v9619_v4  ;;  %v12179_v4 = vand.u32 4294901760, %v9901_v6  ;;  %12191 = vst [vmem:[#allocation32_spill] sm:$0xff] %v10017_v40 }
 0x1c8   : > { %8015 = vmatprep.subr.bf16.mxu1 %v12178_v37  ;;  %8114 = vmatprep.subr.bf16.mxu0 %v12178_v37 }
 0x1c9   : > { %v9941_v47 = vsub.f32 %v9901_v6, %v12179_v4  ;;  %v12182_v4 = vand.u32 4294901760, %v9912_v63 }
 0x1cb   : > { %8017 = vmatpush3.bf16.msra.mxu1 %v9802_v31  ;;  %8116 = vmatpush3.bf16.msra.mxu0 %v9718_v28  ;;  %v12180_v28 = vand.u32 4294901760, %v9903_v10  ;;  %v1703_v22 = vsub.f32 %v9912_v63, %v12182_v4  ;;  %v12184_v4 = vand.u32 4294901760, %v9925_v49  ;;  %v12186_v5 = vand.u32 4294901760, %v9941_v47 }
 0x1cc   : > { %8018 = vmatprep.subr.bf16.mxu1 %v12178_v37  ;;  %8117 = vmatprep.subr.bf16.mxu0 %v12178_v37 }
 0x1cd   : > { %v9948_v31 = vsub.f32 %v9903_v10, %v12180_v28  ;;  %v12183_v28 = vand.u32 4294901760, %v9917_v38  ;;  %v1724_v60 = vsub.f32 %v9941_v47, %v12186_v5 }
 0x1cf   : > { %8020 = vmatpush3.bf16.msra.mxu1 %v9812_v61  ;;  %8119 = vmatpush3.bf16.msra.mxu0 %v9724_v36  ;;  %v1710_v18 = vsub.f32 %v9917_v38, %v12183_v28  ;;  %v9978_v28 = vsub.f32 %v9925_v49, %v12184_v4  ;;  %v1704_v36 = vand.u32 4294901760, %v1703_v22  ;;  %v1717_v4 = vsub.f32 %v9936_v23, %v12185_v7 }
 0x1d0   : > { %8021 = vmatprep.subr.bf16.mxu1 %v12178_v37  ;;  %8120 = vmatprep.subr.bf16.mxu0 %v12178_v37  ;;  %v12188_v22 = vand.u32 4294901760, %v9953_v26 }
 0x1d1   : > { %v1711_v61 = vand.u32 4294901760, %v1710_v18  ;;  %v1718_v5 = vand.u32 4294901760, %v1717_v4 }
 0x1d2   : > { %v1738_v7 = vsub.f32 %v9953_v26, %v12188_v22 }
 0x1d3   : > { %8023 = vmatpush3.bf16.msra.mxu1 %v9822_v48  ;;  %8122 = vmatpush3.bf16.msra.mxu0 %v9734_v58  ;;  %v12187_v58 = vand.u32 4294901760, %v9948_v31  ;;  %v8151_v22 = vpack.c.bf16 %v1711_v61, %v1704_v36  ;;  %v1725_v48 = vand.u32 4294901760, %v1724_v60  ;;  %v12194_v61 = vand.u32 4294901760, %v9995_v62  ;;  %v10053_v36 = vld [vmem:[#allocation8 + $0x70] sm:$0xff] }
 0x1d4   : > { %8024 = vmatprep.subr.bf16.mxu1 %v12178_v37  ;;  %8123 = vmatprep.subr.bf16.mxu0 %v12178_v37  ;;  %v1739_v32 = vand.u32 4294901760, %v1738_v7  ;;  %v12205_v60 = vpack.c.bf16 %v9590_v43, %v9588_v41 }
 0x1d5   : > { %v1731_v18 = vsub.f32 %v9948_v31, %v12187_v58  ;;  %v12192_v58 = vand.u32 4294901760, %v9978_v28  ;;  %v10041_v4 = vsub.f32 %v9995_v62, %v12194_v61  ;;  %v10055_v61 = vld [vmem:[#allocation8 + $0x78] sm:$0xff] }
 0x1d7   : > { %8026 = vmatpush3.bf16.msra.mxu1 %v9832_v27  ;;  %8125 = vmatpush3.bf16.msra.mxu0 %v9748_v17  ;;  %v1732_v59 = vand.u32 4294901760, %v1731_v18  ;;  %v1745_v57 = vsub.f32 %v9978_v28, %v12192_v58  ;;  %v12193_v27 = vand.u32 4294901760, %v9983_v19  ;;  %12195 = vst [vmem:[#allocation33_spill] sm:$0xff] %v10041_v4  ;;  %v12196_v18 = vand.u32 4294901760, %v9997_v3 }
 0x1d8   : > { %8027 = vmatprep.subr.bf16.mxu1 %v12178_v37  ;;  %8150 = vmatprep.subr.bf16.mxu0 %v12178_v37  ;;  %v8154_v58 = vpack.c.bf16 %v1725_v48, %v1718_v5  ;;  %v12199_v5 = vand.u32 4294901760, %v10017_v40 }
 0x1d9   : > { %v1752_v17 = vsub.f32 %v9983_v19, %v12193_v27  ;;  %v10046_v7 = vsub.f32 %v9997_v3, %v12196_v18  ;;  %v8157_v20 = vpack.c.bf16 %v1739_v32, %v1732_v59  ;;  %v1746_v15 = vand.u32 4294901760, %v1745_v57 }
 0x1da   : > { %6720 = vmatmul.mubr.f32.vlgmr.msra.gmra.mrb[4].mxu0 %v9869_v0  ;;  %v12200_v32 = vpack.c.bf16 %v9584_v24, %v9582_v21  ;;  %v12201_v57 = vand.u32 4294901760, %v10025_v54  ;;  %v12203_v27 = vand.u32 4294901760, %v10041_v4 }
 0x1db   : > { %12197 = vst [vmem:[#allocation34_spill] sm:$0xff] %v10046_v7  ;;  %8029 = vmatpush3.bf16.msra.mxu1 %v9840_v25  ;;  %8152 = vmatpush3.bf16.msra.mxu0 %v8151_v22  ;;  %v1753_v18 = vand.u32 4294901760, %v1752_v17  ;;  %v12198_v25 = vand.u32 4294901760, %v10012_v8  ;;  %v1766_v22 = vsub.f32 %v10017_v40, %v12199_v5  ;;  %v12202_v17 = vand.u32 4294901760, %v10027_v39 }
 0x1dc   : > { %8030 = vmatprep.subr.bf16.mxu1 %v12178_v37  ;;  %8153 = vmatprep.subr.bf16.mxu0 %v12178_v37  ;;  %v10074_v59 = vsub.f32 %v10025_v54, %v12201_v57  ;;  %v1773_v45 = vsub.f32 %v10041_v4, %v12203_v27  ;;  %v12207_v27 = vand.u32 4294901760, %v10055_v61 }
 0x1dd   : > { %6789 = vmatprep.mubr.msk.f32.mxu0 %vm9239_vm1, %v12177_v42  ;;  %v1759_v48 = vsub.f32 %v10012_v8, %v12198_v25  ;;  %v10079_v25 = vsub.f32 %v10027_v39, %v12202_v17  ;;  %v1767_v57 = vand.u32 4294901760, %v1766_v22  ;;  %v12204_v17 = vand.u32 4294901760, %v10046_v7 }
 0x1de   : > { %6580 = vmatmul.mubr.f32.vlgmr.msra.gmra.mrb[2].mxu1 %v9869_v0  ;;  %v10106_v4 = vsub.f32 %v10055_v61, %v12207_v27 }
 0x1df   : > { %8032 = vmatpush3.bf16.msra.mxu1 %v12200_v32  ;;  %8155 = vmatpush3.bf16.msra.mxu0 %v8154_v58  ;;  %v8160_v32 = vpack.c.bf16 %v1753_v18, %v1746_v15  ;;  %v1760_v58 = vand.u32 4294901760, %v1759_v48  ;;  %v1780_v5 = vsub.f32 %v10046_v7, %v12204_v17  ;;  %v12040_v15 = vand.u32 4294901760, %v10074_v59 }
 0x1e0   : > { %8033 = vmatprep.subr.bf16.mxu1 %v12178_v37  ;;  %8156 = vmatprep.subr.bf16.mxu0 %v12178_v37  ;;  %v12206_v48 = vand.u32 4294901760, %v10053_v36  ;;  %v12208_v18 = vpack.c.bf16 %v9598_v53, %v9593_v46  ;;  %v12209_v7 = vand.u32 4294901760, %v10079_v25  ;;  %v12037_v8 = vand.u32 4294901760, %v10106_v4 }
 0x1e1   : > { %6614 = vmatprep.mubr.msk.f32.mxu1 %vm9239_vm1, %v12177_v42  ;;  %v1781_v17 = vand.u32 4294901760, %v1780_v5  ;;  %v12210_v5 = vpack.c.bf16 %v9604_v56, %v9600_v55 }
 0x1e2   : > { %v10101_v22 = vsub.f32 %v10053_v36, %v12206_v48  ;;  %v1787_v48 = vsub.f32 %v10074_v59, %v12040_v15  ;;  %v1794_v27 = vsub.f32 %v10079_v25, %v12209_v7 }
 0x1e3   : > { %8035 = vmatpush3.bf16.msra.mxu1 %v12205_v60  ;;  %8158 = vmatpush3.bf16.msra.mxu0 %v8157_v20  ;;  %v8163_v60 = vpack.c.bf16 %v1767_v57, %v1760_v58  ;;  %v1774_v20 = vand.u32 4294901760, %v1773_v45  ;;  %v1808_v57 = vsub.f32 %v10106_v4, %v12037_v8 }
 0x1e4   : > { %8036 = vmatprep.subr.bf16.mxu1 %v12178_v37  ;;  %8159 = vmatprep.subr.bf16.mxu0 %v12178_v37  ;;  %v12039_v40 = vand.u32 4294901760, %v10101_v22  ;;  %v1795_v58 = vand.u32 4294901760, %v1794_v27 }
 0x1e5   : > { %v8166_v45 = vpack.c.bf16 %v1781_v17, %v1774_v20  ;;  %v1809_v17 = vand.u32 4294901760, %v1808_v57  ;;  %v12216_v57 = vpack.c.bf16 %v9752_v35, %v9750_v33 }
 0x1e6   : > { %v1801_v7 = vsub.f32 %v10101_v22, %v12039_v40 }
 0x1e7   : > { %8038 = vmatpush3.bf16.msra.mxu1 %v12208_v18  ;;  %8161 = vmatpush3.bf16.msra.mxu0 %v8160_v32  ;;  %v1788_v32 = vand.u32 4294901760, %v1787_v48  ;;  %v12211_v18 = vpack.c.bf16 %v9730_v52, %v9728_v51  ;;  %v12212_v48 = vpack.c.bf16 %v9742_v13, %v9740_v12 }
 0x1e8   : > { %8039 = vmatprep.subr.bf16.mxu1 %v12178_v37  ;;  %8162 = vmatprep.subr.bf16.mxu0 %v12178_v37  ;;  %v1802_v20 = vand.u32 4294901760, %v1801_v7  ;;  %v10154_v7 = vand.u32 4294901760, %v9864_v34 }
 0x1ea   : > { %v8172_v27 = vpack.c.bf16 %v1809_v17, %v1802_v20  ;;  %v12220_v20 = vand.u32 4294901760, %v9901_v6  ;;  %v12223_v6 = vand.u32 4294901760, %v9903_v10  ;;  %v12227_v10 = vand.u32 4294901760, %v9925_v49 }
 0x1eb   : > { %8041 = vmatpush3.bf16.msra.mxu1 %v12210_v5  ;;  %8164 = vmatpush3.bf16.msra.mxu0 %v8163_v60  ;;  %v8169_v60 = vpack.c.bf16 %v1795_v58, %v1788_v32  ;;  %v12214_v5 = vand.u32 4294901760, %v9887_v1  ;;  %v12215_v32 = vand.u32 4294901760, %v9889_v2  ;;  %v12217_v1 = vand.u32 4294901760, %v9582_v21 }
 0x1ec   : > { %8042 = vmatprep.subr.bf16.mxu1 %v12178_v37  ;;  %8165 = vmatprep.subr.bf16.mxu0 %v12178_v37  ;;  %v12218_v2 = vand.u32 4294901760, %v9584_v24  ;;  %v12221_v21 = vand.u32 4294901760, %v9588_v41  ;;  %v12222_v24 = vand.u32 4294901760, %v9590_v43  ;;  %v12225_v41 = vand.u32 4294901760, %v9593_v46 }
 0x1ed   : > { %v10151_v58 = vpack.c.bf16 %v12215_v32, %v12214_v5  ;;  %v12226_v43 = vand.u32 4294901760, %v9598_v53  ;;  %v12229_v5 = vand.u32 4294901760, %v9600_v55  ;;  %v12230_v46 = vand.u32 4294901760, %v9604_v56 }
 0x1ee   : > { %v12231_v53 = vand.u32 4294901760, %v9967_v9  ;;  %v12232_v49 = vand.u32 4294901760, %v9969_v29  ;;  %v12234_v55 = vand.u32 4294901760, %v9730_v52  ;;  %v12235_v56 = vand.u32 4294901760, %v9995_v62 }
 0x1ef   : > { %8044 = vmatpush3.bf16.msra.mxu1 %v12211_v18  ;;  %8167 = vmatpush3.bf16.msra.mxu0 %v8166_v45  ;;  %v12213_v45 = vpack.c.bf16 %v9746_v16, %v9744_v14  ;;  %v8079_v18 = vpack.c.bf16 %v12218_v2, %v12217_v1  ;;  %v8088_v32 = vpack.c.bf16 %v12230_v46, %v12229_v5  ;;  %v12236_v9 = vand.u32 4294901760, %v9997_v3 }
 0x1f0   : > { %8045 = vmatprep.subr.bf16.mxu1 %v12178_v37  ;;  %8168 = vmatprep.subr.bf16.mxu0 %v12178_v37  ;;  %v12237_v29 = vand.u32 4294901760, %v9740_v12  ;;  %v12239_v52 = vand.u32 4294901760, %v10025_v54  ;;  %v12240_v62 = vand.u32 4294901760, %v10027_v39  ;;  %v12241_v3 = vand.u32 4294901760, %v9744_v14 }
 0x1f1   : > { %v10228_v2 = vpack.c.bf16 %v12236_v9, %v12235_v56  ;;  %v12242_v12 = vand.u32 4294901760, %v9746_v16  ;;  %v12244_v54 = vand.u32 4294901760, %v10055_v61  ;;  %v10258_v39 = vsub.f32 %v9864_v34, %v10154_v7 }
 0x1f2   : > { %v12245_v14 = vand.u32 4294901760, %v9750_v33  ;;  %v12246_v16 = vand.u32 4294901760, %v9752_v35  ;;  %v10282_v33 = vld [vmem:[#allocation8 + $0x100] sm:$0xff]  ;;  %v10284_v35 = vld [vmem:[#allocation8 + $0x108] sm:$0xff] }
 0x1f3   : > { %8047 = vmatpush3.bf16.msra.mxu1 %v12212_v48  ;;  %8170 = vmatpush3.bf16.msra.mxu0 %v8169_v60  ;;  %v12219_v60 = vand.u32 4294901760, %v9899_v50  ;;  %v8082_v50 = vpack.c.bf16 %v12222_v24, %v12221_v21  ;;  %v12224_v48 = vand.u32 4294901760, %v9905_v30  ;;  %v12228_v30 = vand.u32 4294901760, %v9927_v11  ;;  %v10296_v24 = vld [vmem:[#allocation8 + $0x118] sm:$0xff] }
 0x1f4   : > { %8048 = vmatprep.subr.bf16.mxu1 %v12178_v37  ;;  %8171 = vmatprep.subr.bf16.mxu0 %v12178_v37  ;;  %v12233_v11 = vand.u32 4294901760, %v9728_v51  ;;  %v12238_v51 = vand.u32 4294901760, %v9742_v13  ;;  %v12243_v13 = vand.u32 4294901760, %v10053_v36  ;;  %v8100_v36 = vpack.c.bf16 %v12246_v16, %v12245_v14 }
 0x1f5   : > { %v10171_v17 = vpack.c.bf16 %v12220_v20, %v12219_v60  ;;  %v10241_v60 = vpack.c.bf16 %v12240_v62, %v12239_v52  ;;  %v8097_v20 = vpack.c.bf16 %v12242_v12, %v12241_v3  ;;  %v1691_v61 = vand.u32 4294901760, %v10258_v39 }
 0x1f6   : > { %v8091_v1 = vpack.c.bf16 %v12234_v55, %v12233_v11  ;;  %v10254_v21 = vpack.c.bf16 %v12244_v54, %v12243_v13  ;;  %v12053_v34 = vand.u32 4294901760, %v10284_v35 }
 0x1f7   : > { %8050 = vmatpush3.bf16.msra.mxu1 %v12213_v45  ;;  %8173 = vmatpush3.bf16.msra.mxu0 %v8172_v27  ;;  %v10187_v27 = vpack.c.bf16 %v12224_v48, %v12223_v6  ;;  %v10202_v45 = vpack.c.bf16 %v12228_v30, %v12227_v10  ;;  %v10300_v6 = vld [vmem:[#allocation8 + $0x128] sm:$0xff]  ;;  %v10320_v10 = vld [vmem:[#allocation8 + $0x130] sm:$0xff]  ;;  %v10322_v30 = vld [vmem:[#allocation8 + $0x138] sm:$0xff] }
 0x1f8   : > { %8051 = vmatprep.subr.bf16.mxu1 %v12178_v37  ;;  %8198 = vmatprep.subr.bf16.mxu0 %v12178_v37  ;;  %v10312_v48 = vsub.f32 %v10284_v35, %v12053_v34  ;;  %v12044_v11 = vand.u32 4294901760, %v10320_v10  ;;  %v12043_v55 = vand.u32 4294901760, %v10322_v30 }
 0x1fa   : > { %6790 = vmatmul.mubr.f32.vlgmr.msra.gmra.mrb[6].mxu0 %v10154_v7  ;;  %v12032_v46 = vand.u32 4294901760, %v10312_v48  ;;  %v10373_v62 = vsub.f32 %v10320_v10, %v12044_v11  ;;  %v10378_v3 = vsub.f32 %v10322_v30, %v12043_v55  ;;  %v10425_v55 = vld [vmem:[#allocation8 + $0x168] sm:$0xff] }
 0x1fb   : > { %8053 = vmatpush3.bf16.msra.mxu1 %v12216_v57  ;;  %8200 = vmatpush3.bf16.msra.mxu0 %v10151_v58  ;;  %v10215_v57 = vpack.c.bf16 %v12232_v49, %v12231_v53 }
 0x1fc   : > { %8078 = vmatprep.subr.bf16.mxu1 %v12178_v37  ;;  %8201 = vmatprep.subr.bf16.mxu0 %v12178_v37  ;;  %v2373_v56 = vsub.f32 %v10312_v48, %v12032_v46  ;;  %v10392_v46 = vld [vmem:[#allocation8 + $0x158] sm:$0xff] }
 0x1fd   : > { %6859 = vmatprep.mubr.msk.f32.mxu0 %vm9239_vm1, %v12177_v42  ;;  %v12050_v8 = vand.u32 4294901760, %v10392_v46 }
 0x1fe   : > { %6615 = vmatmul.mubr.f32.vlgmr.msra.gmra.mrb[4].mxu1 %v9875_v44  ;;  %v8085_v44 = vpack.c.bf16 %v12226_v43, %v12225_v41  ;;  %v12051_v43 = vand.u32 4294901760, %v10296_v24  ;;  %v2374_v54 = vand.u32 4294901760, %v2373_v56  ;;  %v12047_v56 = vand.u32 4294901760, %v10373_v62 }
 0x1ff   : > { %8080 = vmatpush3.bf16.msra.mxu1 %v8079_v18  ;;  %8203 = vmatpush3.bf16.msra.mxu0 %v10171_v17  ;;  %v8094_v18 = vpack.c.bf16 %v12238_v51, %v12237_v29  ;;  %v10362_v51 = vld [vmem:[#allocation8 + $0x140] sm:$0xff] }
 0x200   : > { %8081 = vmatprep.subr.bf16.mxu1 %v12178_v37  ;;  %8204 = vmatprep.subr.bf16.mxu0 %v12178_v37  ;;  %v10336_v53 = vsub.f32 %v10296_v24, %v12051_v43  ;;  %v12042_v12 = vand.u32 4294901760, %v10362_v51 }
 0x201   : > { %6684 = vmatprep.mubr.msk.f32.mxu1 %vm9239_vm1, %v12177_v42 }
 0x202   : > { %v12033_v29 = vand.u32 4294901760, %v10336_v53 }
 0x203   : > { %8083 = vmatpush3.bf16.msra.mxu1 %v8082_v50  ;;  %8206 = vmatpush3.bf16.msra.mxu0 %v10187_v27  ;;  %v10298_v50 = vld [vmem:[#allocation8 + $0x120] sm:$0xff] }
 0x204   : > { %8084 = vmatprep.subr.bf16.mxu1 %v12178_v37  ;;  %8207 = vmatprep.subr.bf16.mxu0 %v12178_v37  ;;  %v2387_v16 = vsub.f32 %v10336_v53, %v12033_v29  ;;  %v12046_v29 = vand.u32 4294901760, %v10378_v3 }
 0x206   : > { %v2388_v15 = vand.u32 4294901760, %v2387_v16  ;;  %v10444_v16 = vsub.f32 %v10392_v46, %v12050_v8  ;;  %v10455_v8 = vld [vmem:[#allocation8 + $0x178] sm:$0xff] }
 0x207   : > { %8086 = vmatpush3.bf16.msra.mxu1 %v8085_v44  ;;  %8209 = vmatpush3.bf16.msra.mxu0 %v10202_v45  ;;  %v12045_v44 = vand.u32 4294901760, %v10300_v6 }
 0x208   : > { %8087 = vmatprep.subr.bf16.mxu1 %v12178_v37  ;;  %8210 = vmatprep.subr.bf16.mxu0 %v12178_v37  ;;  %v12059_v34 = vand.u32 4294901760, %v10444_v16 }
 0x209   : > { %v10348_v49 = vsub.f32 %v10300_v6, %v12045_v44 }
 0x20b   : > { %8089 = vmatpush3.bf16.msra.mxu1 %v8088_v32  ;;  %8212 = vmatpush3.bf16.msra.mxu0 %v10215_v57  ;;  %v12038_v52 = vand.u32 4294901760, %v10348_v49 }
 0x20c   : > { %8090 = vmatprep.subr.bf16.mxu1 %v12178_v37  ;;  %8213 = vmatprep.subr.bf16.mxu0 %v12178_v37 }
 0x20f   : > { %8092 = vmatpush3.bf16.msra.mxu1 %v8091_v1  ;;  %8215 = vmatpush3.bf16.msra.mxu0 %v10228_v2 }
 0x210   : > { %8093 = vmatprep.subr.bf16.mxu1 %v12178_v37  ;;  %8216 = vmatprep.subr.bf16.mxu0 %v12178_v37 }
 0x213   : > { %8095 = vmatpush3.bf16.msra.mxu1 %v8094_v18  ;;  %8218 = vmatpush3.bf16.msra.mxu0 %v10241_v60  ;;  %v10364_v18 = vld [vmem:[#allocation8 + $0x148] sm:$0xff] }
 0x214   : > { %8096 = vmatprep.subr.bf16.mxu1 %v12178_v37  ;;  %8219 = vmatprep.subr.bf16.mxu0 %v12178_v37 }
 0x217   : > { %8098 = vmatpush3.bf16.msra.mxu1 %v8097_v20  ;;  %8221 = vmatpush3.bf16.msra.mxu0 %v10254_v21  ;;  %v12041_v20 = vand.u32 4294901760, %v10364_v18 }
 0x218   : > { %8099 = vmatprep.subr.bf16.mxu1 %v12178_v37  ;;  %8246 = vmatprep.subr.bf16.mxu0 %v12178_v37 }
 0x21a   : > { %6860 = vmatmul.mubr.f32.vlgmr.msra.gmra.mrb[8].mxu0 %v1691_v61 }
 0x21b   : > { %8101 = vmatpush3.bf16.msra.mxu1 %v8100_v36  ;;  %8248 = vmatpush3.bf16.msra.mxu0 %v10151_v58  ;;  %v10390_v36 = vld [vmem:[#allocation8 + $0x150] sm:$0xff] }
 0x21c   : > { %8126 = vmatprep.subr.bf16.mxu1 %v12178_v37  ;;  %8249 = vmatprep.subr.bf16.mxu0 %v12178_v37 }
 0x21d   : > { %6929 = vmatprep.mubr.msk.f32.mxu0 %vm9239_vm1, %v12177_v42 }
 0x21e   : > { %6685 = vmatmul.mubr.f32.vlgmr.msra.gmra.mrb[6].mxu1 %v9869_v0  ;;  %v12058_v0 = vand.u32 4294901760, %v10282_v33 }
 0x21f   : > { %8128 = vmatpush3.bf16.msra.mxu1 %v10151_v58  ;;  %8251 = vmatpush3.bf16.msra.mxu0 %v10171_v17  ;;  %v10294_v58 = vld [vmem:[#allocation8 + $0x110] sm:$0xff] }
 0x220   : > { %8129 = vmatprep.subr.bf16.mxu1 %v12178_v37  ;;  %8252 = vmatprep.subr.bf16.mxu0 %v12178_v37  ;;  %v12052_v41 = vand.u32 4294901760, %v10294_v58 }
 0x221   : > { %6754 = vmatprep.mubr.msk.f32.mxu1 %vm9239_vm1, %v12177_v42 }
 0x222   : > { %v10331_v32 = vsub.f32 %v10294_v58, %v12052_v41 }
 0x223   : > { %8131 = vmatpush3.bf16.msra.mxu1 %v10171_v17  ;;  %8254 = vmatpush3.bf16.msra.mxu0 %v10187_v27  ;;  %v10307_v17 = vsub.f32 %v10282_v33, %v12058_v0 }
 0x224   : > { %8132 = vmatprep.subr.bf16.mxu1 %v12178_v37  ;;  %8255 = vmatprep.subr.bf16.mxu0 %v12178_v37  ;;  %v12034_v9 = vand.u32 4294901760, %v10331_v32 }
 0x225   : > { %v12035_v5 = vand.u32 4294901760, %v10307_v17 }
 0x226   : > { %v2380_v14 = vsub.f32 %v10331_v32, %v12034_v9  ;;  %v10407_v9 = vsub.f32 %v10362_v51, %v12042_v12  ;;  %v10423_v12 = vld [vmem:[#allocation8 + $0x160] sm:$0xff] }
 0x227   : > { %8134 = vmatpush3.bf16.msra.mxu1 %v10187_v27  ;;  %8257 = vmatpush3.bf16.msra.mxu0 %v10202_v45  ;;  %v12048_v27 = vand.u32 4294901760, %v10298_v50  ;;  %v2366_v1 = vsub.f32 %v10307_v17, %v12035_v5  ;;  %v10412_v5 = vsub.f32 %v10364_v18, %v12041_v20  ;;  %v1692_v20 = vsub.f32 %v10258_v39, %v1691_v61 }
 0x228   : > { %8135 = vmatprep.subr.bf16.mxu1 %v12178_v37  ;;  %8258 = vmatprep.subr.bf16.mxu0 %v12178_v37  ;;  %v2381_v40 = vand.u32 4294901760, %v2380_v14 }
 0x229   : > { %v2367_v13 = vand.u32 4294901760, %v2366_v1  ;;  %v2401_v1 = vsub.f32 %v10348_v49, %v12038_v52  ;;  %v12054_v61 = vand.u32 4294901760, %v10412_v5 }
 0x22b   : > { %8137 = vmatpush3.bf16.msra.mxu1 %v10202_v45  ;;  %8260 = vmatpush3.bf16.msra.mxu0 %v10215_v57  ;;  %v10343_v45 = vsub.f32 %v10298_v50, %v12048_v27  ;;  %v8295_v52 = vpack.c.bf16 %v2374_v54, %v2367_v13  ;;  %v2402_v44 = vand.u32 4294901760, %v2401_v1  ;;  %v2415_v13 = vsub.f32 %v10378_v3, %v12046_v29 }
 0x22c   : > { %8138 = vmatprep.subr.bf16.mxu1 %v12178_v37  ;;  %8261 = vmatprep.subr.bf16.mxu0 %v12178_v37  ;;  %v12055_v54 = vand.u32 4294901760, %v10407_v9  ;;  %v8298_v1 = vpack.c.bf16 %v2388_v15, %v2381_v40  ;;  %v12057_v29 = vand.u32 4294901760, %v10423_v12  ;;  %v1693_v27 = vand.u32 4294901760, %v1692_v20 }
 0x22d   : > { %v2416_v41 = vand.u32 4294901760, %v2415_v13  ;;  %v2429_v15 = vsub.f32 %v10412_v5, %v12054_v61  ;;  %v8181_v13 = vpack.c.bf16 %v9953_v26, %v9948_v31 }
 0x22e   : > { %v2422_v40 = vsub.f32 %v10407_v9, %v12055_v54 }
 0x22f   : > { %8140 = vmatpush3.bf16.msra.mxu1 %v10215_v57  ;;  %8263 = vmatpush3.bf16.msra.mxu0 %v10228_v2  ;;  %v12036_v57 = vand.u32 4294901760, %v10343_v45  ;;  %v2430_v61 = vand.u32 4294901760, %v2429_v15 }
 0x230   : > { %8141 = vmatprep.subr.bf16.mxu1 %v12178_v37  ;;  %8264 = vmatprep.subr.bf16.mxu0 %v12178_v37 }
 0x233   : > { %8143 = vmatpush3.bf16.msra.mxu1 %v10228_v2  ;;  %8266 = vmatpush3.bf16.msra.mxu0 %v10241_v60  ;;  %v2394_v2 = vsub.f32 %v10343_v45, %v12036_v57  ;;  %v12049_v57 = vand.u32 4294901760, %v10390_v36 }
 0x234   : > { %8144 = vmatprep.subr.bf16.mxu1 %v12178_v37  ;;  %8267 = vmatprep.subr.bf16.mxu0 %v12178_v37 }
 0x235   : > { %v2395_v11 = vand.u32 4294901760, %v2394_v2  ;;  %v10439_v14 = vsub.f32 %v10390_v36, %v12049_v57  ;;  %v8175_v2 = vpack.c.bf16 %v9917_v38, %v9912_v63  ;;  %v10453_v57 = vld [vmem:[#allocation8 + $0x170] sm:$0xff] }
 0x237   : > { %8146 = vmatpush3.bf16.msra.mxu1 %v10241_v60  ;;  %8269 = vmatpush3.bf16.msra.mxu0 %v10254_v21  ;;  %v2408_v60 = vsub.f32 %v10373_v62, %v12047_v56  ;;  %v12056_v56 = vand.u32 4294901760, %v10425_v55  ;;  %v12060_v20 = vand.u32 4294901760, %v10439_v14 }
 0x238   : > { %8147 = vmatprep.subr.bf16.mxu1 %v12178_v37  ;;  %8294 = vmatprep.subr.bf16.mxu0 %v12178_v37 }
 0x239   : > { %v2409_v43 = vand.u32 4294901760, %v2408_v60  ;;  %v12061_v60 = vand.u32 4294901760, %v10455_v8  ;;  %v2436_v54 = vsub.f32 %v10439_v14, %v12060_v20 }
 0x23a   : > { %6930 = vmatmul.mubr.f32.vlgmr.msra.gmra.mrb[10].mxu0 %v10154_v7 }
 0x23b   : > { %8149 = vmatpush3.bf16.msra.mxu1 %v10254_v21  ;;  %8296 = vmatpush3.bf16.msra.mxu0 %v8295_v52  ;;  %v8178_v21 = vpack.c.bf16 %v9941_v47, %v9936_v23  ;;  %v8301_v52 = vpack.c.bf16 %v2402_v44, %v2395_v11  ;;  %v10472_v44 = vsub.f32 %v10423_v12, %v12057_v29  ;;  %v12062_v11 = vand.u32 4294901760, %v10453_v57 }
 0x23c   : > { %8174 = vmatprep.subr.bf16.mxu1 %v12178_v37  ;;  %8297 = vmatprep.subr.bf16.mxu0 %v12178_v37 }
 0x23d   : > { %6999 = vmatprep.mubr.msk.f32.mxu0 %vm9239_vm1, %v12177_v42  ;;  %v12064_v29 = vand.u32 4294901760, %v10472_v44 }
 0x23e   : > { %6755 = vmatmul.mubr.f32.vlgmr.msra.gmra.mrb[8].mxu1 %v1693_v27  ;;  %v10477_v27 = vsub.f32 %v10425_v55, %v12056_v56  ;;  %v2443_v56 = vsub.f32 %v10444_v16, %v12059_v34 }
 0x23f   : > { %8176 = vmatpush3.bf16.msra.mxu1 %v8175_v2  ;;  %8299 = vmatpush3.bf16.msra.mxu0 %v8298_v1  ;;  %v8304_v2 = vpack.c.bf16 %v2416_v41, %v2409_v43  ;;  %v2423_v1 = vand.u32 4294901760, %v2422_v40  ;;  %v10498_v41 = vsub.f32 %v10453_v57, %v12062_v11  ;;  %v10503_v43 = vsub.f32 %v10455_v8, %v12061_v60 }
 0x240   : > { %12247 = vst [vmem:[#allocation35_spill] sm:$0xff] %v10477_v27  ;;  %8177 = vmatprep.subr.bf16.mxu1 %v12178_v37  ;;  %8300 = vmatprep.subr.bf16.mxu0 %v12178_v37  ;;  %v12063_v0 = vand.u32 4294901760, %v10477_v27  ;;  %v2437_v40 = vand.u32 4294901760, %v2436_v54  ;;  %v2444_v15 = vand.u32 4294901760, %v2443_v56  ;;  %v2450_v34 = vsub.f32 %v10472_v44, %v12064_v29  ;;  %v12248_v54 = vld [vmem:[#allocation31_spill] sm:$0xff]  ;;  %v12249_v56 = vld [vmem:[#allocation32_spill] sm:$0xff] }
 0x241   : > { %6824 = vmatprep.mubr.msk.f32.mxu1 %vm9239_vm1, %v12177_v42  ;;  %v2463_v60 = vand.u32 4294901760, %v10498_v41  ;;  %v12067_v11 = vand.u32 4294901760, %v10503_v43 }
 0x242   : > { %v2457_v20 = vsub.f32 %v10477_v27, %v12063_v0  ;;  %v12250_v27 = vld [vmem:[#allocation33_spill] sm:$0xff] }
 0x243   : > { %8179 = vmatpush3.bf16.msra.mxu1 %v8178_v21  ;;  %8302 = vmatpush3.bf16.msra.mxu0 %v8301_v52  ;;  %v8184_v21 = vpack.c.bf16 %v9983_v19, %v9978_v28  ;;  %v8307_v52 = vpack.c.bf16 %v2430_v61, %v2423_v1  ;;  %v8187_v61 = vpack.c.bf16 %v12249_v56, %v12248_v54 }
 0x244   : > { %8180 = vmatprep.subr.bf16.mxu1 %v12178_v37  ;;  %8303 = vmatprep.subr.bf16.mxu0 %v12178_v37  ;;  %v2458_v1 = vand.u32 4294901760, %v2457_v20  ;;  %v2464_v0 = vsub.f32 %v10498_v41, %v2463_v60  ;;  %v2471_v29 = vsub.f32 %v10503_v43, %v12067_v11 }
 0x246   : > { %v2472_v20 = vand.u32 4294901760, %v2471_v29  ;;  %v12252_v29 = vand.u32 4294901760, %v10282_v33  ;;  %v12256_v33 = vand.u32 4294901760, %v9917_v38  ;;  %v12260_v38 = vand.u32 4294901760, %v9941_v47 }
 0x247   : > { %8182 = vmatpush3.bf16.msra.mxu1 %v8181_v13  ;;  %8305 = vmatpush3.bf16.msra.mxu0 %v8304_v2  ;;  %v8310_v13 = vpack.c.bf16 %v2444_v15, %v2437_v40  ;;  %v2451_v2 = vand.u32 4294901760, %v2450_v34  ;;  %v12251_v40 = vld [vmem:[#allocation34_spill] sm:$0xff]  ;;  %v2465_v34 = vand.u32 4294901760, %v2464_v0  ;;  %v8193_v15 = vpack.c.bf16 %v10079_v25, %v10074_v59 }
 0x248   : > { %8183 = vmatprep.subr.bf16.mxu1 %v12178_v37  ;;  %8306 = vmatprep.subr.bf16.mxu0 %v12178_v37  ;;  %v8196_v0 = vpack.c.bf16 %v10106_v4, %v10101_v22 }
 0x249   : > { %v8316_v11 = vpack.c.bf16 %v2472_v20, %v2465_v34 }
 0x24b   : > { %8185 = vmatpush3.bf16.msra.mxu1 %v8184_v21  ;;  %8308 = vmatpush3.bf16.msra.mxu0 %v8307_v52  ;;  %v8190_v21 = vpack.c.bf16 %v12251_v40, %v12250_v27  ;;  %v8313_v52 = vpack.c.bf16 %v2458_v1, %v2451_v2  ;;  %v12254_v2 = vld [vmem:[#allocation30_spill] sm:$0xff] }
 0x24c   : > { %8186 = vmatprep.subr.bf16.mxu1 %v12178_v37  ;;  %8309 = vmatprep.subr.bf16.mxu0 %v12178_v37  ;;  %v10547_v1 = vand.u32 4294901760, %v12254_v2 }
 0x24f   : > { %8188 = vmatpush3.bf16.msra.mxu1 %v8187_v61  ;;  %8311 = vmatpush3.bf16.msra.mxu0 %v8310_v13  ;;  %v12253_v61 = vand.u32 4294901760, %v10284_v35  ;;  %v12257_v35 = vand.u32 4294901760, %v10294_v58  ;;  %v12261_v58 = vand.u32 4294901760, %v10298_v50  ;;  %v12266_v50 = vand.u32 4294901760, %v10322_v30 }
 0x250   : > { %8189 = vmatprep.subr.bf16.mxu1 %v12178_v37  ;;  %8312 = vmatprep.subr.bf16.mxu0 %v12178_v37  ;;  %v12272_v30 = vand.u32 4294901760, %v12249_v56  ;;  %v12278_v56 = vand.u32 4294901760, %v10425_v55  ;;  %v10627_v55 = vsub.f32 %v12254_v2, %v10547_v1  ;;  %v8319_v2 = vpack.c.bf16 %v10312_v48, %v10307_v17 }
 0x251   : > { %v10543_v13 = vpack.c.bf16 %v12253_v61, %v12252_v29  ;;  %v12267_v29 = vand.u32 4294901760, %v9978_v28  ;;  %v12268_v61 = vand.u32 4294901760, %v9983_v19  ;;  %v12273_v28 = vand.u32 4294901760, %v10390_v36 }
 0x252   : > { %v12274_v19 = vand.u32 4294901760, %v10392_v46  ;;  %v12279_v46 = vand.u32 4294901760, %v10074_v59  ;;  %v12280_v36 = vand.u32 4294901760, %v10079_v25  ;;  %v12283_v59 = vand.u32 4294901760, %v10101_v22 }
 0x253   : > { %8191 = vmatpush3.bf16.msra.mxu1 %v8190_v21  ;;  %8314 = vmatpush3.bf16.msra.mxu0 %v8313_v52  ;;  %v12258_v52 = vand.u32 4294901760, %v10296_v24  ;;  %v12262_v24 = vand.u32 4294901760, %v10300_v6  ;;  %v12284_v25 = vand.u32 4294901760, %v10106_v4 }
 0x254   : > { %8192 = vmatprep.subr.bf16.mxu1 %v12178_v37  ;;  %8315 = vmatprep.subr.bf16.mxu0 %v12178_v37 }
 0x255   : > { %v8274_v34 = vpack.c.bf16 %v12258_v52, %v12257_v35  ;;  %v8286_v35 = vpack.c.bf16 %v12274_v19, %v12273_v28 }
 0x257   : > { %8194 = vmatpush3.bf16.msra.mxu1 %v8193_v15  ;;  %8317 = vmatpush3.bf16.msra.mxu0 %v8316_v11  ;;  %v12255_v11 = vand.u32 4294901760, %v9912_v63  ;;  %v12259_v63 = vand.u32 4294901760, %v9936_v23  ;;  %v8277_v15 = vpack.c.bf16 %v12262_v24, %v12261_v58  ;;  %v12264_v23 = vand.u32 4294901760, %v9953_v26 }
 0x258   : > { %8195 = vmatprep.subr.bf16.mxu1 %v12178_v37  ;;  %8342 = vmatprep.subr.bf16.mxu0 %v12178_v37  ;;  %v12270_v26 = vand.u32 4294901760, %v10364_v18  ;;  %v12276_v18 = vand.u32 4294901760, %v12251_v40  ;;  %v12282_v40 = vand.u32 4294901760, %v10455_v8  ;;  %v2354_v8 = vand.u32 4294901760, %v10627_v55 }
 0x259   : > { %v8223_v21 = vpack.c.bf16 %v12256_v33, %v12255_v11  ;;  %v8226_v20 = vpack.c.bf16 %v12260_v38, %v12259_v63  ;;  %v8232_v11 = vpack.c.bf16 %v12268_v61, %v12267_v29  ;;  %v8241_v38 = vpack.c.bf16 %v12280_v36, %v12279_v46  ;;  %v12285_v61 = vld [vmem:[#allocation35_spill] sm:$0xff] }
 0x25a   : > { %7000 = vmatmul.mubr.f32.vlgmr.msra.gmra.mrb[12].mxu0 %v10547_v1  ;;  %v8322_v58 = vpack.c.bf16 %v10336_v53, %v10331_v32  ;;  %v8325_v24 = vpack.c.bf16 %v10348_v49, %v10343_v45 }
 0x25b   : > { %8197 = vmatpush3.bf16.msra.mxu1 %v8196_v0  ;;  %8344 = vmatpush3.bf16.msra.mxu0 %v10543_v13  ;;  %v12265_v0 = vand.u32 4294901760, %v10320_v10  ;;  %v12271_v10 = vand.u32 4294901760, %v12248_v54  ;;  %v12277_v54 = vand.u32 4294901760, %v10423_v12  ;;  %v8244_v12 = vpack.c.bf16 %v12284_v25, %v12283_v59 }
 0x25c   : > { %8222 = vmatprep.subr.bf16.mxu1 %v12178_v37  ;;  %8345 = vmatprep.subr.bf16.mxu0 %v12178_v37  ;;  %v12300_v59 = vand.u32 4294901760, %v10503_v43 }
 0x25d   : > { %7069 = vmatprep.mubr.msk.f32.mxu0 %vm9239_vm1, %v12177_v42  ;;  %v8280_v6 = vpack.c.bf16 %v12266_v50, %v12265_v0  ;;  %v8289_v63 = vpack.c.bf16 %v12278_v56, %v12277_v54  ;;  %v8334_v0 = vpack.c.bf16 %v10444_v16, %v10439_v14 }
 0x25e   : > { %6825 = vmatmul.mubr.f32.vlgmr.msra.gmra.mrb[10].mxu1 %v10258_v39  ;;  %v12263_v39 = vand.u32 4294901760, %v9948_v31  ;;  %v12269_v31 = vand.u32 4294901760, %v10362_v51  ;;  %v12275_v51 = vand.u32 4294901760, %v12250_v27  ;;  %v12281_v27 = vand.u32 4294901760, %v10453_v57 }
 0x25f   : > { %8224 = vmatpush3.bf16.msra.mxu1 %v8223_v21  ;;  %8347 = vmatpush3.bf16.msra.mxu0 %v8274_v34  ;;  %v8235_v21 = vpack.c.bf16 %v12272_v30, %v12271_v10  ;;  %v12288_v30 = vand.u32 4294901760, %v10331_v32  ;;  %v12292_v32 = vand.u32 4294901760, %v10373_v62  ;;  %v8388_v25 = vpack.c.bf16 %v12300_v59, %v2463_v60  ;;  %v12302_v60 = vld [vmem:[#allocation14_spill] sm:$0xff] }
 0x260   : > { %8225 = vmatprep.subr.bf16.mxu1 %v12178_v37  ;;  %8348 = vmatprep.subr.bf16.mxu0 %v12178_v37  ;;  %v8229_v47 = vpack.c.bf16 %v12264_v23, %v12263_v39  ;;  %v8283_v33 = vpack.c.bf16 %v12270_v26, %v12269_v31  ;;  %v8238_v52 = vpack.c.bf16 %v12276_v18, %v12275_v51  ;;  %v12286_v26 = vand.u32 4294901760, %v10307_v17 }
 0x261   : > { %6894 = vmatprep.mubr.msk.f32.mxu1 %vm9239_vm1, %v12177_v42  ;;  %v8331_v39 = vpack.c.bf16 %v10412_v5, %v10407_v9  ;;  %v8340_v31 = vpack.c.bf16 %v10503_v43, %v10498_v41  ;;  %v12290_v17 = vand.u32 4294901760, %v10343_v45  ;;  %v12295_v45 = vand.u32 4294901760, %v10412_v5  ;;  %v12303_v43 = vld [vmem:[#allocation15_spill] sm:$0xff] }
 0x263   : > { %8227 = vmatpush3.bf16.msra.mxu1 %v8226_v20  ;;  %8350 = vmatpush3.bf16.msra.mxu0 %v8277_v15  ;;  %v8292_v20 = vpack.c.bf16 %v12282_v40, %v12281_v27  ;;  %v12298_v27 = vand.u32 4294901760, %v10472_v44  ;;  %v12299_v40 = vand.u32 4294901760, %v12285_v61 }
 0x264   : > { %8228 = vmatprep.subr.bf16.mxu1 %v12178_v37  ;;  %8351 = vmatprep.subr.bf16.mxu0 %v12178_v37 }
 0x267   : > { %8230 = vmatpush3.bf16.msra.mxu1 %v8229_v47  ;;  %8353 = vmatpush3.bf16.msra.mxu0 %v8280_v6 }
 0x268   : > { %8231 = vmatprep.subr.bf16.mxu1 %v12178_v37  ;;  %8354 = vmatprep.subr.bf16.mxu0 %v12178_v37 }
 0x26b   : > { %8233 = vmatpush3.bf16.msra.mxu1 %v8232_v11  ;;  %8356 = vmatpush3.bf16.msra.mxu0 %v8283_v33  ;;  %v8337_v11 = vpack.c.bf16 %v12285_v61, %v10472_v44  ;;  %v12310_v61 = vld [vmem:[#allocation22_spill] sm:$0xff] }
 0x26c   : > { %8234 = vmatprep.subr.bf16.mxu1 %v12178_v37  ;;  %8357 = vmatprep.subr.bf16.mxu0 %v12178_v37 }
 0x26f   : > { %8236 = vmatpush3.bf16.msra.mxu1 %v8235_v21  ;;  %8359 = vmatpush3.bf16.msra.mxu0 %v8286_v35  ;;  %v12289_v21 = vand.u32 4294901760, %v10336_v53  ;;  %v12293_v53 = vand.u32 4294901760, %v10378_v3 }
 0x270   : > { %8237 = vmatprep.subr.bf16.mxu1 %v12178_v37  ;;  %8360 = vmatprep.subr.bf16.mxu0 %v12178_v37 }
 0x271   : > { %v8370_v28 = vpack.c.bf16 %v12289_v21, %v12288_v30  ;;  %v8376_v51 = vpack.c.bf16 %v12293_v53, %v12292_v32 }
 0x273   : > { %8239 = vmatpush3.bf16.msra.mxu1 %v8238_v52  ;;  %8362 = vmatpush3.bf16.msra.mxu0 %v8289_v63  ;;  %v12294_v52 = vand.u32 4294901760, %v10407_v9 }
 0x274   : > { %8240 = vmatprep.subr.bf16.mxu1 %v12178_v37  ;;  %8363 = vmatprep.subr.bf16.mxu0 %v12178_v37 }
 0x277   : > { %8242 = vmatpush3.bf16.msra.mxu1 %v8241_v38  ;;  %8365 = vmatpush3.bf16.msra.mxu0 %v8292_v20 }
 0x278   : > { %8243 = vmatprep.subr.bf16.mxu1 %v12178_v37  ;;  %8390 = vmatprep.subr.bf16.mxu0 %v12178_v37 }
 0x27a   : > { %7070 = vmatmul.mubr.f32.vlgmr.msra.gmra.mrb[14].mxu0 %v2354_v8 }
 0x27b   : > { %8245 = vmatpush3.bf16.msra.mxu1 %v8244_v12  ;;  %8392 = vmatpush3.bf16.msra.mxu0 %v10543_v13 }
 0x27c   : > { %8270 = vmatprep.subr.bf16.mxu1 %v12178_v37  ;;  %8393 = vmatprep.subr.bf16.mxu0 %v12178_v37 }
 0x27d   : > { %7139 = vmatprep.mubr.msk.f32.mxu0 %vm9239_vm1, %v12177_v42 }
 0x27e   : > { %6895 = vmatmul.mubr.f32.vlgmr.msra.gmra.mrb[12].mxu1 %v10154_v7 }
 0x27f   : > { %8272 = vmatpush3.bf16.msra.mxu1 %v10543_v13  ;;  %8395 = vmatpush3.bf16.msra.mxu0 %v8274_v34  ;;  %v2355_v13 = vsub.f32 %v10627_v55, %v2354_v8 }
 0x280   : > { %8273 = vmatprep.subr.bf16.mxu1 %v12178_v37  ;;  %8396 = vmatprep.subr.bf16.mxu0 %v12178_v37 }
 0x281   : > { %6964 = vmatprep.mubr.msk.f32.mxu1 %vm9239_vm1, %v12177_v42 }
 0x283   : > { %8275 = vmatpush3.bf16.msra.mxu1 %v8274_v34  ;;  %8398 = vmatpush3.bf16.msra.mxu0 %v8277_v15  ;;  %v2356_v34 = vand.u32 4294901760, %v2355_v13  ;;  %v12304_v13 = vld [vmem:[#allocation16_spill] sm:$0xff] }
 0x284   : > { %8276 = vmatprep.subr.bf16.mxu1 %v12178_v37  ;;  %8399 = vmatprep.subr.bf16.mxu0 %v12178_v37 }
 0x287   : > { %8278 = vmatpush3.bf16.msra.mxu1 %v8277_v15  ;;  %8401 = vmatpush3.bf16.msra.mxu0 %v8280_v6  ;;  %v8328_v15 = vpack.c.bf16 %v10378_v3, %v10373_v62  ;;  %v12296_v3 = vand.u32 4294901760, %v10439_v14  ;;  %v5657_v14 = vld [vmem:[#allocation2 + $0x10] sm:$0xff] }
 0x288   : > { %8279 = vmatprep.subr.bf16.mxu1 %v12178_v37  ;;  %8402 = vmatprep.subr.bf16.mxu0 %v12178_v37  ;;  %v2930_v44 = vsel %vm292_vm0, %v5657_v14, 0 }
 0x289   : > { %v10750_v8 = vand.u32 4294901760, %v2930_v44 }
 0x28b   : > { %8281 = vmatpush3.bf16.msra.mxu1 %v8280_v6  ;;  %8404 = vmatpush3.bf16.msra.mxu0 %v8283_v33 }
 0x28c   : > { %8282 = vmatprep.subr.bf16.mxu1 %v12178_v37  ;;  %8405 = vmatprep.subr.bf16.mxu0 %v12178_v37 }
 0x28d   : > { %v10655_v4 = vpop.f32.mrb[2].mxu0 }
 0x28e   : > { %v6651_v22 = vpop.f32.mrb[3].mxu0 }
 0x28f   : > { %8284 = vmatpush3.bf16.msra.mxu1 %v8283_v33  ;;  %8407 = vmatpush3.bf16.msra.mxu0 %v8286_v35  ;;  %v12287_v33 = vand.u32 4294901760, %v10312_v48  ;;  %v12291_v48 = vand.u32 4294901760, %v10348_v49  ;;  %v8379_v49 = vpack.c.bf16 %v12295_v45, %v12294_v52  ;;  %v3546_v45 = vld [vmem:[#allocation8 + $0x80] sm:$0xff] }
 0x290   : > { %8285 = vmatprep.subr.bf16.mxu1 %v12178_v37  ;;  %8408 = vmatprep.subr.bf16.mxu0 %v12178_v37 }
 0x291   : > { %v1054_v7 = vpop.f32.mrb[0].mxu1  ;;  %v8367_v10 = vpack.c.bf16 %v12287_v33, %v12286_v26  ;;  %v8373_v19 = vpack.c.bf16 %v12291_v48, %v12290_v17  ;;  %v12314_v17 = vld [vmem:[#allocation26_spill] sm:$0xff]  ;;  %v12315_v48 = vld [vmem:[#allocation27_spill] sm:$0xff] }
 0x292   : > { %v6546_v57 = vpop.f32.mrb[1].mxu1 }
 0x293   : > { %8287 = vmatpush3.bf16.msra.mxu1 %v8286_v35  ;;  %8410 = vmatpush3.bf16.msra.mxu0 %v8289_v63  ;;  %v5656_v35 = vld [vmem:[#allocation2 + $0x8] sm:$0xff] }
 0x294   : > { %8288 = vmatprep.subr.bf16.mxu1 %v12178_v37  ;;  %8411 = vmatprep.subr.bf16.mxu0 %v12178_v37  ;;  %v2927_v18 = vsel %vm292_vm0, %v5656_v35, 0 }
 0x295   : > { %v10723_v54 = vand.u32 4294901760, %v2927_v18 }
 0x297   : > { %8290 = vmatpush3.bf16.msra.mxu1 %v8289_v63  ;;  %8413 = vmatpush3.bf16.msra.mxu0 %v8292_v20  ;;  %v12297_v63 = vand.u32 4294901760, %v10444_v16  ;;  %v10733_v36 = vsub.f32 %v2927_v18, %v10723_v54 }
 0x298   : > { %8291 = vmatprep.subr.bf16.mxu1 %v12178_v37  ;;  %8510 = vmatprep.subr.bf16.mxu0 %v12178_v37 }
 0x299   : > { %v8382_v46 = vpack.c.bf16 %v12297_v63, %v12296_v3  ;;  %v3549_v3 = vld [vmem:[#allocation8 + $0x98] sm:$0xff] }
 0x29a   : > { %7140 = vmatmul.mubr.f32.vlgmr.msra.gmra.mrb[16].mxu0 %v10547_v1 }
 0x29b   : > { %8293 = vmatpush3.bf16.msra.mxu1 %v8292_v20  ;;  %7288 = vmatprep.mubr.msk.f32.mxu0 %vm9239_vm1, %v12177_v42  ;;  %v8385_v20 = vpack.c.bf16 %v12299_v40, %v12298_v27  ;;  %v3552_v27 = vld [vmem:[#allocation8 + $0xb0] sm:$0xff]  ;;  %v3553_v40 = vld [vmem:[#allocation8 + $0xb8] sm:$0xff] }
 0x29c   : > { %8318 = vmatprep.subr.bf16.mxu1 %v12178_v37 }
 0x29e   : > { %6965 = vmatmul.mubr.f32.vlgmr.msra.gmra.mrb[14].mxu1 %v2356_v34 }
 0x29f   : > { %8320 = vmatpush3.bf16.msra.mxu1 %v8319_v2  ;;  %7034 = vmatprep.mubr.msk.f32.mxu1 %vm9239_vm1, %v12177_v42 }
 0x2a0   : > { %8321 = vmatprep.subr.bf16.mxu1 %v12178_v37 }
 0x2a3   : > { %8323 = vmatpush3.bf16.msra.mxu1 %v8322_v58 }
 0x2a4   : > { %8324 = vmatprep.subr.bf16.mxu1 %v12178_v37 }
 0x2a7   : > { %8326 = vmatpush3.bf16.msra.mxu1 %v8325_v24  ;;  %v12306_v24 = vld [vmem:[#allocation18_spill] sm:$0xff] }
 0x2a8   : > { %8327 = vmatprep.subr.bf16.mxu1 %v12178_v37 }
 0x2ab   : > { %8329 = vmatpush3.bf16.msra.mxu1 %v8328_v15 }
 0x2ac   : > { %8330 = vmatprep.subr.bf16.mxu1 %v12178_v37 }
 0x2ad   : > { %v10684_v23 = vpop.f32.mrb[4].mxu0 }
 0x2ae   : > { %v6721_v47 = vpop.f32.mrb[5].mxu0 }
 0x2af   : > { %8332 = vmatpush3.bf16.msra.mxu1 %v8331_v39 }
 0x2b0   : > { %8333 = vmatprep.subr.bf16.mxu1 %v12178_v37 }
 0x2b1   : > { %v1205_v50 = vpop.f32.mrb[2].mxu1 }
 0x2b2   : > { %v1206_v6 = vadd.f32 %v1205_v50, %v1054_v7  ;;  %v6581_v29 = vpop.f32.mrb[3].mxu1  ;;  %v12301_v7 = vld [vmem:[#allocation13_spill] sm:$0xff] }
 0x2b3   : > { %8335 = vmatpush3.bf16.msra.mxu1 %v8334_v0  ;;  %v12307_v0 = vld [vmem:[#allocation19_spill] sm:$0xff]  ;;  %v12309_v29 = vld [vmem:[#allocation21_spill] sm:$0xff] }
 0x2b4   : > { %8336 = vmatprep.subr.bf16.mxu1 %v12178_v37 }
 0x2b7   : > { %8338 = vmatpush3.bf16.msra.mxu1 %v8337_v11  ;;  %v12311_v11 = vld [vmem:[#allocation23_spill] sm:$0xff] }
 0x2b8   : > { %8339 = vmatprep.subr.bf16.mxu1 %v12178_v37 }
 0x2bb   : > { %8341 = vmatpush3.bf16.msra.mxu1 %v8340_v31 }
 0x2bc   : > { %8366 = vmatprep.subr.bf16.mxu1 %v12178_v37 }
 0x2be   : > { %7035 = vmatmul.mubr.f32.vlgmr.msra.gmra.mrb[16].mxu1 %v10627_v55  ;;  %v3007_v55 = vand.u32 4294901760, %v10733_v36 }
 0x2bf   : > { %8368 = vmatpush3.bf16.msra.mxu1 %v8367_v10  ;;  %7104 = vmatprep.mubr.msk.f32.mxu1 %vm9239_vm1, %v12177_v42 }
 0x2c0   : > { %8369 = vmatprep.subr.bf16.mxu1 %v12178_v37  ;;  %v3008_v12 = vsub.f32 %v10733_v36, %v3007_v55 }
 0x2c2   : > { %v3009_v22 = vand.u32 4294901760, %v3008_v12 }
 0x2c3   : > { %8371 = vmatpush3.bf16.msra.mxu1 %v8370_v28  ;;  %v12313_v28 = vld [vmem:[#allocation25_spill] sm:$0xff] }
 0x2c4   : > { %8372 = vmatprep.subr.bf16.mxu1 %v12178_v37 }
 0x2c7   : > { %8374 = vmatpush3.bf16.msra.mxu1 %v8373_v19  ;;  %v12316_v19 = vld [vmem:[#allocation28_spill] sm:$0xff] }
 0x2c8   : > { %8375 = vmatprep.subr.bf16.mxu1 %v12178_v37 }
 0x2cb   : > { %8377 = vmatpush3.bf16.msra.mxu1 %v8376_v51 }
 0x2cc   : > { %8378 = vmatprep.subr.bf16.mxu1 %v12178_v37 }
 0x2cd   : > { %v10726_v56 = vpop.f32.mrb[6].mxu0 }
 0x2ce   : > { %v6791_v62 = vpop.f32.mrb[7].mxu0 }
 0x2cf   : > { %8380 = vmatpush3.bf16.msra.mxu1 %v8379_v49  ;;  %v3547_v49 = vld [vmem:[#allocation8 + $0x88] sm:$0xff] }
 0x2d0   : > { %8381 = vmatprep.subr.bf16.mxu1 %v12178_v37  ;;  %v3572_v62 = vand.u32 4294901760, %v3547_v49 }
 0x2d1   : > { %v1309_v5 = vpop.f32.mrb[4].mxu1 }
 0x2d2   : > { %v1310_v9 = vadd.f32 %v1309_v5, %v1206_v6  ;;  %v6616_v38 = vpop.f32.mrb[5].mxu1  ;;  %v12308_v6 = vld [vmem:[#allocation20_spill] sm:$0xff]  ;;  %v3578_v5 = vand.u32 4294901760, %v3549_v3 }
 0x2d3   : > { %8383 = vmatpush3.bf16.msra.mxu1 %v8382_v46  ;;  %v3550_v46 = vld [vmem:[#allocation8 + $0xa0] sm:$0xff] }
 0x2d4   : > { %8384 = vmatprep.subr.bf16.mxu1 %v12178_v37  ;;  %v1399_v16 = vadd.f32 %v10655_v4, %v1310_v9  ;;  %v3016_v4 = vsub.f32 %v2930_v44, %v10750_v8  ;;  %v3581_v9 = vand.u32 4294901760, %v3550_v46  ;;  %v10833_v44 = vsub.f32 %v3549_v3, %v3578_v5 }
 0x2d6   : > { %v3017_v41 = vand.u32 4294901760, %v3016_v4 }
 0x2d7   : > { %8386 = vmatpush3.bf16.msra.mxu1 %v8385_v20  ;;  %v3554_v20 = vld [vmem:[#allocation8 + $0xc0] sm:$0xff] }
 0x2d8   : > { %8387 = vmatprep.subr.bf16.mxu1 %v12178_v37  ;;  %v3018_v57 = vsub.f32 %v3016_v4, %v3017_v41 }
 0x2da   : > { %v3019_v2 = vand.u32 4294901760, %v3018_v57 }
 0x2db   : > { %8389 = vmatpush3.bf16.msra.mxu1 %v8388_v25  ;;  %v3555_v25 = vld [vmem:[#allocation8 + $0xc8] sm:$0xff] }
 0x2dc   : > { %8415 = vmatprep.subr.bf16.mxu1 %v12301_v7 }
 0x2de   : > { %7105 = vmatmul.mubr.f32.vlgmr.msra.gmra.mrb[18].mxu1 %v10547_v1  ;;  %v12305_v1 = vld [vmem:[#allocation17_spill] sm:$0xff] }
 0x2df   : > { %8417 = vmatpush3.bf16.msra.mxu1 %v12301_v7  ;;  %7158 = vmatprep.mubr.f32.mxu1 %v3009_v22 }
 0x2e0   : > { %8419 = vmatprep.subr.bf16.mxu1 %v12302_v60 }
 0x2e3   : > { %8421 = vmatpush3.bf16.msra.mxu1 %v12302_v60 }
 0x2e4   : > { %8423 = vmatprep.subr.bf16.mxu1 %v12303_v43 }
 0x2e7   : > { %8425 = vmatpush3.bf16.msra.mxu1 %v12303_v43 }
 0x2e8   : > { %8427 = vmatprep.subr.bf16.mxu1 %v12304_v13 }
 0x2eb   : > { %8429 = vmatpush3.bf16.msra.mxu1 %v12304_v13 }
 0x2ec   : > { %8431 = vmatprep.subr.bf16.mxu1 %v12305_v1 }
 0x2ed   : > { %v10763_v34 = vpop.f32.mrb[8].mxu0 }
 0x2ee   : > { %v6861_v58 = vpop.f32.mrb[9].mxu0  ;;  %7159 = vmatmul.mubr.f32.vlgmr.msra.gmra.mrb[20].mxu1 %v3019_v2 }
 0x2ef   : > { %8433 = vmatpush3.bf16.msra.mxu1 %v12305_v1  ;;  %7177 = vmatprep.mubr.f32.mxu1 %v10723_v54 }
 0x2f0   : > { %8435 = vmatprep.subr.bf16.mxu1 %v12306_v24 }
 0x2f1   : > { %v1517_v15 = vpop.f32.mrb[6].mxu1 }
 0x2f2   : > { %v1518_v39 = vadd.f32 %v1517_v15, %v1399_v16  ;;  %v6686_v47 = vpop.f32.mrb[7].mxu1  ;;  %v10825_v16 = vsub.f32 %v3547_v49, %v3572_v62 }
 0x2f3   : > { %8437 = vmatpush3.bf16.msra.mxu1 %v12306_v24 }
 0x2f4   : > { %8439 = vmatprep.subr.bf16.mxu1 %v12307_v0  ;;  %v1605_v50 = vadd.f32 %v10684_v23, %v1518_v39  ;;  %v12312_v23 = vld [vmem:[#allocation24_spill] sm:$0xff] }
 0x2f7   : > { %8441 = vmatpush3.bf16.msra.mxu1 %v12307_v0 }
 0x2f8   : > { %8443 = vmatprep.subr.bf16.mxu1 %v12308_v6 }
 0x2fb   : > { %8445 = vmatpush3.bf16.msra.mxu1 %v12308_v6 }
 0x2fc   : > { %8447 = vmatprep.subr.bf16.mxu1 %v12309_v29 }
 0x2fe   : > { %7178 = vmatmul.mubr.f32.vlgmr.msra.gmra.mrb[20].mxu1 %v10750_v8 }
 0x2ff   : > { %8449 = vmatpush3.bf16.msra.mxu1 %v12309_v29  ;;  %7196 = vmatprep.mubr.f32.mxu1 %v10733_v36  ;;  %v3551_v36 = vld [vmem:[#allocation8 + $0xa8] sm:$0xff] }
 0x300   : > { %8451 = vmatprep.subr.bf16.mxu1 %v12310_v61  ;;  %v3584_v38 = vand.u32 4294901760, %v3551_v36 }
 0x302   : > { %v10839_v22 = vsub.f32 %v3551_v36, %v3584_v38  ;;  %v10853_v1 = vpack.c.bf16 %v3584_v38, %v3581_v9 }
 0x303   : > { %8453 = vmatpush3.bf16.msra.mxu1 %v12310_v61 }
 0x304   : > { %8455 = vmatprep.subr.bf16.mxu1 %v12311_v11 }
 0x307   : > { %8457 = vmatpush3.bf16.msra.mxu1 %v12311_v11 }
 0x308   : > { %8459 = vmatprep.subr.bf16.mxu1 %v12312_v23 }
 0x30b   : > { %8461 = vmatpush3.bf16.msra.mxu1 %v12312_v23 }
 0x30c   : > { %8463 = vmatprep.subr.bf16.mxu1 %v12301_v7 }
 0x30d   : > { %v10785_v31 = vpop.f32.mrb[10].mxu0 }
 0x30e   : > { %v6931_v26 = vpop.f32.mrb[11].mxu0  ;;  %7197 = vmatmul.mubr.f32.vlgmr.msra.gmra.mrb[20].mxu1 %v3016_v4  ;;  %v3590_v4 = vand.u32 4294901760, %v3553_v40 }
 0x30f   : > { %8465 = vmatpush3.bf16.msra.mxu1 %v12301_v7  ;;  %7215 = vmatprep.mubr.f32.mxu1 %v3007_v55 }
 0x310   : > { %8467 = vmatprep.subr.bf16.mxu1 %v12302_v60  ;;  %v10845_v57 = vsub.f32 %v3553_v40, %v3590_v4 }
 0x311   : > { %v1695_v33 = vpop.f32.mrb[8].mxu1 }
 0x312   : > { %v1696_v10 = vadd.f32 %v1695_v33, %v1605_v50  ;;  %v6756_v30 = vpop.f32.mrb[9].mxu1 }
 0x313   : > { %8469 = vmatpush3.bf16.msra.mxu1 %v12302_v60  ;;  %v3556_v30 = vld [vmem:[#allocation8 + $0xd0] sm:$0xff] }
 0x314   : > { %8471 = vmatprep.subr.bf16.mxu1 %v12303_v43  ;;  %v1847_v21 = vadd.f32 %v10726_v56, %v1696_v10  ;;  %v3569_v56 = vand.u32 4294901760, %v3546_v45 }
 0x316   : > { %v10821_v55 = vpack.c.bf16 %v3572_v62, %v3569_v56  ;;  %v10823_v14 = vsub.f32 %v3546_v45, %v3569_v56  ;;  %v3561_v45 = vld [vmem:[#allocation8 + $0xf8] sm:$0xff] }
 0x317   : > { %8473 = vmatpush3.bf16.msra.mxu1 %v12303_v43 }
 0x318   : > { %8475 = vmatprep.subr.bf16.mxu1 %v12304_v13  ;;  %8512 = vmatpush3.bf16.msra.mxu0 %v10821_v55 }
 0x319   : > { %8513 = vmatprep.subr.bf16.mxu0 %v12178_v37 }
 0x31b   : > { %8477 = vmatpush3.bf16.msra.mxu1 %v12304_v13 }
 0x31c   : > { %8479 = vmatprep.subr.bf16.mxu1 %v12313_v28 }
 0x31e   : > { %7216 = vmatmul.mubr.f32.vlgmr.msra.gmra.mrb[20].mxu1 %v3017_v41  ;;  %v3596_v41 = vand.u32 4294901760, %v3555_v25 }
 0x31f   : > { %8481 = vmatpush3.bf16.msra.mxu1 %v12313_v28  ;;  %7234 = vmatprep.mubr.f32.mxu1 %v10723_v54  ;;  %v3599_v28 = vand.u32 4294901760, %v3556_v30 }
 0x320   : > { %8483 = vmatprep.subr.bf16.mxu1 %v12314_v17  ;;  %v10849_v2 = vsub.f32 %v3555_v25, %v3596_v41 }
 0x323   : > { %8485 = vmatpush3.bf16.msra.mxu1 %v12314_v17 }
 0x324   : > { %8487 = vmatprep.subr.bf16.mxu1 %v12315_v48 }
 0x327   : > { %8489 = vmatpush3.bf16.msra.mxu1 %v12315_v48 }
 0x328   : > { %8491 = vmatprep.subr.bf16.mxu1 %v12316_v19 }
 0x32b   : > { %8493 = vmatpush3.bf16.msra.mxu1 %v12316_v19 }
 0x32c   : > { %8495 = vmatprep.subr.bf16.mxu1 %v12301_v7 }
 0x32d   : > { %v10805_v35 = vpop.f32.mrb[12].mxu0 }
 0x32e   : > { %v7001_v32 = vpop.f32.mrb[13].mxu0  ;;  %7235 = vmatmul.mubr.f32.vlgmr.msra.gmra.mrb[20].mxu1 %v10750_v8 }
 0x32f   : > { %8497 = vmatpush3.bf16.msra.mxu1 %v12301_v7  ;;  %7253 = vmatprep.mubr.f32.mxu1 %v10723_v54  ;;  %v3548_v54 = vld [vmem:[#allocation8 + $0x90] sm:$0xff]  ;;  %v3587_v7 = vand.u32 4294901760, %v3552_v27  ;;  %v3559_v32 = vld [vmem:[#allocation8 + $0xe8] sm:$0xff] }
 0x330   : > { %8499 = vmatprep.subr.bf16.mxu1 %v12302_v60  ;;  %v3575_v63 = vand.u32 4294901760, %v3548_v54 }
 0x331   : > { %v1950_v53 = vpop.f32.mrb[10].mxu1 }
 0x332   : > { %v1951_v51 = vadd.f32 %v1950_v53, %v1847_v21  ;;  %v6826_v18 = vpop.f32.mrb[11].mxu1  ;;  %v10827_v59 = vsub.f32 %v3548_v54, %v3575_v63  ;;  %v10831_v12 = vpack.c.bf16 %v3578_v5, %v3575_v63  ;;  %v3557_v21 = vld [vmem:[#allocation8 + $0xd8] sm:$0xff]  ;;  %v10884_v53 = vsub.f32 %v3556_v30, %v3599_v28 }
 0x333   : > { %8501 = vmatpush3.bf16.msra.mxu1 %v12302_v60  ;;  %v3593_v60 = vand.u32 4294901760, %v3554_v20  ;;  %v3602_v17 = vand.u32 4294901760, %v3557_v21  ;;  %v3608_v18 = vand.u32 4294901760, %v3559_v32  ;;  %v3614_v54 = vand.u32 4294901760, %v3561_v45 }
 0x334   : > { %8503 = vmatprep.subr.bf16.mxu1 %v12303_v43  ;;  %v10814_v52 = vadd.f32 %v10763_v34, %v1951_v51  ;;  %8515 = vmatpush3.bf16.msra.mxu0 %v10831_v12  ;;  %v10859_v34 = vpack.c.bf16 %v3590_v4, %v3587_v7  ;;  %v12089_v5 = vand.u32 4294901760, %v10823_v14  ;;  %v12081_v25 = vand.u32 4294901760, %v10827_v59 }
 0x335   : > { %8516 = vmatprep.subr.bf16.mxu0 %v12178_v37  ;;  %v10865_v24 = vpack.c.bf16 %v3596_v41, %v3593_v60  ;;  %v10882_v19 = vpack.c.bf16 %v3602_v17, %v3599_v28  ;;  %v10886_v51 = vsub.f32 %v3557_v21, %v3602_v17  ;;  %v10896_v3 = vsub.f32 %v3559_v32, %v3608_v18 }
 0x336   : > { %v3663_v38 = vsub.f32 %v10823_v14, %v12089_v5  ;;  %v12074_v32 = vand.u32 4294901760, %v10849_v2 }
 0x337   : > { %8505 = vmatpush3.bf16.msra.mxu1 %v12303_v43  ;;  %v10843_v43 = vsub.f32 %v3552_v27, %v3587_v7  ;;  %v12080_v7 = vand.u32 4294901760, %v10833_v44 }
 0x338   : > { %8507 = vmatprep.subr.bf16.mxu1 %v12304_v13  ;;  %8518 = vmatpush3.bf16.msra.mxu0 %v10853_v1  ;;  %v3664_v40 = vand.u32 4294901760, %v3663_v38 }
 0x339   : > { %8519 = vmatprep.subr.bf16.mxu0 %v12178_v37  ;;  %v3684_v41 = vsub.f32 %v10833_v44, %v12080_v7 }
 0x33b   : > { %8509 = vmatpush3.bf16.msra.mxu1 %v12304_v13  ;;  %v10847_v13 = vsub.f32 %v3554_v20, %v3593_v60  ;;  %v3677_v60 = vsub.f32 %v10827_v59, %v12081_v25 }
 0x33c   : > { %8582 = vmatprep.subr.bf16.mxu1 %v12178_v37  ;;  %8521 = vmatpush3.bf16.msra.mxu0 %v10859_v34 }
 0x33d   : > { %8522 = vmatprep.subr.bf16.mxu0 %v12178_v37 }
 0x33e   : > { %7254 = vmatmul.mubr.f32.vlgmr.msra.gmra.mrb[20].mxu1 %v10750_v8  ;;  %v10835_v8 = vsub.f32 %v3550_v46, %v3581_v9  ;;  %v10900_v46 = vsub.f32 %v3561_v45, %v3614_v54  ;;  %v12086_v9 = vand.u32 4294901760, %v10825_v16  ;;  %v3726_v45 = vsub.f32 %v10849_v2, %v12074_v32 }
 0x33f   : > { %7393 = vmatprep.mubr.msk.f32.mxu1 %vm9239_vm1, %v12177_v42  ;;  %8584 = vmatpush3.bf16.msra.mxu1 %v10821_v55 }
 0x340   : > { %8585 = vmatprep.subr.bf16.mxu1 %v12178_v37  ;;  %8524 = vmatpush3.bf16.msra.mxu0 %v10865_v24  ;;  %v3670_v27 = vsub.f32 %v10825_v16, %v12086_v9  ;;  %v11128_v9 = vld [vmem:[#allocation8 + $0x48] sm:$0xff] }
 0x341   : > { %8525 = vmatprep.subr.bf16.mxu0 %v12178_v37 }
 0x342   : > { %v3671_v20 = vand.u32 4294901760, %v3670_v27  ;;  %v3727_v27 = vand.u32 4294901760, %v3726_v45 }
 0x343   : > { %8587 = vmatpush3.bf16.msra.mxu1 %v10831_v12 }
 0x344   : > { %8588 = vmatprep.subr.bf16.mxu1 %v12178_v37  ;;  %8527 = vmatpush3.bf16.msra.mxu0 %v10882_v19  ;;  %v10922_v4 = vpack.c.bf16 %v3671_v20, %v3664_v40  ;;  %v12073_v40 = vand.u32 4294901760, %v10884_v53  ;;  %v12072_v20 = vand.u32 4294901760, %v10886_v51 }
 0x345   : > { %8528 = vmatprep.subr.bf16.mxu0 %v12178_v37 }
 0x347   : > { %8590 = vmatpush3.bf16.msra.mxu1 %v10853_v1 }
 0x348   : > { %8591 = vmatprep.subr.bf16.mxu1 %v12178_v37 }
 0x34b   : > { %8593 = vmatpush3.bf16.msra.mxu1 %v10859_v34 }
 0x34c   : > { %8594 = vmatprep.subr.bf16.mxu1 %v12178_v37 }
 0x34d   : > { %v2702_v58 = vpop.f32.mrb[14].mxu0 }
 0x34e   : > { %v7071_v15 = vpop.f32.mrb[15].mxu0 }
 0x34f   : > { %8596 = vmatpush3.bf16.msra.mxu1 %v10865_v24  ;;  %v3685_v15 = vand.u32 4294901760, %v3684_v41  ;;  %v5655_v41 = vld [vmem:[%s11958_s4] ss:$0 sm:$0xff] }
 0x350   : > { %8597 = vmatprep.subr.bf16.mxu1 %v12178_v37 }
 0x351   : > { %v2158_v39 = vpop.f32.mrb[12].mxu1 }
 0x352   : > { %v2159_v47 = vadd.f32 %v2158_v39, %v10814_v52  ;;  %v6896_v0 = vpop.f32.mrb[13].mxu1  ;;  %v3560_v52 = vld [vmem:[#allocation8 + $0xf0] sm:$0xff]  ;;  %v12079_v39 = vand.u32 4294901760, %v10835_v8 }
 0x353   : > { %8599 = vmatpush3.bf16.msra.mxu1 %v10882_v19  ;;  %v3611_v49 = vand.u32 4294901760, %v3560_v52 }
 0x354   : > { %v10875_v50 = vadd.f32 %v10785_v31, %v2159_v47  ;;  %v3558_v31 = vld [vmem:[#allocation8 + $0xe0] sm:$0xff]  ;;  %8600 = vmatprep.subr.bf16.mxu1 %v12178_v37  ;;  %v12078_v47 = vand.u32 4294901760, %v10839_v22 }
 0x355   : > { %v10898_v63 = vsub.f32 %v3560_v52, %v3611_v49  ;;  %v10904_v36 = vpack.c.bf16 %v3614_v54, %v3611_v49 }
 0x357   : > { %v12069_v45 = vand.u32 4294901760, %v10898_v63 }
 0x36d   : > { %v10877_v6 = vpop.f32.mrb[16].mxu0 }
 0x36e   : > { %v7141_v29 = vpop.f32.mrb[17].mxu0 }
 0x36f   : > { %v3691_v29 = vsub.f32 %v10835_v8, %v12079_v39 }
 0x371   : > { %v2358_v61 = vpop.f32.mrb[14].mxu1 }
 0x372   : > { %v2510_v11 = vadd.f32 %v10805_v35, %v2358_v61  ;;  %v6966_v23 = vpop.f32.mrb[15].mxu1  ;;  %v3605_v35 = vand.u32 4294901760, %v3558_v31  ;;  %v3698_v61 = vsub.f32 %v10839_v22, %v12078_v47 }
 0x374   : > { %v10892_v56 = vpack.c.bf16 %v3608_v18, %v3605_v35  ;;  %v10894_v62 = vsub.f32 %v3558_v31, %v3605_v35  ;;  %v3699_v23 = vand.u32 4294901760, %v3698_v61  ;;  %v12075_v31 = vand.u32 4294901760, %v10847_v13 }
 0x376   : > { %8602 = vmatpush3.bf16.msra.mxu1 %v10892_v56  ;;  %8530 = vmatpush3.bf16.msra.mxu0 %v10892_v56  ;;  %v3719_v52 = vsub.f32 %v10847_v13, %v12075_v31 }
 0x377   : > { %8603 = vmatprep.subr.bf16.mxu1 %v12178_v37  ;;  %8531 = vmatprep.subr.bf16.mxu0 %v12178_v37 }
 0x378   : > { %v3720_v38 = vand.u32 4294901760, %v3719_v52 }
 0x37a   : > { %8605 = vmatpush3.bf16.msra.mxu1 %v10904_v36  ;;  %8533 = vmatpush3.bf16.msra.mxu0 %v10904_v36 }
 0x37b   : > { %8630 = vmatprep.subr.bf16.mxu1 %v12178_v37  ;;  %8534 = vmatprep.subr.bf16.mxu0 %v12178_v37 }
 0x391   : > { %v2613_v26 = vpop.f32.mrb[16].mxu1 }
 0x392   : > { %v2614_v33 = vadd.f32 %v2613_v26, %v2510_v11  ;;  %v7036_v10 = vpop.f32.mrb[17].mxu1  ;;  %v3692_v11 = vand.u32 4294901760, %v3691_v29  ;;  %v12077_v26 = vand.u32 4294901760, %v10843_v43 }
 0x394   : > { %v10880_v48 = vadd.f32 %v2702_v58, %v2614_v33  ;;  %v3678_v58 = vand.u32 4294901760, %v3677_v60  ;;  %v12076_v33 = vand.u32 4294901760, %v10845_v57  ;;  %v10942_v10 = vpack.c.bf16 %v3699_v23, %v3692_v11 }
 0x395   : > { %v3705_v30 = vsub.f32 %v10843_v43, %v12077_v26  ;;  %v12070_v23 = vand.u32 4294901760, %v10896_v3 }
 0x396   : > { %v10932_v0 = vpack.c.bf16 %v3685_v15, %v3678_v58  ;;  %v3712_v21 = vsub.f32 %v10845_v57, %v12076_v33  ;;  %v10967_v58 = vpack.c.bf16 %v3727_v27, %v3720_v38  ;;  %v3733_v15 = vsub.f32 %v10884_v53, %v12073_v40 }
 0x397   : > { %v3706_v28 = vand.u32 4294901760, %v3705_v30  ;;  %v3761_v38 = vsub.f32 %v10898_v63, %v12069_v45 }
 0x398   : > { %v3713_v17 = vand.u32 4294901760, %v3712_v21  ;;  %v3734_v61 = vand.u32 4294901760, %v3733_v15 }
 0x39a   : > { %v10952_v18 = vpack.c.bf16 %v3713_v17, %v3706_v28  ;;  %v3754_v17 = vsub.f32 %v10896_v3, %v12070_v23 }
 0x3b1   : > { %v2821_v35 = vpop.f32.mrb[18].mxu1 }
 0x3b2   : > { %v2822_v49 = vadd.f32 %v2821_v35, %v10880_v48  ;;  %v7106_v54 = vpop.f32.mrb[19].mxu1  ;;  %v3740_v48 = vsub.f32 %v10886_v51, %v12072_v20 }
 0x3b4   : > { %v2909_v60 = vadd.f32 %v10877_v6, %v2822_v49  ;;  %v3741_v11 = vand.u32 4294901760, %v3740_v48  ;;  %v12071_v6 = vand.u32 4294901760, %v10894_v62  ;;  %v12068_v49 = vand.u32 4294901760, %v10900_v46 }
 0x3b6   : > { %v2912_v29 = vadd.f32 %v2909_v60, %v10875_v50  ;;  %v10978_v21 = vpack.c.bf16 %v3741_v11, %v3734_v61  ;;  %v3747_v28 = vsub.f32 %v10894_v62, %v12071_v6  ;;  %v3755_v50 = vand.u32 4294901760, %v3754_v17 }
 0x3b7   : > { %v3768_v27 = vsub.f32 %v10900_v46, %v12068_v49  ;;  %v3762_v60 = vand.u32 4294901760, %v3761_v38 }
 0x3b8   : > { %v2919_v30 = vadd.f32 %v5655_v41, %v2912_v29  ;;  %v3748_v52 = vand.u32 4294901760, %v3747_v28  ;;  %v11156_v28 = vld [vmem:[#allocation8 + $0x58] sm:$0xff]  ;;  %v11186_v29 = vld [vmem:[#allocation8 + $0x68] sm:$0xff] }
 0x3b9   : > { %v3769_v41 = vand.u32 4294901760, %v3768_v27 }
 0x3ba   : > { %v2920_v35 = vmax.f32 %v2919_v30, 0.0  ;;  %v10993_v54 = vpack.c.bf16 %v3755_v50, %v3748_v52  ;;  %v12317_v52 = vld [vmem:[#allocation29_spill] sm:$0xff] }
 0x3bb   : > { %v11001_v15 = vpack.c.bf16 %v3769_v41, %v3762_v60  ;;  %v910_v50 = vadd.s32 8, %v12317_v52  ;;  %v9056_v60 = vld [vmem:[%s11956_s2] ss:$0 sm:$0xff] }
 0x3bc   : > { %2921 = vst [vmem:[%s10990_s9] sm:$0xff] %v2920_v35  ;;  %v12099_v35 = vand.u32 4294901760, %v11128_v9 }
 0x3bd   : > { %v3517_v38 = vadd.s32 7, %v910_v50 }
 0x3bf   : > { %vm3521_vm5 = vcmp.lt.s32.totalorder %v3517_v38, 16 }
 0x411   : > { %v7255_v27 = vpop.f32.mrb[20].mxu1 }
 0x412   : > { %v8944_v41 = vadd.f32 %v9056_v60, %v7255_v27  ;;  %v3502_v49 = vpop.f32.mrb[21].mxu1  ;;  %v11064_v27 = vld [vmem:[#allocation8 + $0x28] sm:$0xff] }
 0x413   : > { %v8945_v45 = vadd.f32 %v9056_v60, %v3502_v49  ;;  %v11062_v49 = vld [vmem:[#allocation8 + $0x20] sm:$0xff] }
 0x414   : > { %v3513_v23 = vmax.f32 %v8944_v41, 0.0 }
 0x415   : > { %v11023_v6 = vmax.f32 %v8945_v45, 0.0 }
 0x416   : > { %v3529_v20 = vsel %vm3521_vm5, %v3513_v23, 0.0 }
 0x417   : > { %v3565_v40 = vrot.slane %v3529_v20, 1  ;;  %v4867_v32 = vrot.slane %v3529_v20, 2  ;;  %v3564_v31 = vrot.slane %v11023_v6, 1  ;;  %v4866_v52 = vrot.slane %v11023_v6, 2  ;;  %v11060_v20 = vld [vmem:[#allocation8 + $0x18] sm:$0xff] }
 0x418   : > { %v12083_v41 = vand.u32 4294901760, %v11060_v20 }
 0x419   : > { %v3566_v50 = vsel %vm962_vm3, %v3564_v31, %v3565_v40  ;;  %v11029_v33 = vsel %vm2266_vm4, %v4866_v52, %v4867_v32  ;;  %v11046_v32 = vld [vmem:[#allocation8] sm:$0xff]  ;;  %v11048_v40 = vld [vmem:[#allocation8 + $0x8] sm:$0xff]  ;;  %v11084_v52 = vld [vmem:[#allocation8 + $0x30] sm:$0xff] }
 0x41a   : > { %12318 = vst [vmem:[#allocation31_spill] sm:$0xff] %v11029_v33  ;;  %v11031_v26 = vand.u32 4294901760, %v3566_v50  ;;  %v11100_v47 = vsub.f32 %v11060_v20, %v12083_v41  ;;  %v12092_v39 = vand.u32 4294901760, %v11084_v52 }
 0x41c   : > { %v11034_v38 = vsub.f32 %v3566_v50, %v11031_v26  ;;  %v11086_v50 = vld [vmem:[#allocation8 + $0x38] sm:$0xff] }
 0x41d   : > { %v12093_v7 = vand.u32 4294901760, %v11086_v50 }
 0x41e   : > { %v3651_v45 = vand.u32 4294901760, %v11034_v38 }
 0x420   : > { %7394 = vmatmul.mubr.f32.vlgmr.msra.gmra.mrb[22].mxu1 %v3651_v45  ;;  %v3652_v23 = vsub.f32 %v11034_v38, %v3651_v45 }
 0x421   : > { %8632 = vmatpush3.bf16.msra.mxu1 %v10821_v55  ;;  %7463 = vmatprep.mubr.msk.f32.mxu1 %vm9239_vm1, %v12177_v42  ;;  %v12091_v55 = vand.u32 4294901760, %v11046_v32 }
 0x422   : > { %8633 = vmatprep.subr.bf16.mxu1 %v12178_v37  ;;  %v3653_v31 = vand.u32 4294901760, %v3652_v23 }
 0x424   : > { %7289 = vmatmul.mubr.f32.vlgmr.msra.gmra.mrb[18].mxu0 %v3653_v31 }
 0x425   : > { %8536 = vmatpush3.bf16.msra.mxu0 %v10922_v4  ;;  %8635 = vmatpush3.bf16.msra.mxu1 %v10831_v12  ;;  %v12090_v4 = vand.u32 4294901760, %v11048_v40  ;;  %v11058_v12 = vld [vmem:[#allocation8 + $0x10] sm:$0xff] }
 0x426   : > { %8537 = vmatprep.subr.bf16.mxu0 %v12178_v37  ;;  %8636 = vmatprep.subr.bf16.mxu1 %v12178_v37  ;;  %v12085_v60 = vand.u32 4294901760, %v11058_v12 }
 0x427   : > { %7323 = vmatprep.mubr.msk.f32.mxu0 %vm9239_vm1, %v12177_v42 }
 0x428   : > { %v11095_v31 = vsub.f32 %v11058_v12, %v12085_v60  ;;  %v11126_v60 = vld [vmem:[#allocation8 + $0x40] sm:$0xff] }
 0x429   : > { %8539 = vmatpush3.bf16.msra.mxu0 %v10932_v0  ;;  %8638 = vmatpush3.bf16.msra.mxu1 %v10853_v1  ;;  %v11071_v1 = vsub.f32 %v11046_v32, %v12091_v55  ;;  %v11076_v0 = vsub.f32 %v11048_v40, %v12090_v4  ;;  %v12098_v5 = vand.u32 4294901760, %v11126_v60 }
 0x42a   : > { %8540 = vmatprep.subr.bf16.mxu0 %v12178_v37  ;;  %8639 = vmatprep.subr.bf16.mxu1 %v12178_v37  ;;  %v12095_v41 = vand.u32 4294901760, %v11095_v31 }
 0x42b   : > { %v12088_v45 = vand.u32 4294901760, %v11071_v1  ;;  %v12087_v23 = vand.u32 4294901760, %v11076_v0 }
 0x42d   : > { %8542 = vmatpush3.bf16.msra.mxu0 %v10942_v10  ;;  %8641 = vmatpush3.bf16.msra.mxu1 %v10859_v34  ;;  %v12082_v34 = vand.u32 4294901760, %v11062_v49  ;;  %v12084_v10 = vand.u32 4294901760, %v11064_v27  ;;  %v4304_v25 = vsub.f32 %v11071_v1, %v12088_v45  ;;  %v11142_v45 = vsub.f32 %v11086_v50, %v12093_v7  ;;  %v11154_v7 = vld [vmem:[#allocation8 + $0x50] sm:$0xff] }
 0x42e   : > { %8543 = vmatprep.subr.bf16.mxu0 %v12178_v37  ;;  %8642 = vmatprep.subr.bf16.mxu1 %v12178_v37 }
 0x42f   : > { %v4305_v4 = vand.u32 4294901760, %v4304_v25 }
 0x431   : > { %8545 = vmatpush3.bf16.msra.mxu0 %v10952_v18  ;;  %8644 = vmatpush3.bf16.msra.mxu1 %v10865_v24  ;;  %v11107_v24 = vsub.f32 %v11062_v49, %v12082_v34  ;;  %v11112_v18 = vsub.f32 %v11064_v27, %v12084_v10  ;;  %v4311_v34 = vsub.f32 %v11076_v0, %v12087_v23  ;;  %v12094_v10 = vand.u32 4294901760, %v11100_v47 }
 0x432   : > { %8546 = vmatprep.subr.bf16.mxu0 %v12178_v37  ;;  %8645 = vmatprep.subr.bf16.mxu1 %v12178_v37  ;;  %v11137_v23 = vsub.f32 %v11084_v52, %v12092_v39  ;;  %v4318_v39 = vsub.f32 %v11095_v31, %v12095_v41  ;;  %v11176_v41 = vsub.f32 %v11128_v9, %v12099_v35 }
 0x433   : > { %v4312_v55 = vand.u32 4294901760, %v4311_v34  ;;  %v4325_v17 = vsub.f32 %v11100_v47, %v12094_v10  ;;  %v12100_v34 = vand.u32 4294901760, %v11142_v45  ;;  %v11171_v10 = vsub.f32 %v11126_v60, %v12098_v5  ;;  %v11184_v5 = vld [vmem:[#allocation8 + $0x60] sm:$0xff] }
 0x434   : > { %12320 = vst [vmem:[#allocation33_spill] sm:$0xff] %v11176_v41  ;;  %v4319_v11 = vand.u32 4294901760, %v4318_v39 }
 0x435   : > { %8548 = vmatpush3.bf16.msra.mxu0 %v10967_v58  ;;  %8647 = vmatpush3.bf16.msra.mxu1 %v10882_v19  ;;  %v12096_v19 = vand.u32 4294901760, %v11107_v24  ;;  %v12097_v58 = vand.u32 4294901760, %v11112_v18  ;;  %12319 = vst [vmem:[#allocation32_spill] sm:$0xff] %v11171_v10  ;;  %v4326_v61 = vand.u32 4294901760, %v4325_v17 }
 0x436   : > { %8549 = vmatprep.subr.bf16.mxu0 %v12178_v37  ;;  %8648 = vmatprep.subr.bf16.mxu1 %v12178_v37 }
 0x437   : > { %v4339_v25 = vsub.f32 %v11112_v18, %v12097_v58  ;;  %v8679_v58 = vpack.c.bf16 %v4312_v55, %v4305_v4  ;;  %v12322_v55 = vand.u32 4294901760, %v11156_v28 }
 0x439   : > { %8551 = vmatpush3.bf16.msra.mxu0 %v10978_v21  ;;  %8650 = vmatpush3.bf16.msra.mxu1 %v10892_v56  ;;  %v4332_v56 = vsub.f32 %v11107_v24, %v12096_v19  ;;  %v12101_v21 = vand.u32 4294901760, %v11137_v23  ;;  %v12102_v19 = vand.u32 4294901760, %v11154_v7  ;;  %v4340_v48 = vand.u32 4294901760, %v4339_v25 }
 0x43a   : > { %8552 = vmatprep.subr.bf16.mxu0 %v12178_v37  ;;  %8651 = vmatprep.subr.bf16.mxu1 %v12178_v37  ;;  %v11205_v4 = vsub.f32 %v11156_v28, %v12322_v55 }
 0x43b   : > { %v4333_v35 = vand.u32 4294901760, %v4332_v56  ;;  %v4346_v30 = vsub.f32 %v11137_v23, %v12101_v21  ;;  %v11200_v17 = vsub.f32 %v11154_v7, %v12102_v19  ;;  %v8682_v56 = vpack.c.bf16 %v4326_v61, %v4319_v11  ;;  %v11212_v21 = vld [vmem:[#allocation8 + $0x70] sm:$0xff]  ;;  %v11214_v19 = vld [vmem:[#allocation8 + $0x78] sm:$0xff] }
 0x43c   : > { %12323 = vst [vmem:[#allocation30_spill] sm:$0xff] %v11205_v4  ;;  %v12325_v11 = vand.u32 4294901760, %v11176_v41 }
 0x43d   : > { %8554 = vmatpush3.bf16.msra.mxu0 %v10993_v54  ;;  %8653 = vmatpush3.bf16.msra.mxu1 %v10904_v36  ;;  %v4353_v36 = vsub.f32 %v11142_v45, %v12100_v34  ;;  %12321 = vst [vmem:[#allocation34_spill] sm:$0xff] %v11200_v17  ;;  %v8685_v54 = vpack.c.bf16 %v4340_v48, %v4333_v35  ;;  %v4347_v39 = vand.u32 4294901760, %v4346_v30  ;;  %v12327_v30 = vand.u32 4294901760, %v11184_v5 }
 0x43e   : > { %8555 = vmatprep.subr.bf16.mxu0 %v12178_v37  ;;  %8678 = vmatprep.subr.bf16.mxu1 %v12178_v37  ;;  %v12326_v48 = vpack.c.bf16 %v10825_v16, %v10823_v14  ;;  %v12329_v25 = vand.u32 4294901760, %v11200_v17  ;;  %v12331_v34 = vpack.c.bf16 %v10833_v44, %v10827_v59 }
 0x43f   : > { %v4354_v55 = vand.u32 4294901760, %v4353_v36  ;;  %v11233_v35 = vsub.f32 %v11184_v5, %v12327_v30  ;;  %v12328_v36 = vand.u32 4294901760, %v11186_v29 }
 0x440   : > { %7464 = vmatmul.mubr.f32.vlgmr.msra.gmra.mrb[24].mxu1 %v11031_v26  ;;  %v4374_v33 = vsub.f32 %v11200_v17, %v12329_v25  ;;  %v12333_v25 = vand.u32 4294901760, %v11214_v19 }
 0x441   : > { %8557 = vmatpush3.bf16.msra.mxu0 %v11001_v15  ;;  %8680 = vmatpush3.bf16.msra.mxu1 %v8679_v58  ;;  %v12324_v15 = vand.u32 4294901760, %v11171_v10  ;;  %v4367_v58 = vsub.f32 %v11176_v41, %v12325_v11 }
 0x442   : > { %8558 = vmatprep.subr.bf16.mxu0 %v12178_v37  ;;  %8681 = vmatprep.subr.bf16.mxu1 %v12178_v37  ;;  %v11265_v17 = vsub.f32 %v11214_v19, %v12333_v25 }
 0x443   : > { %7533 = vmatprep.mubr.msk.f32.mxu1 %vm9239_vm1, %v12177_v42  ;;  %v4360_v61 = vsub.f32 %v11171_v10, %v12324_v15  ;;  %v11238_v15 = vsub.f32 %v11186_v29, %v12328_v36  ;;  %v4368_v30 = vand.u32 4294901760, %v4367_v58  ;;  %v12330_v36 = vand.u32 4294901760, %v11205_v4 }
 0x444   : > { %7324 = vmatmul.mubr.f32.vlgmr.msra.gmra.mrb[20].mxu0 %v11031_v26  ;;  %v12117_v10 = vand.u32 4294901760, %v11265_v17 }
 0x445   : > { %8560 = vmatpush3.bf16.msra.mxu0 %v12326_v48  ;;  %8683 = vmatpush3.bf16.msra.mxu1 %v8682_v56  ;;  %v8688_v48 = vpack.c.bf16 %v4354_v55, %v4347_v39  ;;  %v4361_v56 = vand.u32 4294901760, %v4360_v61  ;;  %v4381_v11 = vsub.f32 %v11205_v4, %v12330_v36  ;;  %v12120_v39 = vand.u32 4294901760, %v11233_v35 }
 0x446   : > { %8561 = vmatprep.subr.bf16.mxu0 %v12178_v37  ;;  %8684 = vmatprep.subr.bf16.mxu1 %v12178_v37  ;;  %v12332_v61 = vand.u32 4294901760, %v11212_v21  ;;  %v12334_v55 = vpack.c.bf16 %v10839_v22, %v10835_v8  ;;  %v12335_v4 = vand.u32 4294901760, %v11238_v15 }
 0x447   : > { %7358 = vmatprep.mubr.msk.f32.mxu0 %vm9239_vm1, %v12177_v42  ;;  %v4382_v36 = vand.u32 4294901760, %v4381_v11  ;;  %v12336_v11 = vpack.c.bf16 %v10845_v57, %v10843_v43 }
 0x448   : > { %v11260_v58 = vsub.f32 %v11212_v21, %v12332_v61  ;;  %v4388_v61 = vsub.f32 %v11233_v35, %v12120_v39  ;;  %v4395_v25 = vsub.f32 %v11238_v15, %v12335_v4 }
 0x449   : > { %8563 = vmatpush3.bf16.msra.mxu0 %v12331_v34  ;;  %8686 = vmatpush3.bf16.msra.mxu1 %v8685_v54  ;;  %v8691_v34 = vpack.c.bf16 %v4368_v30, %v4361_v56  ;;  %v4375_v54 = vand.u32 4294901760, %v4374_v33  ;;  %v4409_v30 = vsub.f32 %v11265_v17, %v12117_v10 }
 0x44a   : > { %8564 = vmatprep.subr.bf16.mxu0 %v12178_v37  ;;  %8687 = vmatprep.subr.bf16.mxu1 %v12178_v37  ;;  %v12119_v41 = vand.u32 4294901760, %v11260_v58  ;;  %v4396_v56 = vand.u32 4294901760, %v4395_v25 }
 0x44b   : > { %v8694_v33 = vpack.c.bf16 %v4382_v36, %v4375_v54  ;;  %v4410_v36 = vand.u32 4294901760, %v4409_v30  ;;  %v12342_v30 = vpack.c.bf16 %v10900_v46, %v10898_v63 }
 0x44c   : > { %v4402_v4 = vsub.f32 %v11260_v58, %v12119_v41 }
 0x44d   : > { %8566 = vmatpush3.bf16.msra.mxu0 %v12334_v55  ;;  %8689 = vmatpush3.bf16.msra.mxu1 %v8688_v48  ;;  %v4389_v48 = vand.u32 4294901760, %v4388_v61  ;;  %v12337_v55 = vpack.c.bf16 %v10849_v2, %v10847_v13  ;;  %v12338_v61 = vpack.c.bf16 %v10886_v51, %v10884_v53 }
 0x44e   : > { %8567 = vmatprep.subr.bf16.mxu0 %v12178_v37  ;;  %8690 = vmatprep.subr.bf16.mxu1 %v12178_v37  ;;  %v4403_v54 = vand.u32 4294901760, %v4402_v4  ;;  %v11314_v4 = vand.u32 4294901760, %v11023_v6 }
 0x450   : > { %v8700_v25 = vpack.c.bf16 %v4410_v36, %v4403_v54  ;;  %v12346_v54 = vand.u32 4294901760, %v11060_v20  ;;  %v12349_v20 = vand.u32 4294901760, %v11062_v49  ;;  %v12353_v49 = vand.u32 4294901760, %v11084_v52 }
 0x451   : > { %8569 = vmatpush3.bf16.msra.mxu0 %v12336_v11  ;;  %8692 = vmatpush3.bf16.msra.mxu1 %v8691_v34  ;;  %v8697_v34 = vpack.c.bf16 %v4396_v56, %v4389_v48  ;;  %v12340_v11 = vand.u32 4294901760, %v11046_v32  ;;  %v12341_v48 = vand.u32 4294901760, %v11048_v40  ;;  %v12343_v32 = vand.u32 4294901760, %v10823_v14 }
 0x452   : > { %8570 = vmatprep.subr.bf16.mxu0 %v12178_v37  ;;  %8693 = vmatprep.subr.bf16.mxu1 %v12178_v37  ;;  %v12344_v40 = vand.u32 4294901760, %v10825_v16  ;;  %v12347_v14 = vand.u32 4294901760, %v10827_v59  ;;  %v12348_v16 = vand.u32 4294901760, %v10833_v44  ;;  %v12351_v59 = vand.u32 4294901760, %v10835_v8 }
 0x453   : > { %v11310_v56 = vpack.c.bf16 %v12341_v48, %v12340_v11  ;;  %v12352_v44 = vand.u32 4294901760, %v10839_v22  ;;  %v12355_v11 = vand.u32 4294901760, %v10843_v43  ;;  %v12356_v8 = vand.u32 4294901760, %v10845_v57 }
 0x454   : > { %v12357_v22 = vand.u32 4294901760, %v11126_v60  ;;  %v12358_v52 = vand.u32 4294901760, %v11128_v9  ;;  %v12360_v43 = vand.u32 4294901760, %v10849_v2  ;;  %v12361_v57 = vand.u32 4294901760, %v11154_v7 }
 0x455   : > { %8572 = vmatpush3.bf16.msra.mxu0 %v12337_v55  ;;  %8695 = vmatpush3.bf16.msra.mxu1 %v8694_v33  ;;  %v12339_v33 = vpack.c.bf16 %v10896_v3, %v10894_v62  ;;  %v8607_v55 = vpack.c.bf16 %v12344_v40, %v12343_v32  ;;  %v8616_v48 = vpack.c.bf16 %v12356_v8, %v12355_v11  ;;  %v12362_v60 = vand.u32 4294901760, %v11156_v28 }
 0x456   : > { %8573 = vmatprep.subr.bf16.mxu0 %v12178_v37  ;;  %8696 = vmatprep.subr.bf16.mxu1 %v12178_v37  ;;  %v12363_v9 = vand.u32 4294901760, %v10884_v53  ;;  %v12365_v2 = vand.u32 4294901760, %v11184_v5  ;;  %v12366_v7 = vand.u32 4294901760, %v11186_v29  ;;  %v12367_v28 = vand.u32 4294901760, %v10894_v62 }
 0x457   : > { %v11387_v40 = vpack.c.bf16 %v12362_v60, %v12361_v57  ;;  %v12368_v53 = vand.u32 4294901760, %v10896_v3  ;;  %v12370_v5 = vand.u32 4294901760, %v11214_v19  ;;  %v11419_v29 = vsub.f32 %v11023_v6, %v11314_v4 }
 0x458   : > { %v12371_v62 = vand.u32 4294901760, %v10898_v63  ;;  %v12372_v3 = vand.u32 4294901760, %v10900_v46  ;;  %v11441_v63 = vld [vmem:[#allocation8 + $0x100] sm:$0xff]  ;;  %v11443_v46 = vld [vmem:[#allocation8 + $0x108] sm:$0xff] }
 0x459   : > { %8575 = vmatpush3.bf16.msra.mxu0 %v12338_v61  ;;  %8698 = vmatpush3.bf16.msra.mxu1 %v8697_v34  ;;  %v12345_v34 = vand.u32 4294901760, %v11058_v12  ;;  %v8610_v12 = vpack.c.bf16 %v12348_v16, %v12347_v14  ;;  %v12350_v61 = vand.u32 4294901760, %v11064_v27  ;;  %v12354_v27 = vand.u32 4294901760, %v11086_v50  ;;  %v11455_v16 = vld [vmem:[#allocation8 + $0x118] sm:$0xff] }
 0x45a   : > { %8576 = vmatprep.subr.bf16.mxu0 %v12178_v37  ;;  %8699 = vmatprep.subr.bf16.mxu1 %v12178_v37  ;;  %v12359_v50 = vand.u32 4294901760, %v10847_v13  ;;  %v12364_v13 = vand.u32 4294901760, %v10886_v51  ;;  %v12369_v51 = vand.u32 4294901760, %v11212_v21  ;;  %v8628_v21 = vpack.c.bf16 %v12372_v3, %v12371_v62 }
 0x45b   : > { %v11330_v36 = vpack.c.bf16 %v12346_v54, %v12345_v34  ;;  %v11400_v34 = vpack.c.bf16 %v12366_v7, %v12365_v2  ;;  %v8625_v54 = vpack.c.bf16 %v12368_v53, %v12367_v28  ;;  %v4292_v19 = vand.u32 4294901760, %v11419_v29 }
 0x45c   : > { %v8619_v32 = vpack.c.bf16 %v12360_v43, %v12359_v50  ;;  %v11413_v14 = vpack.c.bf16 %v12370_v5, %v12369_v51  ;;  %v12133_v6 = vand.u32 4294901760, %v11443_v46 }
 0x45d   : > { %8578 = vmatpush3.bf16.msra.mxu0 %v12339_v33  ;;  %8701 = vmatpush3.bf16.msra.mxu1 %v8700_v25  ;;  %v11346_v25 = vpack.c.bf16 %v12350_v61, %v12349_v20  ;;  %v11361_v33 = vpack.c.bf16 %v12354_v27, %v12353_v49  ;;  %v11459_v20 = vld [vmem:[#allocation8 + $0x128] sm:$0xff]  ;;  %v11479_v49 = vld [vmem:[#allocation8 + $0x130] sm:$0xff]  ;;  %v11481_v27 = vld [vmem:[#allocation8 + $0x138] sm:$0xff] }
 0x45e   : > { %8579 = vmatprep.subr.bf16.mxu0 %v12178_v37  ;;  %8726 = vmatprep.subr.bf16.mxu1 %v12178_v37  ;;  %v11471_v61 = vsub.f32 %v11443_v46, %v12133_v6  ;;  %v12124_v50 = vand.u32 4294901760, %v11479_v49  ;;  %v12123_v43 = vand.u32 4294901760, %v11481_v27 }
 0x460   : > { %7534 = vmatmul.mubr.f32.vlgmr.msra.gmra.mrb[26].mxu1 %v11314_v4  ;;  %v12112_v8 = vand.u32 4294901760, %v11471_v61  ;;  %v11532_v7 = vsub.f32 %v11479_v49, %v12124_v50  ;;  %v11537_v28 = vsub.f32 %v11481_v27, %v12123_v43  ;;  %v11584_v43 = vld [vmem:[#allocation8 + $0x168] sm:$0xff] }
 0x461   : > { %8581 = vmatpush3.bf16.msra.mxu0 %v12342_v30  ;;  %8728 = vmatpush3.bf16.msra.mxu1 %v11310_v56  ;;  %v11374_v30 = vpack.c.bf16 %v12358_v52, %v12357_v22 }
 0x462   : > { %8606 = vmatprep.subr.bf16.mxu0 %v12178_v37  ;;  %8729 = vmatprep.subr.bf16.mxu1 %v12178_v37  ;;  %v4972_v57 = vsub.f32 %v11471_v61, %v12112_v8  ;;  %v11551_v8 = vld [vmem:[#allocation8 + $0x158] sm:$0xff] }
 0x463   : > { %7603 = vmatprep.mubr.msk.f32.mxu1 %vm9239_vm1, %v12177_v42  ;;  %v12130_v10 = vand.u32 4294901760, %v11551_v8 }
 0x464   : > { %7359 = vmatmul.mubr.f32.vlgmr.msra.gmra.mrb[22].mxu0 %v11034_v38  ;;  %v8613_v38 = vpack.c.bf16 %v12352_v44, %v12351_v59  ;;  %v12131_v44 = vand.u32 4294901760, %v11455_v16  ;;  %v4973_v5 = vand.u32 4294901760, %v4972_v57  ;;  %v12127_v57 = vand.u32 4294901760, %v11532_v7 }
 0x465   : > { %8608 = vmatpush3.bf16.msra.mxu0 %v8607_v55  ;;  %8731 = vmatpush3.bf16.msra.mxu1 %v11330_v36  ;;  %v8622_v55 = vpack.c.bf16 %v12364_v13, %v12363_v9  ;;  %v11521_v13 = vld [vmem:[#allocation8 + $0x140] sm:$0xff] }
 0x466   : > { %8609 = vmatprep.subr.bf16.mxu0 %v12178_v37  ;;  %8732 = vmatprep.subr.bf16.mxu1 %v12178_v37  ;;  %v11495_v22 = vsub.f32 %v11455_v16, %v12131_v44  ;;  %v12122_v53 = vand.u32 4294901760, %v11521_v13 }
 0x467   : > { %7428 = vmatprep.mubr.msk.f32.mxu0 %vm9239_vm1, %v12177_v42 }
 0x468   : > { %v12113_v9 = vand.u32 4294901760, %v11495_v22 }
 0x469   : > { %8611 = vmatpush3.bf16.msra.mxu0 %v8610_v12  ;;  %8734 = vmatpush3.bf16.msra.mxu1 %v11346_v25  ;;  %v11457_v12 = vld [vmem:[#allocation8 + $0x120] sm:$0xff] }
 0x46a   : > { %8612 = vmatprep.subr.bf16.mxu0 %v12178_v37  ;;  %8735 = vmatprep.subr.bf16.mxu1 %v12178_v37  ;;  %v4986_v3 = vsub.f32 %v11495_v22, %v12113_v9  ;;  %v12126_v9 = vand.u32 4294901760, %v11537_v28 }
 0x46c   : > { %v4987_v39 = vand.u32 4294901760, %v4986_v3  ;;  %v11603_v3 = vsub.f32 %v11551_v8, %v12130_v10  ;;  %v11614_v10 = vld [vmem:[#allocation8 + $0x178] sm:$0xff] }
 0x46d   : > { %8614 = vmatpush3.bf16.msra.mxu0 %v8613_v38  ;;  %8737 = vmatpush3.bf16.msra.mxu1 %v11361_v33  ;;  %v12125_v38 = vand.u32 4294901760, %v11459_v20 }
 0x46e   : > { %8615 = vmatprep.subr.bf16.mxu0 %v12178_v37  ;;  %8738 = vmatprep.subr.bf16.mxu1 %v12178_v37  ;;  %v12139_v6 = vand.u32 4294901760, %v11603_v3 }
 0x46f   : > { %v11507_v52 = vsub.f32 %v11459_v20, %v12125_v38 }
 0x471   : > { %8617 = vmatpush3.bf16.msra.mxu0 %v8616_v48  ;;  %8740 = vmatpush3.bf16.msra.mxu1 %v11374_v30  ;;  %v12118_v2 = vand.u32 4294901760, %v11507_v52 }
 0x472   : > { %8618 = vmatprep.subr.bf16.mxu0 %v12178_v37  ;;  %8741 = vmatprep.subr.bf16.mxu1 %v12178_v37 }
 0x475   : > { %8620 = vmatpush3.bf16.msra.mxu0 %v8619_v32  ;;  %8743 = vmatpush3.bf16.msra.mxu1 %v11387_v40 }
 0x476   : > { %8621 = vmatprep.subr.bf16.mxu0 %v12178_v37  ;;  %8744 = vmatprep.subr.bf16.mxu1 %v12178_v37 }
 0x479   : > { %8623 = vmatpush3.bf16.msra.mxu0 %v8622_v55  ;;  %8746 = vmatpush3.bf16.msra.mxu1 %v11400_v34  ;;  %v11523_v55 = vld [vmem:[#allocation8 + $0x148] sm:$0xff] }
 0x47a   : > { %8624 = vmatprep.subr.bf16.mxu0 %v12178_v37  ;;  %8747 = vmatprep.subr.bf16.mxu1 %v12178_v37 }
 0x47d   : > { %8626 = vmatpush3.bf16.msra.mxu0 %v8625_v54  ;;  %8749 = vmatpush3.bf16.msra.mxu1 %v11413_v14  ;;  %v12121_v54 = vand.u32 4294901760, %v11523_v55 }
 0x47e   : > { %8627 = vmatprep.subr.bf16.mxu0 %v12178_v37  ;;  %8774 = vmatprep.subr.bf16.mxu1 %v12178_v37 }
 0x480   : > { %7604 = vmatmul.mubr.f32.vlgmr.msra.gmra.mrb[28].mxu1 %v4292_v19 }
 0x481   : > { %8629 = vmatpush3.bf16.msra.mxu0 %v8628_v21  ;;  %8776 = vmatpush3.bf16.msra.mxu1 %v11310_v56  ;;  %v11549_v21 = vld [vmem:[#allocation8 + $0x150] sm:$0xff] }
 0x482   : > { %8654 = vmatprep.subr.bf16.mxu0 %v12178_v37  ;;  %8777 = vmatprep.subr.bf16.mxu1 %v12178_v37 }
 0x483   : > { %7673 = vmatprep.mubr.msk.f32.mxu1 %vm9239_vm1, %v12177_v42 }
 0x484   : > { %7429 = vmatmul.mubr.f32.vlgmr.msra.gmra.mrb[24].mxu0 %v11031_v26  ;;  %v12138_v26 = vand.u32 4294901760, %v11441_v63 }
 0x485   : > { %8656 = vmatpush3.bf16.msra.mxu0 %v11310_v56  ;;  %8779 = vmatpush3.bf16.msra.mxu1 %v11330_v36  ;;  %v11453_v56 = vld [vmem:[#allocation8 + $0x110] sm:$0xff] }
 0x486   : > { %8657 = vmatprep.subr.bf16.mxu0 %v12178_v37  ;;  %8780 = vmatprep.subr.bf16.mxu1 %v12178_v37  ;;  %v12132_v59 = vand.u32 4294901760, %v11453_v56 }
 0x487   : > { %7498 = vmatprep.mubr.msk.f32.mxu0 %vm9239_vm1, %v12177_v42 }
 0x488   : > { %v11490_v48 = vsub.f32 %v11453_v56, %v12132_v59 }
 0x489   : > { %8659 = vmatpush3.bf16.msra.mxu0 %v11330_v36  ;;  %8782 = vmatpush3.bf16.msra.mxu1 %v11346_v25  ;;  %v11466_v36 = vsub.f32 %v11441_v63, %v12138_v26 }
 0x48a   : > { %8660 = vmatprep.subr.bf16.mxu0 %v12178_v37  ;;  %8783 = vmatprep.subr.bf16.mxu1 %v12178_v37  ;;  %v12114_v60 = vand.u32 4294901760, %v11490_v48 }
 0x48b   : > { %v12115_v11 = vand.u32 4294901760, %v11466_v36 }
 0x48c   : > { %v4979_v62 = vsub.f32 %v11490_v48, %v12114_v60  ;;  %v11566_v60 = vsub.f32 %v11521_v13, %v12122_v53  ;;  %v11582_v53 = vld [vmem:[#allocation8 + $0x160] sm:$0xff] }
 0x48d   : > { %8662 = vmatpush3.bf16.msra.mxu0 %v11346_v25  ;;  %8785 = vmatpush3.bf16.msra.mxu1 %v11361_v33  ;;  %v12128_v25 = vand.u32 4294901760, %v11457_v12  ;;  %v4965_v32 = vsub.f32 %v11466_v36, %v12115_v11  ;;  %v11571_v11 = vsub.f32 %v11523_v55, %v12121_v54  ;;  %v4293_v54 = vsub.f32 %v11419_v29, %v4292_v19 }
 0x48e   : > { %8663 = vmatprep.subr.bf16.mxu0 %v12178_v37  ;;  %8786 = vmatprep.subr.bf16.mxu1 %v12178_v37  ;;  %v4980_v41 = vand.u32 4294901760, %v4979_v62 }
 0x48f   : > { %v4966_v51 = vand.u32 4294901760, %v4965_v32  ;;  %v5000_v32 = vsub.f32 %v11507_v52, %v12118_v2  ;;  %v12134_v19 = vand.u32 4294901760, %v11571_v11 }
 0x491   : > { %8665 = vmatpush3.bf16.msra.mxu0 %v11361_v33  ;;  %8788 = vmatpush3.bf16.msra.mxu1 %v11374_v30  ;;  %v11502_v33 = vsub.f32 %v11457_v12, %v12128_v25  ;;  %v8823_v2 = vpack.c.bf16 %v4973_v5, %v4966_v51  ;;  %v5001_v38 = vand.u32 4294901760, %v5000_v32  ;;  %v5014_v51 = vsub.f32 %v11537_v28, %v12126_v9 }
 0x492   : > { %8666 = vmatprep.subr.bf16.mxu0 %v12178_v37  ;;  %8789 = vmatprep.subr.bf16.mxu1 %v12178_v37  ;;  %v12135_v5 = vand.u32 4294901760, %v11566_v60  ;;  %v8826_v32 = vpack.c.bf16 %v4987_v39, %v4980_v41  ;;  %v12137_v9 = vand.u32 4294901760, %v11582_v53  ;;  %v4294_v25 = vand.u32 4294901760, %v4293_v54 }
 0x493   : > { %v5015_v59 = vand.u32 4294901760, %v5014_v51  ;;  %v5028_v39 = vsub.f32 %v11571_v11, %v12134_v19  ;;  %v8709_v51 = vpack.c.bf16 %v11112_v18, %v11107_v24 }
 0x494   : > { %v5021_v41 = vsub.f32 %v11566_v60, %v12135_v5 }
 0x495   : > { %8668 = vmatpush3.bf16.msra.mxu0 %v11374_v30  ;;  %8791 = vmatpush3.bf16.msra.mxu1 %v11387_v40  ;;  %v12116_v30 = vand.u32 4294901760, %v11502_v33  ;;  %v5029_v19 = vand.u32 4294901760, %v5028_v39 }
 0x496   : > { %8669 = vmatprep.subr.bf16.mxu0 %v12178_v37  ;;  %8792 = vmatprep.subr.bf16.mxu1 %v12178_v37 }
 0x499   : > { %8671 = vmatpush3.bf16.msra.mxu0 %v11387_v40  ;;  %8794 = vmatpush3.bf16.msra.mxu1 %v11400_v34  ;;  %v4993_v40 = vsub.f32 %v11502_v33, %v12116_v30  ;;  %v12129_v30 = vand.u32 4294901760, %v11549_v21 }
 0x49a   : > { %8672 = vmatprep.subr.bf16.mxu0 %v12178_v37  ;;  %8795 = vmatprep.subr.bf16.mxu1 %v12178_v37 }
 0x49b   : > { %v4994_v50 = vand.u32 4294901760, %v4993_v40  ;;  %v11598_v62 = vsub.f32 %v11549_v21, %v12129_v30  ;;  %v8703_v40 = vpack.c.bf16 %v11076_v0, %v11071_v1  ;;  %v11612_v30 = vld [vmem:[#allocation8 + $0x170] sm:$0xff] }
 0x49d   : > { %8674 = vmatpush3.bf16.msra.mxu0 %v11400_v34  ;;  %8797 = vmatpush3.bf16.msra.mxu1 %v11413_v14  ;;  %v5007_v34 = vsub.f32 %v11532_v7, %v12127_v57  ;;  %v12136_v57 = vand.u32 4294901760, %v11584_v43  ;;  %v12140_v54 = vand.u32 4294901760, %v11598_v62 }
 0x49e   : > { %8675 = vmatprep.subr.bf16.mxu0 %v12178_v37  ;;  %8822 = vmatprep.subr.bf16.mxu1 %v12178_v37 }
 0x49f   : > { %v5008_v44 = vand.u32 4294901760, %v5007_v34  ;;  %v12141_v34 = vand.u32 4294901760, %v11614_v10  ;;  %v5035_v5 = vsub.f32 %v11598_v62, %v12140_v54 }
 0x4a0   : > { %7674 = vmatmul.mubr.f32.vlgmr.msra.gmra.mrb[30].mxu1 %v11314_v4 }
 0x4a1   : > { %8677 = vmatpush3.bf16.msra.mxu0 %v11413_v14  ;;  %8824 = vmatpush3.bf16.msra.mxu1 %v8823_v2  ;;  %v8706_v14 = vpack.c.bf16 %v11100_v47, %v11095_v31  ;;  %v8829_v2 = vpack.c.bf16 %v5001_v38, %v4994_v50  ;;  %v11631_v38 = vsub.f32 %v11582_v53, %v12137_v9  ;;  %v12142_v50 = vand.u32 4294901760, %v11612_v30 }
 0x4a2   : > { %8702 = vmatprep.subr.bf16.mxu0 %v12178_v37  ;;  %8825 = vmatprep.subr.bf16.mxu1 %v12178_v37 }
 0x4a3   : > { %7743 = vmatprep.mubr.msk.f32.mxu1 %vm9239_vm1, %v12177_v42  ;;  %v12144_v9 = vand.u32 4294901760, %v11631_v38 }
 0x4a4   : > { %7499 = vmatmul.mubr.f32.vlgmr.msra.gmra.mrb[26].mxu0 %v4294_v25  ;;  %v11636_v25 = vsub.f32 %v11584_v43, %v12136_v57  ;;  %v5042_v57 = vsub.f32 %v11603_v3, %v12139_v6 }
 0x4a5   : > { %8704 = vmatpush3.bf16.msra.mxu0 %v8703_v40  ;;  %8827 = vmatpush3.bf16.msra.mxu1 %v8826_v32  ;;  %v8832_v40 = vpack.c.bf16 %v5015_v59, %v5008_v44  ;;  %v5022_v32 = vand.u32 4294901760, %v5021_v41  ;;  %v11657_v59 = vsub.f32 %v11612_v30, %v12142_v50  ;;  %v11662_v44 = vsub.f32 %v11614_v10, %v12141_v34 }
 0x4a6   : > { %12373 = vst [vmem:[#allocation35_spill] sm:$0xff] %v11636_v25  ;;  %8705 = vmatprep.subr.bf16.mxu0 %v12178_v37  ;;  %8828 = vmatprep.subr.bf16.mxu1 %v12178_v37  ;;  %v12143_v26 = vand.u32 4294901760, %v11636_v25  ;;  %v5036_v41 = vand.u32 4294901760, %v5035_v5  ;;  %v5043_v39 = vand.u32 4294901760, %v5042_v57  ;;  %v5049_v6 = vsub.f32 %v11631_v38, %v12144_v9  ;;  %v12374_v5 = vld [vmem:[#allocation32_spill] sm:$0xff]  ;;  %v12375_v57 = vld [vmem:[#allocation33_spill] sm:$0xff] }
 0x4a7   : > { %7568 = vmatprep.mubr.msk.f32.mxu0 %vm9239_vm1, %v12177_v42  ;;  %v5062_v34 = vand.u32 4294901760, %v11657_v59  ;;  %v12147_v50 = vand.u32 4294901760, %v11662_v44 }
 0x4a8   : > { %v5056_v54 = vsub.f32 %v11636_v25, %v12143_v26  ;;  %v12376_v25 = vld [vmem:[#allocation34_spill] sm:$0xff] }
 0x4a9   : > { %8707 = vmatpush3.bf16.msra.mxu0 %v8706_v14  ;;  %8830 = vmatpush3.bf16.msra.mxu1 %v8829_v2  ;;  %v8712_v14 = vpack.c.bf16 %v11142_v45, %v11137_v23  ;;  %v8835_v2 = vpack.c.bf16 %v5029_v19, %v5022_v32  ;;  %v8715_v19 = vpack.c.bf16 %v12375_v57, %v12374_v5 }
 0x4aa   : > { %8708 = vmatprep.subr.bf16.mxu0 %v12178_v37  ;;  %8831 = vmatprep.subr.bf16.mxu1 %v12178_v37  ;;  %v5057_v32 = vand.u32 4294901760, %v5056_v54  ;;  %v5063_v26 = vsub.f32 %v11657_v59, %v5062_v34  ;;  %v5070_v9 = vsub.f32 %v11662_v44, %v12147_v50 }
 0x4ac   : > { %v5071_v54 = vand.u32 4294901760, %v5070_v9  ;;  %v12378_v9 = vand.u32 4294901760, %v11441_v63  ;;  %v12382_v63 = vand.u32 4294901760, %v11076_v0  ;;  %v12386_v0 = vand.u32 4294901760, %v11100_v47 }
 0x4ad   : > { %8710 = vmatpush3.bf16.msra.mxu0 %v8709_v51  ;;  %8833 = vmatpush3.bf16.msra.mxu1 %v8832_v40  ;;  %v8838_v51 = vpack.c.bf16 %v5043_v39, %v5036_v41  ;;  %v5050_v40 = vand.u32 4294901760, %v5049_v6  ;;  %v12377_v41 = vld [vmem:[#allocation30_spill] sm:$0xff]  ;;  %v5064_v6 = vand.u32 4294901760, %v5063_v26  ;;  %v8721_v39 = vpack.c.bf16 %v11238_v15, %v11233_v35 }
 0x4ae   : > { %8711 = vmatprep.subr.bf16.mxu0 %v12178_v37  ;;  %8834 = vmatprep.subr.bf16.mxu1 %v12178_v37  ;;  %v8724_v26 = vpack.c.bf16 %v11265_v17, %v11260_v58 }
 0x4af   : > { %v8844_v50 = vpack.c.bf16 %v5071_v54, %v5064_v6 }
 0x4b1   : > { %8713 = vmatpush3.bf16.msra.mxu0 %v8712_v14  ;;  %8836 = vmatpush3.bf16.msra.mxu1 %v8835_v2  ;;  %v8718_v14 = vpack.c.bf16 %v12377_v41, %v12376_v25  ;;  %v8841_v2 = vpack.c.bf16 %v5057_v32, %v5050_v40  ;;  %v12380_v40 = vld [vmem:[#allocation31_spill] sm:$0xff] }
 0x4b2   : > { %8714 = vmatprep.subr.bf16.mxu0 %v12178_v37  ;;  %8837 = vmatprep.subr.bf16.mxu1 %v12178_v37  ;;  %v11706_v32 = vand.u32 4294901760, %v12380_v40 }
 0x4b5   : > { %8716 = vmatpush3.bf16.msra.mxu0 %v8715_v19  ;;  %8839 = vmatpush3.bf16.msra.mxu1 %v8838_v51  ;;  %v12379_v19 = vand.u32 4294901760, %v11443_v46  ;;  %v12383_v46 = vand.u32 4294901760, %v11453_v56  ;;  %v12387_v56 = vand.u32 4294901760, %v11457_v12  ;;  %v12392_v12 = vand.u32 4294901760, %v11481_v27 }
 0x4b6   : > { %8717 = vmatprep.subr.bf16.mxu0 %v12178_v37  ;;  %8840 = vmatprep.subr.bf16.mxu1 %v12178_v37  ;;  %v12398_v27 = vand.u32 4294901760, %v12375_v57  ;;  %v12404_v57 = vand.u32 4294901760, %v11584_v43  ;;  %v11786_v43 = vsub.f32 %v12380_v40, %v11706_v32  ;;  %v8847_v40 = vpack.c.bf16 %v11471_v61, %v11466_v36 }
 0x4b7   : > { %v11702_v51 = vpack.c.bf16 %v12379_v19, %v12378_v9  ;;  %v12393_v9 = vand.u32 4294901760, %v11137_v23  ;;  %v12394_v19 = vand.u32 4294901760, %v11142_v45  ;;  %v12399_v23 = vand.u32 4294901760, %v11549_v21 }
 0x4b8   : > { %v12400_v45 = vand.u32 4294901760, %v11551_v8  ;;  %v12405_v8 = vand.u32 4294901760, %v11233_v35  ;;  %v12406_v21 = vand.u32 4294901760, %v11238_v15  ;;  %v12409_v35 = vand.u32 4294901760, %v11260_v58 }
 0x4b9   : > { %8719 = vmatpush3.bf16.msra.mxu0 %v8718_v14  ;;  %8842 = vmatpush3.bf16.msra.mxu1 %v8841_v2  ;;  %v12384_v2 = vand.u32 4294901760, %v11455_v16  ;;  %v12388_v16 = vand.u32 4294901760, %v11459_v20  ;;  %v12410_v15 = vand.u32 4294901760, %v11265_v17 }
 0x4ba   : > { %8720 = vmatprep.subr.bf16.mxu0 %v12178_v37  ;;  %8843 = vmatprep.subr.bf16.mxu1 %v12178_v37 }
 0x4bb   : > { %v8802_v6 = vpack.c.bf16 %v12384_v2, %v12383_v46  ;;  %v8814_v46 = vpack.c.bf16 %v12400_v45, %v12399_v23 }
 0x4bd   : > { %8722 = vmatpush3.bf16.msra.mxu0 %v8721_v39  ;;  %8845 = vmatpush3.bf16.msra.mxu1 %v8844_v50  ;;  %v12381_v50 = vand.u32 4294901760, %v11071_v1  ;;  %v12385_v1 = vand.u32 4294901760, %v11095_v31  ;;  %v8805_v39 = vpack.c.bf16 %v12388_v16, %v12387_v56  ;;  %v12390_v31 = vand.u32 4294901760, %v11112_v18 }
 0x4be   : > { %8723 = vmatprep.subr.bf16.mxu0 %v12178_v37  ;;  %8870 = vmatprep.subr.bf16.mxu1 %v12178_v37  ;;  %v12396_v18 = vand.u32 4294901760, %v11523_v55  ;;  %v12402_v55 = vand.u32 4294901760, %v12377_v41  ;;  %v12408_v41 = vand.u32 4294901760, %v11614_v10  ;;  %v4953_v10 = vand.u32 4294901760, %v11786_v43 }
 0x4bf   : > { %v8751_v14 = vpack.c.bf16 %v12382_v63, %v12381_v50  ;;  %v8754_v54 = vpack.c.bf16 %v12386_v0, %v12385_v1  ;;  %v8760_v50 = vpack.c.bf16 %v12394_v19, %v12393_v9  ;;  %v8769_v0 = vpack.c.bf16 %v12406_v21, %v12405_v8  ;;  %v12411_v19 = vld [vmem:[#allocation35_spill] sm:$0xff] }
 0x4c0   : > { %7744 = vmatmul.mubr.f32.vlgmr.msra.gmra.mrb[32].mxu1 %v11706_v32  ;;  %v8850_v56 = vpack.c.bf16 %v11495_v22, %v11490_v48  ;;  %v8853_v16 = vpack.c.bf16 %v11507_v52, %v11502_v33 }
 0x4c1   : > { %8725 = vmatpush3.bf16.msra.mxu0 %v8724_v26  ;;  %8872 = vmatpush3.bf16.msra.mxu1 %v11702_v51  ;;  %v12391_v26 = vand.u32 4294901760, %v11479_v49  ;;  %v12397_v49 = vand.u32 4294901760, %v12374_v5  ;;  %v12403_v5 = vand.u32 4294901760, %v11582_v53  ;;  %v8772_v53 = vpack.c.bf16 %v12410_v15, %v12409_v35 }
 0x4c2   : > { %8750 = vmatprep.subr.bf16.mxu0 %v12178_v37  ;;  %8873 = vmatprep.subr.bf16.mxu1 %v12178_v37 }
 0x4c3   : > { %7813 = vmatprep.mubr.msk.f32.mxu1 %vm9239_vm1, %v12177_v42  ;;  %v8808_v20 = vpack.c.bf16 %v12392_v12, %v12391_v26  ;;  %v8817_v1 = vpack.c.bf16 %v12404_v57, %v12403_v5  ;;  %v8862_v26 = vpack.c.bf16 %v11603_v3, %v11598_v62 }
 0x4c4   : > { %7569 = vmatmul.mubr.f32.vlgmr.msra.gmra.mrb[28].mxu0 %v11419_v29  ;;  %v12389_v29 = vand.u32 4294901760, %v11107_v24  ;;  %v12395_v24 = vand.u32 4294901760, %v11521_v13  ;;  %v12401_v13 = vand.u32 4294901760, %v12376_v25  ;;  %v12407_v25 = vand.u32 4294901760, %v11612_v30 }
 0x4c5   : > { %8752 = vmatpush3.bf16.msra.mxu0 %v8751_v14  ;;  %8875 = vmatpush3.bf16.msra.mxu1 %v8802_v6  ;;  %v8763_v14 = vpack.c.bf16 %v12398_v27, %v12397_v49  ;;  %v12414_v27 = vand.u32 4294901760, %v11490_v48  ;;  %v12419_v48 = vand.u32 4294901760, %v11537_v28 }
 0x4c6   : > { %8753 = vmatprep.subr.bf16.mxu0 %v12178_v37  ;;  %8876 = vmatprep.subr.bf16.mxu1 %v12178_v37  ;;  %v8757_v47 = vpack.c.bf16 %v12390_v31, %v12389_v29  ;;  %v8811_v63 = vpack.c.bf16 %v12396_v18, %v12395_v24  ;;  %v8766_v2 = vpack.c.bf16 %v12402_v55, %v12401_v13  ;;  %v12412_v18 = vand.u32 4294901760, %v11466_v36 }
 0x4c7   : > { %7638 = vmatprep.mubr.msk.f32.mxu0 %vm9239_vm1, %v12177_v42  ;;  %v8859_v29 = vpack.c.bf16 %v11571_v11, %v11566_v60  ;;  %v8868_v24 = vpack.c.bf16 %v11662_v44, %v11657_v59  ;;  %v12416_v36 = vand.u32 4294901760, %v11502_v33  ;;  %v12421_v13 = vand.u32 4294901760, %v11571_v11 }
 0x4c8   : > { %v12425_v11 = vand.u32 4294901760, %v12411_v19 }
 0x4c9   : > { %8755 = vmatpush3.bf16.msra.mxu0 %v8754_v54  ;;  %8878 = vmatpush3.bf16.msra.mxu1 %v8805_v39  ;;  %v8820_v54 = vpack.c.bf16 %v12408_v41, %v12407_v25 }
 0x4ca   : > { %8756 = vmatprep.subr.bf16.mxu0 %v12178_v37  ;;  %8879 = vmatprep.subr.bf16.mxu1 %v12178_v37 }
 0x4cd   : > { %8758 = vmatpush3.bf16.msra.mxu0 %v8757_v47  ;;  %8881 = vmatpush3.bf16.msra.mxu1 %v8808_v20 }
 0x4ce   : > { %8759 = vmatprep.subr.bf16.mxu0 %v12178_v37  ;;  %8882 = vmatprep.subr.bf16.mxu1 %v12178_v37 }
 0x4d1   : > { %8761 = vmatpush3.bf16.msra.mxu0 %v8760_v50  ;;  %8884 = vmatpush3.bf16.msra.mxu1 %v8811_v63  ;;  %v8865_v50 = vpack.c.bf16 %v12411_v19, %v11631_v38 }
 0x4d2   : > { %8762 = vmatprep.subr.bf16.mxu0 %v12178_v37  ;;  %8885 = vmatprep.subr.bf16.mxu1 %v12178_v37 }
 0x4d5   : > { %8764 = vmatpush3.bf16.msra.mxu0 %v8763_v14  ;;  %8887 = vmatpush3.bf16.msra.mxu1 %v8814_v46  ;;  %v12415_v14 = vand.u32 4294901760, %v11495_v22 }
 0x4d6   : > { %8765 = vmatprep.subr.bf16.mxu0 %v12178_v37  ;;  %8888 = vmatprep.subr.bf16.mxu1 %v12178_v37 }
 0x4d7   : > { %v8898_v23 = vpack.c.bf16 %v12415_v14, %v12414_v27  ;;  %v9057_v27 = vld [vmem:[%s11958_s4] ss:$0 sm:$0xff] }
 0x4d9   : > { %8767 = vmatpush3.bf16.msra.mxu0 %v8766_v2  ;;  %8890 = vmatpush3.bf16.msra.mxu1 %v8817_v1  ;;  %v12422_v2 = vand.u32 4294901760, %v11598_v62  ;;  %v12426_v62 = vand.u32 4294901760, %v11662_v44 }
 0x4da   : > { %8768 = vmatprep.subr.bf16.mxu0 %v12178_v37  ;;  %8891 = vmatprep.subr.bf16.mxu1 %v12178_v37 }
 0x4dd   : > { %8770 = vmatpush3.bf16.msra.mxu0 %v8769_v0  ;;  %8893 = vmatpush3.bf16.msra.mxu1 %v8820_v54 }
 0x4de   : > { %8771 = vmatprep.subr.bf16.mxu0 %v12178_v37  ;;  %8918 = vmatprep.subr.bf16.mxu1 %v12178_v37 }
 0x4e0   : > { %7814 = vmatmul.mubr.f32.vlgmr.msra.gmra.mrb[34].mxu1 %v4953_v10 }
 0x4e1   : > { %8773 = vmatpush3.bf16.msra.mxu0 %v8772_v53  ;;  %8920 = vmatpush3.bf16.msra.mxu1 %v11702_v51 }
 0x4e2   : > { %8798 = vmatprep.subr.bf16.mxu0 %v12178_v37  ;;  %8921 = vmatprep.subr.bf16.mxu1 %v12178_v37 }
 0x4e3   : > { %7883 = vmatprep.mubr.msk.f32.mxu1 %vm9239_vm1, %v12177_v42 }
 0x4e4   : > { %7639 = vmatmul.mubr.f32.vlgmr.msra.gmra.mrb[30].mxu0 %v11314_v4 }
 0x4e5   : > { %8800 = vmatpush3.bf16.msra.mxu0 %v11702_v51  ;;  %8923 = vmatpush3.bf16.msra.mxu1 %v8802_v6  ;;  %v4954_v51 = vsub.f32 %v11786_v43, %v4953_v10 }
 0x4e6   : > { %8801 = vmatprep.subr.bf16.mxu0 %v12178_v37  ;;  %8924 = vmatprep.subr.bf16.mxu1 %v12178_v37 }
 0x4e7   : > { %7708 = vmatprep.mubr.msk.f32.mxu0 %vm9239_vm1, %v12177_v42 }
 0x4e9   : > { %8803 = vmatpush3.bf16.msra.mxu0 %v8802_v6  ;;  %8926 = vmatpush3.bf16.msra.mxu1 %v8805_v39  ;;  %v4955_v6 = vand.u32 4294901760, %v4954_v51 }
 0x4ea   : > { %8804 = vmatprep.subr.bf16.mxu0 %v12178_v37  ;;  %8927 = vmatprep.subr.bf16.mxu1 %v12178_v37 }
 0x4ed   : > { %8806 = vmatpush3.bf16.msra.mxu0 %v8805_v39  ;;  %8929 = vmatpush3.bf16.msra.mxu1 %v8808_v20  ;;  %v8856_v39 = vpack.c.bf16 %v11537_v28, %v11532_v7 }
 0x4ee   : > { %8807 = vmatprep.subr.bf16.mxu0 %v12178_v37  ;;  %8930 = vmatprep.subr.bf16.mxu1 %v12178_v37 }
 0x4f1   : > { %8809 = vmatpush3.bf16.msra.mxu0 %v8808_v20  ;;  %8932 = vmatpush3.bf16.msra.mxu1 %v8811_v63 }
 0x4f2   : > { %8810 = vmatprep.subr.bf16.mxu0 %v12178_v37  ;;  %8933 = vmatprep.subr.bf16.mxu1 %v12178_v37 }
 0x4f3   : > { %v11814_v17 = vpop.f32.mrb[22].mxu1 }
 0x4f4   : > { %v7395_v58 = vpop.f32.mrb[23].mxu1 }
 0x4f5   : > { %8812 = vmatpush3.bf16.msra.mxu0 %v8811_v63  ;;  %8935 = vmatpush3.bf16.msra.mxu1 %v8814_v46  ;;  %v12413_v63 = vand.u32 4294901760, %v11471_v61  ;;  %v12417_v61 = vand.u32 4294901760, %v11507_v52 }
 0x4f6   : > { %8813 = vmatprep.subr.bf16.mxu0 %v12178_v37  ;;  %8936 = vmatprep.subr.bf16.mxu1 %v12178_v37 }
 0x4f7   : > { %v3655_v4 = vpop.f32.mrb[18].mxu0  ;;  %v8895_v49 = vpack.c.bf16 %v12413_v63, %v12412_v18  ;;  %v8901_v45 = vpack.c.bf16 %v12417_v61, %v12416_v36 }
 0x4f8   : > { %v7290_v30 = vpop.f32.mrb[19].mxu0 }
 0x4f9   : > { %8815 = vmatpush3.bf16.msra.mxu0 %v8814_v46  ;;  %8938 = vmatpush3.bf16.msra.mxu1 %v8817_v1  ;;  %v12418_v46 = vand.u32 4294901760, %v11532_v7  ;;  %v12423_v7 = vand.u32 4294901760, %v11603_v3  ;;  %v8916_v3 = vpack.c.bf16 %v12426_v62, %v5062_v34 }
 0x4fa   : > { %8816 = vmatprep.subr.bf16.mxu0 %v12178_v37  ;;  %8939 = vmatprep.subr.bf16.mxu1 %v12178_v37 }
 0x4fb   : > { %v8904_v22 = vpack.c.bf16 %v12419_v48, %v12418_v46  ;;  %v8910_v5 = vpack.c.bf16 %v12423_v7, %v12422_v2 }
 0x4fd   : > { %8818 = vmatpush3.bf16.msra.mxu0 %v8817_v1  ;;  %8941 = vmatpush3.bf16.msra.mxu1 %v8820_v54 }
 0x4fe   : > { %8819 = vmatprep.subr.bf16.mxu0 %v12178_v37 }
 0x500   : > { %7884 = vmatmul.mubr.f32.vlgmr.msra.gmra.mrb[36].mxu1 %v11706_v32 }
 0x501   : > { %8821 = vmatpush3.bf16.msra.mxu0 %v8820_v54 }
 0x502   : > { %8846 = vmatprep.subr.bf16.mxu0 %v12178_v37 }
 0x504   : > { %7709 = vmatmul.mubr.f32.vlgmr.msra.gmra.mrb[32].mxu0 %v4955_v6 }
 0x505   : > { %8848 = vmatpush3.bf16.msra.mxu0 %v8847_v40  ;;  %7778 = vmatprep.mubr.msk.f32.mxu0 %vm9239_vm1, %v12177_v42 }
 0x506   : > { %8849 = vmatprep.subr.bf16.mxu0 %v12178_v37 }
 0x509   : > { %8851 = vmatpush3.bf16.msra.mxu0 %v8850_v56 }
 0x50a   : > { %8852 = vmatprep.subr.bf16.mxu0 %v12178_v37 }
 0x50d   : > { %8854 = vmatpush3.bf16.msra.mxu0 %v8853_v16 }
 0x50e   : > { %8855 = vmatprep.subr.bf16.mxu0 %v12178_v37 }
 0x511   : > { %8857 = vmatpush3.bf16.msra.mxu0 %v8856_v39 }
 0x512   : > { %8858 = vmatprep.subr.bf16.mxu0 %v12178_v37 }
 0x513   : > { %v4205_v31 = vpop.f32.mrb[24].mxu1 }
 0x514   : > { %v7465_v47 = vpop.f32.mrb[25].mxu1 }
 0x515   : > { %8860 = vmatpush3.bf16.msra.mxu0 %v8859_v29 }
 0x516   : > { %8861 = vmatprep.subr.bf16.mxu0 %v12178_v37 }
 0x517   : > { %v3806_v12 = vpop.f32.mrb[20].mxu0 }
 0x518   : > { %v3807_v20 = vadd.f32 %v3806_v12, %v3655_v4  ;;  %v7325_v9 = vpop.f32.mrb[21].mxu0 }
 0x519   : > { %8863 = vmatpush3.bf16.msra.mxu0 %v8862_v26 }
 0x51a   : > { %8864 = vmatprep.subr.bf16.mxu0 %v12178_v37 }
 0x51d   : > { %8866 = vmatpush3.bf16.msra.mxu0 %v8865_v50 }
 0x51e   : > { %8867 = vmatprep.subr.bf16.mxu0 %v12178_v37 }
 0x521   : > { %8869 = vmatpush3.bf16.msra.mxu0 %v8868_v24 }
 0x522   : > { %8894 = vmatprep.subr.bf16.mxu0 %v12178_v37 }
 0x524   : > { %7779 = vmatmul.mubr.f32.vlgmr.msra.gmra.mrb[34].mxu0 %v11786_v43 }
 0x525   : > { %8896 = vmatpush3.bf16.msra.mxu0 %v8895_v49  ;;  %7848 = vmatprep.mubr.msk.f32.mxu0 %vm9239_vm1, %v12177_v42  ;;  %v12420_v42 = vand.u32 4294901760, %v11566_v60  ;;  %v12424_v60 = vand.u32 4294901760, %v11631_v38 }
 0x526   : > { %8897 = vmatprep.subr.bf16.mxu0 %v12178_v37 }
 0x527   : > { %v8907_v55 = vpack.c.bf16 %v12421_v13, %v12420_v42  ;;  %v8913_v8 = vpack.c.bf16 %v12425_v11, %v12424_v60 }
 0x529   : > { %8899 = vmatpush3.bf16.msra.mxu0 %v8898_v23 }
 0x52a   : > { %8900 = vmatprep.subr.bf16.mxu0 %v12178_v37 }
 0x52d   : > { %8902 = vmatpush3.bf16.msra.mxu0 %v8901_v45 }
 0x52e   : > { %8903 = vmatprep.subr.bf16.mxu0 %v12178_v37 }
 0x531   : > { %8905 = vmatpush3.bf16.msra.mxu0 %v8904_v22 }
 0x532   : > { %8906 = vmatprep.subr.bf16.mxu0 %v12178_v37 }
 0x533   : > { %v4447_v33 = vpop.f32.mrb[26].mxu1 }
 0x534   : > { %v7535_v52 = vpop.f32.mrb[27].mxu1 }
 0x535   : > { %8908 = vmatpush3.bf16.msra.mxu0 %v8907_v55 }
 0x536   : > { %8909 = vmatprep.subr.bf16.mxu0 %v12178_v37 }
 0x537   : > { %v3910_v28 = vpop.f32.mrb[22].mxu0 }
 0x538   : > { %v3911_v57 = vadd.f32 %v3910_v28, %v3807_v20  ;;  %v7360_v1 = vpop.f32.mrb[23].mxu0 }
 0x539   : > { %8911 = vmatpush3.bf16.msra.mxu0 %v8910_v5 }
 0x53a   : > { %8912 = vmatprep.subr.bf16.mxu0 %v12178_v37  ;;  %v4000_v21 = vadd.f32 %v11814_v17, %v3911_v57 }
 0x53d   : > { %8914 = vmatpush3.bf16.msra.mxu0 %v8913_v8 }
 0x53e   : > { %8915 = vmatprep.subr.bf16.mxu0 %v12178_v37 }
 0x541   : > { %8917 = vmatpush3.bf16.msra.mxu0 %v8916_v3 }
 0x544   : > { %7849 = vmatmul.mubr.f32.vlgmr.msra.gmra.mrb[36].mxu0 %v11706_v32 }
 0x553   : > { %v4640_v0 = vpop.f32.mrb[28].mxu1 }
 0x554   : > { %v7605_v38 = vpop.f32.mrb[29].mxu1 }
 0x557   : > { %v4118_v25 = vpop.f32.mrb[24].mxu0 }
 0x558   : > { %v4119_v41 = vadd.f32 %v4118_v25, %v4000_v21  ;;  %v7430_v54 = vpop.f32.mrb[25].mxu0 }
 0x55a   : > { %v4206_v43 = vadd.f32 %v4205_v31, %v4119_v41 }
 0x573   : > { %v4846_v35 = vpop.f32.mrb[30].mxu1 }
 0x574   : > { %v7675_v15 = vpop.f32.mrb[31].mxu1 }
 0x577   : > { %v4296_v53 = vpop.f32.mrb[26].mxu0 }
 0x578   : > { %v4297_v10 = vadd.f32 %v4296_v53, %v4206_v43  ;;  %v7500_v17 = vpop.f32.mrb[27].mxu0 }
 0x57a   : > { %v4448_v59 = vadd.f32 %v4447_v33, %v4297_v10 }
 0x593   : > { %v5108_v58 = vpop.f32.mrb[32].mxu1 }
 0x594   : > { %v7745_v44 = vpop.f32.mrb[33].mxu1 }
 0x597   : > { %v4551_v34 = vpop.f32.mrb[28].mxu0 }
 0x598   : > { %v4552_v4 = vadd.f32 %v4551_v34, %v4448_v59  ;;  %v7570_v37 = vpop.f32.mrb[29].mxu0 }
 0x59a   : > { %v4641_v30 = vadd.f32 %v4640_v0, %v4552_v4 }
 0x5b3   : > { %v5301_v51 = vpop.f32.mrb[34].mxu1 }
 0x5b4   : > { %v7815_v32 = vpop.f32.mrb[35].mxu1 }
 0x5b7   : > { %v4759_v40 = vpop.f32.mrb[30].mxu0 }
 0x5b8   : > { %v4760_v6 = vadd.f32 %v4759_v40, %v4641_v30  ;;  %v7640_v56 = vpop.f32.mrb[31].mxu0 }
 0x5ba   : > { %v4847_v16 = vadd.f32 %v4846_v35, %v4760_v6 }
 0x5d3   : > { %v5507_v39 = vpop.f32.mrb[36].mxu1 }
 0x5d4   : > { %v7885_v29 = vpop.f32.mrb[37].mxu1 }
 0x5d7   : > { %v4957_v31 = vpop.f32.mrb[32].mxu0 }
 0x5d8   : > { %v5109_v47 = vadd.f32 %v5108_v58, %v4957_v31  ;;  %v7710_v26 = vpop.f32.mrb[33].mxu0 }
 0x5f7   : > { %v5212_v12 = vpop.f32.mrb[34].mxu0 }
 0x5f8   : > { %v5213_v20 = vadd.f32 %v5212_v12, %v5109_v47  ;;  %v7780_v9 = vpop.f32.mrb[35].mxu0 }
 0x5fa   : > { %v5302_v19 = vadd.f32 %v5301_v51, %v5213_v20 }
 0x617   : > { %v5420_v50 = vpop.f32.mrb[36].mxu0 }
 0x618   : > { %v5421_v24 = vadd.f32 %v5420_v50, %v5302_v19  ;;  %v7850_v18 = vpop.f32.mrb[37].mxu0 }
 0x61a   : > { %v5508_v63 = vadd.f32 %v5507_v39, %v5421_v24 }
 0x61c   : > { %v5511_v49 = vadd.f32 %v5508_v63, %v4847_v16 }
 0x61e   : > { %v5512_v14 = vadd.f32 %v9057_v27, %v5511_v49 }
 0x620   : > { %v5513_v23 = vmax.f32 %v5512_v14, 0.0 }
 0x622   : > { %5658 = vst [vmem:[%s10990_s9 + $0x8] sm:$0xff] %v5513_v23 }
 0x623   : > { %9157 = shalt.err (!%p9154_p11)
}
 0x624   : > { %s9158_s9 = scalar_lea.hbm %s11902_s25, 256  ;;  %s9162_s10 = scalar_lea.hbm %s11959_s5, 512 }
 0x625   : > { %p9159_p0 = scmp.ne.s32.totalorder %s11902_s25, %s9158_s9  ;;  %p9163_p6 = scmp.lt.u32.totalorder %s11902_s25, %s11959_s5 }
 0x626   : > { %p9164_p7 = scmp.lt.u32.totalorder %s9162_s10, %s9158_s9  ;;  %p9166_p8 = scmp.lt.u32.totalorder %s9158_s9, %s11902_s25 }
 0x627   : > { %p9160_p4 = pnand %p9159_p0, %p12427_p12 }
 0x628   : > { %p9165_p2 = por %p9164_p7, %p9163_p6 }
 0x629   : > { %p9161_p13 = pneg %p9160_p4 }
 0x62a   : > { %p9167_p1 = por %p9166_p8, %p9165_p2 }
 0x62c   : > { %p9168_p10 = pnand %p9167_p1, %p9161_p13 }
 0x62e   : > { %9171 = shalt.err (!%p9168_p10)
}
 0x62f   : > { %s9241_s27 = smov 128   ;;  %s9242_s15 = smov 8  }
 0x630   : > { %8976 = dma.vmem_to_hbm [thread:$0]  (%p12427_p12), %s11904_s16, 256, %s11902_s25, %s5517_s26, %s9241_s27, %s9241_s27, %s9242_s15  }
 0x631 PF: > { %s5547_s21 = sand.u32 1, %s9210_s18   ;;  %p12428_p3 = scmp.ne.s32.totalorder %s12151_s29, 0 }
 0x632   : > { %p12429_p5 = scmp.ge.s32.totalorder %s9230_s23, 2  ;;  %s5548_s28 = scalar_lea.sflag [#allocation5], %s5547_s21 }
 0x634   : > { %p8990_p9 = pnand %p12429_p5, %p12428_p3 }
 0x636   : > { %9205 = dma.done.wait (!%p8990_p9), %s5548_s28, 256  }
 0x637   : > { %9207 = vsyncadd (!%p8990_p9), %s5548_s28, 4294967040  ;;  %s22_s23 = sadd.s32 1, %s9230_s23   ;;  %s12430_s18 = smov %s9214_s19 }
 0x638   : > { %p19_p11 = scmp.ge.s32.totalorder %s22_s23, 4   ;;  %s12431_s19 = smov %s9218_s20 }
 0x639   : > { %s12432_s20 = smov %s9421_s17  ;;  %s12433_s21 = smov %s9226_s22 }
 0x63a   : > { %s12434_s22 = smov %s12436_s8  ;;  %21 = sbr.rel (!%p19_p11) target bundleno = 7 (0x7), region = 102 }
 0x641   :  { %5553 = vsyncpa [#allocation4], 1 }
 0x642   :  { %5555 = vsyncpa [#allocation4 + $0x1], 1 }
 0x643   :  { %5556 = vsyncpa [#allocation7], 1 }
 0x644   :  { %5557 = vsyncpa [#allocation5], 1 }
 0x645   :  { %5559 = vsyncpa [#allocation5 + $0x1], 1 }

</bundles_post_ra>
